<compile_context>
chip_gen: v6e
topology: v6e:2x2x1
jax: 0.10.0
libtpu: 0.0.40
codegen_flags: <defaults>
</compile_context>

<pallas_src>
import math

import jax
import jax.numpy as jnp
from jax.experimental import pallas as pl
from jax.experimental.pallas import tpu as pltpu

LANE = 128
HALO = 8   # sublane-aligned halo rows per side (k=3 convs strictly need only 2)


def _round_up(n, m=LANE):
    return ((n + m - 1) // m) * m


# ----------------------------------------------------------------------------- kernel
def _make_visual_head_kernel(T, tT, H, Hp, FFp):
    """T = full sequence, tT = time tile, H = true hidden, Hp/FFp = lane-padded dims."""
    W = tT + 2 * HALO
    n_pad = Hp - H
    inv_h = 1.0 / float(H)

    def kernel(xp_ref, xm_ref, xn_ref, pep_ref, pem_ref, pen_ref,
               w1_ref, hv_ref, c1w_ref, c1b_ref, c2w_ref, wo_ref, bo_ref,
               feat_ref, featn_ref, logits_ref, logp_ref, prob_ref):
        t = pl.program_id(1)

        # ---- assemble the haloed window: [prev 8 rows | tT main rows | next 8 rows]
        x = jnp.concatenate([xp_ref[0], xm_ref[0], xn_ref[0]], axis=0)       # (W, Din) f32
        pe = jnp.concatenate([pep_ref[...], pem_ref[...], pen_ref[...]], axis=0)  # (W, Hp)

        hv = hv_ref[...]                  # packed rows: b1|lnf_g|lnf_b|c2b|ln_g|ln_b|0|0
        b1, lnf_g, lnf_b = hv[0:1], hv[1:2], hv[2:3]
        c2b, ln_g, ln_b = hv[3:4], hv[4:5], hv[5:6]

        # ---- fc1 (eval BatchNorm folded in) -> ReLU -> +PE  (dropout = identity)
        # Invariant: padded lanes of h are EXACTLY zero (w1/b1/pe zero-padded); the
        # LayerNorm padded-lane variance correction below relies on it.
        h = jnp.dot(x.astype(jnp.bfloat16), w1_ref[...],
                    preferred_element_type=jnp.float32)
        h = jnp.maximum(h + b1, 0.0) + pe                                    # (W, Hp) f32

        def layer_norm(z, g, b):
            # Padded lanes of z are exactly zero; zero-padded gamma/beta keep them zero.
            mu = jnp.sum(z, axis=-1, keepdims=True) * inv_h
            d = z - mu
            var = (jnp.sum(d * d, axis=-1, keepdims=True) - n_pad * mu * mu) * inv_h
            return d * jax.lax.rsqrt(var + 1e-6) * g + b

        # global (sequence) row index of every local window row; first/last masks
        # implement the k=3 'same' zero padding at the true sequence edges.
        g_row = jax.lax.broadcasted_iota(jnp.int32, (W, 1), 0) + (t * tT - HALO)
        first, last = g_row == 0, g_row == (T - 1)

        # ---- PositionWiseFeedForward: LN -> conv1d(k=3,'same') -> ReLU -> conv1d -> +skip
        hn = layer_norm(h, lnf_g, lnf_b)

        # conv1 over the full window: three accumulating matmuls against static tap
        # slices (no (W,3K) concatenated temporaries).
        hn_p = jnp.where(first, 0.0, pltpu.roll(hn, shift=1, axis=0))
        hn_n = jnp.where(last, 0.0, pltpu.roll(hn, shift=W - 1, axis=0))
        f = jnp.dot(hn_p.astype(jnp.bfloat16), c1w_ref[0:Hp, :],
                    preferred_element_type=jnp.float32)
        f += jnp.dot(hn.astype(jnp.bfloat16), c1w_ref[Hp:2 * Hp, :],
                     preferred_element_type=jnp.float32)
        f += jnp.dot(hn_n.astype(jnp.bfloat16), c1w_ref[2 * Hp:3 * Hp, :],
                     preferred_element_type=jnp.float32)
        f = jnp.maximum(f + c1b_ref[...], 0.0)                   # (W, FFp); dropout = id

        # conv2 only for the tT interior rows, via static shifted slices of f.
        lo = HALO
        first_i, last_i = first[lo:lo + tT], last[lo:lo + tT]
        f_p = jnp.where(first_i, 0.0, f[lo - 1:lo + tT - 1])
        f_n = jnp.where(last_i, 0.0, f[lo + 1:lo + tT + 1])
        ff = jnp.dot(f_p.astype(jnp.bfloat16), c2w_ref[0:FFp, :],
                     preferred_element_type=jnp.float32)
        ff += jnp.dot(f[lo:lo + tT].astype(jnp.bfloat16), c2w_ref[FFp:2 * FFp, :],
                      preferred_element_type=jnp.float32)
        ff += jnp.dot(f_n.astype(jnp.bfloat16), c2w_ref[2 * FFp:3 * FFp, :],
                      preferred_element_type=jnp.float32)

        # ---- skip connection + final LayerNorm(eps=1e-6)  (interior rows only)
        y = layer_norm(h[lo:lo + tT] + ff + c2b, ln_g, ln_b)     # (tT, Hp) f32
        feat_ref[0] = y.astype(feat_ref.dtype)

        # ---- F.normalize(x, dim=-1)  (p=2, eps=1e-12)
        ss = jnp.sum(y * y, axis=-1, keepdims=True)
        featn_ref[0] = (y * jax.lax.rsqrt(jnp.maximum(ss, 1e-24))).astype(featn_ref.dtype)

        # ---- gloss_output_layer -> softmax / log_softmax.  Padded class columns carry a
        # -1e9 bias so exp() underflows to 0; the wrapper slices them off.
        logits = jnp.dot(y.astype(jnp.bfloat16), wo_ref[...],
                         preferred_element_type=jnp.float32) + bo_ref[...]
        logits_ref[0] = logits.astype(logits_ref.dtype)
        m = jnp.max(logits, axis=-1, keepdims=True)
        e = jnp.exp(logits - m)
        s = jnp.sum(e, axis=-1, keepdims=True)
        logp_ref[0] = (logits - m - jnp.log(s)).astype(logp_ref.dtype)
        prob_ref[0] = (e * (1.0 / s)).astype(prob_ref.dtype)     # exact row normalization

    return kernel


# ----------------------------------------------------------------------------- packing
def pack_params(params):
    """One-time offline prep: fold eval BatchNorm into fc1, lane-pad all feature/class
    dims to 128, fuse the 3 conv taps into stacked weights, pack the (1,Hp) vectors
    into one (8,Hp) array, cast matmul operands to bf16."""
    f32, bf16 = jnp.float32, jnp.bfloat16
    Din, H = params["w1"].shape
    FF = params["c1w"].shape[2]
    C = params["wo"].shape[1]
    Hp, FFp, Cp = _round_up(H), _round_up(FF), _round_up(C)

    w1 = params["w1"] * params["bn_scale"]
    b1 = params["b1"] * params["bn_scale"] + params["bn_shift"]

    def pad_last(a, n, value=0.0):
        pad = [(0, 0)] * (a.ndim - 1) + [(0, n - a.shape[-1])]
        return jnp.pad(a, pad, constant_values=value)

    c1w = pad_last(params["c1w"], FFp)                       # (3, H, FFp)
    c1w = jnp.pad(c1w, ((0, 0), (0, Hp - H), (0, 0)))        # (3, Hp, FFp)
    c2w = pad_last(params["c2w"], Hp)                        # (3, FF, Hp)
    c2w = jnp.pad(c2w, ((0, 0), (0, FFp - FF), (0, 0)))      # (3, FFp, Hp)
    wo = pad_last(jnp.pad(params["wo"], ((0, Hp - H), (0, 0))), Cp)

    hvecs = jnp.concatenate([
        pad_last(b1, Hp),
        pad_last(params["lnf_g"], Hp), pad_last(params["lnf_b"], Hp),
        pad_last(params["c2b"], Hp),
        pad_last(params["ln_g"], Hp), pad_last(params["ln_b"], Hp),
        jnp.zeros((2, Hp), f32)], axis=0).astype(f32)        # (8, Hp)

    return {
        "dims": (Din, H, Hp, FF, FFp, C, Cp),
        "pe": pad_last(params["pe"], Hp).astype(f32),        # (T, Hp)
        "w1": pad_last(w1, Hp).astype(bf16),                 # (Din, Hp)
        "hvecs": hvecs,                                      # b1|lnf_g|lnf_b|c2b|ln_g|ln_b
        "c1w": c1w.reshape(3 * Hp, FFp).astype(bf16),        # fused taps (prev|mid|next)
        "c1b": pad_last(params["c1b"], FFp).astype(f32),
        "c2w": c2w.reshape(3 * FFp, Hp).astype(bf16),
        "wo": wo.astype(bf16),                               # (Hp, Cp)
        "bo": pad_last(params["bo"], Cp, value=-1e9).astype(f32),
    }


# ----------------------------------------------------------------------------- wrapper
def _vmem_limit_bytes():
    try:
        cap = int(pltpu.get_tpu_info().vmem_capacity_bytes)
        return min(cap * 3 // 4, 96 * 1024 * 1024)
    except Exception:
        return 48 * 1024 * 1024      # safe everywhere (v7x physical VMEM = 64 MiB)


def _pick_time_tile(T, target):
    if T <= target:
        return T
    start = (min(target, T) // 8) * 8
    for tt in range(start, 7, -8):
        if T % tt == 0:
            return tt
    return T


def visual_head_forward(x, mask, packed, valid_len_in=None, time_tile=256):
    del mask  # eval MaskedNorm path: running stats, mask unused (see TODO at top)
    B, T, Din = x.shape
    Din_p, H, Hp, FF, FFp, C, Cp = packed["dims"]
    assert Din == Din_p
    assert T % 8 == 0, "sequence length must be a multiple of 8"
    assert packed["pe"].shape[0] == T
    if valid_len_in is None:
        valid_len_in = jnp.full((B,), T, dtype=jnp.int32)

    x = x.astype(jnp.float32)   # no wrapper bf16 cast: the kernel casts after the DMA
    tT = _pick_time_tile(T, time_tile)
    nT = T // tT
    n8 = tT // 8
    nblk8 = T // 8

    f32 = jnp.float32
    out_shapes = (
        jax.ShapeDtypeStruct((B, T, Hp), f32),   # gloss_feature       (lane-padded)
        jax.ShapeDtypeStruct((B, T, Hp), f32),   # gloss_feature_norm  (lane-padded)
        jax.ShapeDtypeStruct((B, T, Cp), f32),   # gloss_logits        (lane-padded)
        jax.ShapeDtypeStruct((B, T, Cp), f32),   # log-probabilities   (lane-padded)
        jax.ShapeDtypeStruct((B, T, Cp), f32),   # probabilities       (lane-padded)
    )

    def x_spec(rows, idx):
        return pl.BlockSpec((1, rows, Din), idx)

    def pe_spec(rows, idx):
        return pl.BlockSpec((rows, Hp), idx)

    def out_spec(ncol):
        return pl.BlockSpec((1, tT, ncol), lambda b, t: (b, t, 0))

    def make_in_specs(single_buffer_weights):
        wkw = {"pipeline_mode": pl.Buffered(1)} if single_buffer_weights else {}

        def w_spec(shape):
            nd = len(shape)
            return pl.BlockSpec(shape, lambda b, t: (0,) * nd, **wkw)

        return [
            # x: prev-8-row halo | main tile | next-8-row halo (block index clamped at
            # the sequence edges; clamped halo rows are never consumed - the 'same'
            # padding masks zero the offending conv taps).
            x_spec(8,  lambda b, t: (b, jnp.maximum(t * n8 - 1, 0), 0)),
            x_spec(tT, lambda b, t: (b, t, 0)),
            x_spec(8,  lambda b, t: (b, jnp.minimum((t + 1) * n8, nblk8 - 1), 0)),
            # positional-encoding table, same halo scheme
            pe_spec(8,  lambda b, t: (jnp.maximum(t * n8 - 1, 0), 0)),
            pe_spec(tT, lambda b, t: (t, 0)),
            pe_spec(8,  lambda b, t: (jnp.minimum((t + 1) * n8, nblk8 - 1), 0)),
            # grid-invariant weights (single-buffered when supported)
            w_spec((Din, Hp)),            # fc1 (BN folded)
            w_spec((8, Hp)),              # b1|lnf_g|lnf_b|c2b|ln_g|ln_b
            w_spec((3 * Hp, FFp)),        # conv1 taps
            w_spec((1, FFp)),             # conv1 bias
            w_spec((3 * FFp, Hp)),        # conv2 taps
            w_spec((Hp, Cp)),             # gloss_output_layer W
            w_spec((1, Cp)),              # gloss_output_layer b (-1e9 padded classes)
        ]

    out_specs = [out_spec(Hp), out_spec(Hp), out_spec(Cp), out_spec(Cp), out_spec(Cp)]
    kernel = _make_visual_head_kernel(T, tT, H, Hp, FFp)
    operands = (x, x, x, packed["pe"], packed["pe"], packed["pe"],
                packed["w1"], packed["hvecs"], packed["c1w"], packed["c1b"],
                packed["c2w"], packed["wo"], packed["bo"])

    def run(single_buffer_weights):
        return pl.pallas_call(
            kernel,
            out_shape=out_shapes,
            grid=(B, nT),
            in_specs=make_in_specs(single_buffer_weights),
            out_specs=out_specs,
            compiler_params=pltpu.CompilerParams(
                dimension_semantics=("parallel", "parallel"),
                vmem_limit_bytes=_vmem_limit_bytes()),
        )(*operands)

    try:
        feat, featn, logits, logp, prob = run(True)
    except Exception:
        # pl.Buffered(1) not supported on this jax/libtpu -> default double-buffering
        feat, featn, logits, logp, prob = run(False)

    return {
        "gloss_feature_ssl": None,                     # ssl_projection_cfg == {}
        "gloss_feature": feat[..., :H],
        "gloss_feature_norm": featn[..., :H],
        "gloss_logits": logits[..., :C],
        "gloss_probabilities_log": logp[..., :C],
        "gloss_probabilities": prob[..., :C],
        "valid_len_out": valid_len_in,                 # plus_conv_cfg == {} -> unchanged
    }


# ----------------------------------------------------------------------------- params
def make_params(Din, H, FF, C, T):
    key = jax.random.PRNGKey(0)
    ks = jax.random.split(key, 8)
    f32 = jnp.float32

    w1 = jax.random.normal(ks[0], (Din, H), f32) / math.sqrt(Din)
    b1 = jax.random.normal(ks[1], (1, H), f32) * 0.01

    # MaskedNorm / BatchNorm1d defaults: gamma=1, beta=0, running_mean=0, running_var=1
    bn_gamma = jnp.ones((1, H), f32)
    bn_beta = jnp.zeros((1, H), f32)
    run_mean = jnp.zeros((1, H), f32)
    run_var = jnp.ones((1, H), f32)
    bn_scale = bn_gamma / jnp.sqrt(run_var + 1e-5)
    bn_shift = bn_beta - run_mean * bn_scale

    # sinusoidal positional encoding table (T, H)
    pos = jnp.arange(T, dtype=f32)[:, None]
    div = jnp.exp(jnp.arange(0, H, 2, dtype=f32) * (-math.log(10000.0) / H))
    pe = jnp.zeros((T, H), f32)
    pe = pe.at[:, 0::2].set(jnp.sin(pos * div))
    pe = pe.at[:, 1::2].set(jnp.cos(pos * div))

    # conv weights stored as (tap, in, out); tap 0 multiplies input[t-1]
    c1w = jax.random.normal(ks[2], (3, H, FF), f32) / math.sqrt(3 * H)
    c1b = jax.random.normal(ks[3], (1, FF), f32) * 0.01
    c2w = jax.random.normal(ks[4], (3, FF, H), f32) / math.sqrt(3 * FF)
    c2b = jax.random.normal(ks[5], (1, H), f32) * 0.01

    wo = jax.random.normal(ks[6], (H, C), f32) / math.sqrt(H)
    bo = jax.random.normal(ks[7], (1, C), f32) * 0.01

    return {
        "w1": w1, "b1": b1,
        "bn_scale": bn_scale, "bn_shift": bn_shift,
        "pe": pe,
        "lnf_g": jnp.ones((1, H), f32), "lnf_b": jnp.zeros((1, H), f32),
        "c1w": c1w, "c1b": c1b, "c2w": c2w, "c2b": c2b,
        "ln_g": jnp.ones((1, H), f32), "ln_b": jnp.zeros((1, H), f32),
        "wo": wo, "bo": bo,
    }


# ----------------------------------------------------------------------------- reference
def ref_forward(x, p):
    """Plain-JAX eval-path reference with the same bf16 rounding of MXU operands as
    the kernel (accumulation in f32)."""
    bf = lambda a: a.astype(jnp.bfloat16).astype(jnp.float32)

    def ln(z, g, b, eps=1e-6):
        mu = z.mean(-1, keepdims=True)
        v = ((z - mu) ** 2).mean(-1, keepdims=True)
        return (z - mu) / jnp.sqrt(v + eps) * g + b

    w1 = p["w1"] * p["bn_scale"]
    b1 = p["b1"] * p["bn_scale"] + p["bn_shift"]
    h = jnp.maximum(bf(x) @ bf(w1) + b1, 0.0) + p["pe"][None]
    hn = ln(h, p["lnf_g"], p["lnf_b"])
    hp = jnp.pad(hn, ((0, 0), (1, 0), (0, 0)))[:, :-1]
    hx = jnp.pad(hn, ((0, 0), (0, 1), (0, 0)))[:, 1:]
    f = (bf(hp) @ bf(p["c1w"][0]) + bf(hn) @ bf(p["c1w"][1])
         + bf(hx) @ bf(p["c1w"][2]) + p["c1b"])
    f = jnp.maximum(f, 0.0)
    fp = jnp.pad(f, ((0, 0), (1, 0), (0, 0)))[:, :-1]
    fx = jnp.pad(f, ((0, 0), (0, 1), (0, 0)))[:, 1:]
    ff = (bf(fp) @ bf(p["c2w"][0]) + bf(f) @ bf(p["c2w"][1])
          + bf(fx) @ bf(p["c2w"][2]) + p["c2b"])
    h = ln(h + ff, p["ln_g"], p["ln_b"])
    logits = bf(h) @ bf(p["wo"]) + p["bo"]
    return h, logits


# ----------------------------------------------------------------------------- main
if __name__ == "__main__":
    B, T, Din = 2, 24, 32         # batch, seq, input_size
    H, FF, C = 32, 64, 16         # hidden_size, ff_size, cls_num

    params = make_params(Din, H, FF, C, T)
    packed = pack_params(params)

    kx, _ = jax.random.split(jax.random.PRNGKey(0))
    x = jax.random.normal(kx, (B, T, Din), jnp.float32)
    mask = jnp.ones((B, 1, T), dtype=bool)   # accepted but unused in eval path

    # tiled path (3 time tiles of 8 rows -> exercises first/middle/last halo handling)
    out = visual_head_forward(x, mask, packed, time_tile=8)
    jax.block_until_ready(out["gloss_probabilities"])
    # single-tile path (tT = T)
    out1 = visual_head_forward(x, mask, packed)
    jax.block_until_ready(out1["gloss_probabilities"])

    # sanity check against a plain-JAX reference
    ref_feat, ref_logits = ref_forward(x, params)
    ref_logp = jax.nn.log_softmax(ref_logits, -1)
    ref_prob = jax.nn.softmax(ref_logits, -1)
    ref_featn = ref_feat / jnp.maximum(
        jnp.sqrt(jnp.sum(ref_feat ** 2, -1, keepdims=True)), 1e-12)

    assert out["gloss_feature"].shape == (B, T, H)
    assert out["gloss_logits"].shape == (B, T, C)
    assert jnp.allclose(out["gloss_feature"], ref_feat, atol=2e-3, rtol=2e-3)
    assert jnp.allclose(out["gloss_feature_norm"], ref_featn, atol=2e-3, rtol=2e-3)
    assert jnp.allclose(out["gloss_logits"], ref_logits, atol=2e-3, rtol=2e-3)
    assert jnp.allclose(out["gloss_probabilities_log"], ref_logp, atol=2e-3, rtol=2e-3)
    assert jnp.allclose(out["gloss_probabilities"], ref_prob, atol=2e-3, rtol=2e-3)
    assert jnp.allclose(out["gloss_probabilities"].sum(-1), jnp.ones((B, T)), atol=1e-5)
    # tiled and single-tile paths agree
    assert jnp.allclose(out["gloss_logits"], out1["gloss_logits"], atol=1e-4, rtol=1e-4)
    assert jnp.allclose(out["gloss_probabilities"], out1["gloss_probabilities"],
                        atol=1e-4, rtol=1e-4)

    print("KERNEL_OK")
</pallas_src>

<mosaic_0001>
module attributes {stable_mosaic.version = 11 : i64} {
  func.func @kernel(%arg0: i32, %arg1: i32, %arg2: memref<1x8x32xf32, #tpu.memory_space<vmem>>, %arg3: memref<1x8x32xf32, #tpu.memory_space<vmem>>, %arg4: memref<1x8x32xf32, #tpu.memory_space<vmem>>, %arg5: memref<8x128xf32, #tpu.memory_space<vmem>>, %arg6: memref<8x128xf32, #tpu.memory_space<vmem>>, %arg7: memref<8x128xf32, #tpu.memory_space<vmem>>, %arg8: memref<32x128xbf16, #tpu.memory_space<vmem>>, %arg9: memref<8x128xf32, #tpu.memory_space<vmem>>, %arg10: memref<384x128xbf16, #tpu.memory_space<vmem>>, %arg11: memref<1x128xf32, #tpu.memory_space<vmem>>, %arg12: memref<384x128xbf16, #tpu.memory_space<vmem>>, %arg13: memref<128x128xbf16, #tpu.memory_space<vmem>>, %arg14: memref<1x128xf32, #tpu.memory_space<vmem>>, %arg15: memref<1x8x128xf32, #tpu.memory_space<vmem>>, %arg16: memref<1x8x128xf32, #tpu.memory_space<vmem>>, %arg17: memref<1x8x128xf32, #tpu.memory_space<vmem>>, %arg18: memref<1x8x128xf32, #tpu.memory_space<vmem>>, %arg19: memref<1x8x128xf32, #tpu.memory_space<vmem>>) attributes {dimension_semantics = [#tpu.dimension_semantics<parallel>, #tpu.dimension_semantics<parallel>], iteration_bounds = array<i64: 2, 3>, scalar_prefetch = 0 : i64, scratch_operands = 0 : i64, tpu.core_type = #tpu.core_type<tc>, window_params = [{transform_indices = @transform_0, window_bounds = array<i64: 1, 8, 32>}, {transform_indices = @transform_1, window_bounds = array<i64: 1, 8, 32>}, {transform_indices = @transform_2, window_bounds = array<i64: 1, 8, 32>}, {transform_indices = @transform_3, window_bounds = array<i64: 8, 128>}, {transform_indices = @transform_4, window_bounds = array<i64: 8, 128>}, {transform_indices = @transform_5, window_bounds = array<i64: 8, 128>}, {pipeline_mode = #tpu.pipeline_mode<synchronous>, transform_indices = @transform_6, window_bounds = array<i64: 32, 128>}, {pipeline_mode = #tpu.pipeline_mode<synchronous>, transform_indices = @transform_7, window_bounds = array<i64: 8, 128>}, {pipeline_mode = #tpu.pipeline_mode<synchronous>, transform_indices = @transform_8, window_bounds = array<i64: 384, 128>}, {pipeline_mode = #tpu.pipeline_mode<synchronous>, transform_indices = @transform_9, window_bounds = array<i64: 1, 128>}, {pipeline_mode = #tpu.pipeline_mode<synchronous>, transform_indices = @transform_10, window_bounds = array<i64: 384, 128>}, {pipeline_mode = #tpu.pipeline_mode<synchronous>, transform_indices = @transform_11, window_bounds = array<i64: 128, 128>}, {pipeline_mode = #tpu.pipeline_mode<synchronous>, transform_indices = @transform_12, window_bounds = array<i64: 1, 128>}, {transform_indices = @transform_13, window_bounds = array<i64: 1, 8, 128>}, {transform_indices = @transform_14, window_bounds = array<i64: 1, 8, 128>}, {transform_indices = @transform_15, window_bounds = array<i64: 1, 8, 128>}, {transform_indices = @transform_16, window_bounds = array<i64: 1, 8, 128>}, {transform_indices = @transform_17, window_bounds = array<i64: 1, 8, 128>}]} {
    %c0 = arith.constant 0 : index
    %c0_0 = arith.constant 0 : index
    %c0_1 = arith.constant 0 : index
    %0 = vector.load %arg2[%c0, %c0_0, %c0_1] : memref<1x8x32xf32, #tpu.memory_space<vmem>>, vector<1x8x32xf32>
    %1 = vector.shape_cast %0 : vector<1x8x32xf32> to vector<8x32xf32>
    %c0_2 = arith.constant 0 : index
    %c0_3 = arith.constant 0 : index
    %c0_4 = arith.constant 0 : index
    %2 = vector.load %arg3[%c0_2, %c0_3, %c0_4] : memref<1x8x32xf32, #tpu.memory_space<vmem>>, vector<1x8x32xf32>
    %3 = vector.shape_cast %2 : vector<1x8x32xf32> to vector<8x32xf32>
    %c0_5 = arith.constant 0 : index
    %c0_6 = arith.constant 0 : index
    %c0_7 = arith.constant 0 : index
    %4 = vector.load %arg4[%c0_5, %c0_6, %c0_7] : memref<1x8x32xf32, #tpu.memory_space<vmem>>, vector<1x8x32xf32>
    %5 = vector.shape_cast %4 : vector<1x8x32xf32> to vector<8x32xf32>
    %6 = tpu.concatenate %1, %3, %5 in 0 : vector<8x32xf32>, vector<8x32xf32>, vector<8x32xf32> -> vector<24x32xf32>
    %c0_8 = arith.constant 0 : index
    %c0_9 = arith.constant 0 : index
    %7 = vector.load %arg5[%c0_8, %c0_9] : memref<8x128xf32, #tpu.memory_space<vmem>>, vector<8x128xf32>
    %c0_10 = arith.constant 0 : index
    %c0_11 = arith.constant 0 : index
    %8 = vector.load %arg6[%c0_10, %c0_11] : memref<8x128xf32, #tpu.memory_space<vmem>>, vector<8x128xf32>
    %c0_12 = arith.constant 0 : index
    %c0_13 = arith.constant 0 : index
    %9 = vector.load %arg7[%c0_12, %c0_13] : memref<8x128xf32, #tpu.memory_space<vmem>>, vector<8x128xf32>
    %10 = tpu.concatenate %7, %8, %9 in 0 : vector<8x128xf32>, vector<8x128xf32>, vector<8x128xf32> -> vector<24x128xf32>
    %c0_14 = arith.constant 0 : index
    %c0_15 = arith.constant 0 : index
    %11 = vector.load %arg9[%c0_14, %c0_15] : memref<8x128xf32, #tpu.memory_space<vmem>>, vector<8x128xf32>
    %12 = vector.extract_strided_slice %11 {offsets = [0, 0], sizes = [1, 128], strides = [1, 1]} : vector<8x128xf32> to vector<1x128xf32>
    %13 = vector.extract_strided_slice %11 {offsets = [1, 0], sizes = [1, 128], strides = [1, 1]} : vector<8x128xf32> to vector<1x128xf32>
    %14 = vector.extract_strided_slice %11 {offsets = [2, 0], sizes = [1, 128], strides = [1, 1]} : vector<8x128xf32> to vector<1x128xf32>
    %15 = vector.extract_strided_slice %11 {offsets = [3, 0], sizes = [1, 128], strides = [1, 1]} : vector<8x128xf32> to vector<1x128xf32>
    %16 = vector.extract_strided_slice %11 {offsets = [4, 0], sizes = [1, 128], strides = [1, 1]} : vector<8x128xf32> to vector<1x128xf32>
    %17 = vector.extract_strided_slice %11 {offsets = [5, 0], sizes = [1, 128], strides = [1, 1]} : vector<8x128xf32> to vector<1x128xf32>
    %18 = arith.truncf %6 : vector<24x32xf32> to vector<24x32xbf16>
    %c0_16 = arith.constant 0 : index
    %c0_17 = arith.constant 0 : index
    %19 = vector.load %arg8[%c0_16, %c0_17] : memref<32x128xbf16, #tpu.memory_space<vmem>>, vector<32x128xbf16>
    %cst = arith.constant dense<0.000000e+00> : vector<24x128xf32>
    %20 = tpu.matmul %18, %19, %cst {dimension_numbers = #tpu.dot_dimension_numbers<[1], [0], [0], [1], [0, 0, 1, 1], [], []>} : vector<24x32xbf16>, vector<32x128xbf16>, vector<24x128xf32> -> vector<24x128xf32>
    %21 = vector.broadcast %12 : vector<1x128xf32> to vector<24x128xf32>
    %22 = arith.addf %20, %21 : vector<24x128xf32>
    %cst_18 = arith.constant 0.000000e+00 : f32
    %23 = vector.broadcast %cst_18 : f32 to vector<24x128xf32>
    %24 = arith.maximumf %22, %23 : vector<24x128xf32>
    %25 = arith.addf %24, %10 : vector<24x128xf32>
    %26 = tpu.iota {dimensions = array<i32: 0>} : vector<24x1xi32>
    %c8_i32 = arith.constant 8 : i32
    %27 = arith.muli %arg1, %c8_i32 : i32
    %c8_i32_19 = arith.constant 8 : i32
    %28 = arith.subi %27, %c8_i32_19 : i32
    %29 = vector.broadcast %28 : i32 to vector<24x1xi32>
    %30 = arith.addi %26, %29 : vector<24x1xi32>
    %c0_i32 = arith.constant 0 : i32
    %31 = vector.broadcast %c0_i32 : i32 to vector<24x1xi32>
    %32 = arith.cmpi eq, %30, %31 : vector<24x1xi32>
    %c23_i32 = arith.constant 23 : i32
    %33 = vector.broadcast %c23_i32 : i32 to vector<24x1xi32>
    %34 = arith.cmpi eq, %30, %33 : vector<24x1xi32>
    %cst_20 = arith.constant dense<0.000000e+00> : vector<24xf32>
    %35 = vector.multi_reduction <add>, %25, %cst_20 [1] : vector<24x128xf32> to vector<24xf32>
    %36 = vector.shape_cast %35 : vector<24xf32> to vector<24x1xf32>
    %cst_21 = arith.constant 3.125000e-02 : f32
    %37 = vector.broadcast %cst_21 : f32 to vector<24x1xf32>
    %38 = arith.mulf %36, %37 : vector<24x1xf32>
    %39 = vector.broadcast %38 : vector<24x1xf32> to vector<24x128xf32>
    %40 = arith.subf %25, %39 : vector<24x128xf32>
    %41 = arith.mulf %40, %40 : vector<24x128xf32>
    %cst_22 = arith.constant dense<0.000000e+00> : vector<24xf32>
    %42 = vector.multi_reduction <add>, %41, %cst_22 [1] : vector<24x128xf32> to vector<24xf32>
    %43 = vector.shape_cast %42 : vector<24xf32> to vector<24x1xf32>
    %cst_23 = arith.constant 9.600000e+01 : f32
    %44 = vector.broadcast %cst_23 : f32 to vector<24x1xf32>
    %45 = arith.mulf %44, %38 : vector<24x1xf32>
    %46 = arith.mulf %45, %38 : vector<24x1xf32>
    %47 = arith.subf %43, %46 : vector<24x1xf32>
    %cst_24 = arith.constant 3.125000e-02 : f32
    %48 = vector.broadcast %cst_24 : f32 to vector<24x1xf32>
    %49 = arith.mulf %47, %48 : vector<24x1xf32>
    %cst_25 = arith.constant 9.99999997E-7 : f32
    %50 = vector.broadcast %cst_25 : f32 to vector<24x1xf32>
    %51 = arith.addf %49, %50 : vector<24x1xf32>
    %52 = math.rsqrt %51 : vector<24x1xf32>
    %53 = vector.broadcast %52 : vector<24x1xf32> to vector<24x128xf32>
    %54 = arith.mulf %40, %53 : vector<24x128xf32>
    %55 = vector.broadcast %13 : vector<1x128xf32> to vector<24x128xf32>
    %56 = arith.mulf %54, %55 : vector<24x128xf32>
    %57 = vector.broadcast %14 : vector<1x128xf32> to vector<24x128xf32>
    %58 = arith.addf %56, %57 : vector<24x128xf32>
    %c1_i32 = arith.constant 1 : i32
    %59 = tpu.dynamic_rotate %58 by %c1_i32 dim 0 : vector<24x128xf32>, i32 -> vector<24x128xf32>
    %cst_26 = arith.constant 0.000000e+00 : f32
    %60 = vector.shape_cast %32 : vector<24x1xi1> to vector<24x1xi1>
    %61 = vector.broadcast %60 : vector<24x1xi1> to vector<24x128xi1>
    %62 = vector.broadcast %cst_26 : f32 to vector<24x128xf32>
    %63 = arith.select %61, %62, %59 : vector<24x128xi1>, vector<24x128xf32>
    %c23_i32_27 = arith.constant 23 : i32
    %64 = tpu.dynamic_rotate %58 by %c23_i32_27 dim 0 : vector<24x128xf32>, i32 -> vector<24x128xf32>
    %cst_28 = arith.constant 0.000000e+00 : f32
    %65 = vector.shape_cast %34 : vector<24x1xi1> to vector<24x1xi1>
    %66 = vector.broadcast %65 : vector<24x1xi1> to vector<24x128xi1>
    %67 = vector.broadcast %cst_28 : f32 to vector<24x128xf32>
    %68 = arith.select %66, %67, %64 : vector<24x128xi1>, vector<24x128xf32>
    %69 = arith.truncf %63 : vector<24x128xf32> to vector<24x128xbf16>
    %c0_29 = arith.constant 0 : index
    %c0_30 = arith.constant 0 : index
    %70 = vector.load %arg10[%c0_29, %c0_30] : memref<384x128xbf16, #tpu.memory_space<vmem>>, vector<128x128xbf16>
    %cst_31 = arith.constant dense<0.000000e+00> : vector<24x128xf32>
    %71 = tpu.matmul %69, %70, %cst_31 {dimension_numbers = #tpu.dot_dimension_numbers<[1], [0], [0], [1], [0, 0, 1, 1], [], []>} : vector<24x128xbf16>, vector<128x128xbf16>, vector<24x128xf32> -> vector<24x128xf32>
    %72 = arith.truncf %58 : vector<24x128xf32> to vector<24x128xbf16>
    %c128 = arith.constant 128 : index
    %c0_32 = arith.constant 0 : index
    %73 = vector.load %arg10[%c128, %c0_32] : memref<384x128xbf16, #tpu.memory_space<vmem>>, vector<128x128xbf16>
    %cst_33 = arith.constant dense<0.000000e+00> : vector<24x128xf32>
    %74 = tpu.matmul %72, %73, %cst_33 {dimension_numbers = #tpu.dot_dimension_numbers<[1], [0], [0], [1], [0, 0, 1, 1], [], []>} : vector<24x128xbf16>, vector<128x128xbf16>, vector<24x128xf32> -> vector<24x128xf32>
    %75 = arith.addf %71, %74 : vector<24x128xf32>
    %76 = arith.truncf %68 : vector<24x128xf32> to vector<24x128xbf16>
    %c256 = arith.constant 256 : index
    %c0_34 = arith.constant 0 : index
    %77 = vector.load %arg10[%c256, %c0_34] : memref<384x128xbf16, #tpu.memory_space<vmem>>, vector<128x128xbf16>
    %cst_35 = arith.constant dense<0.000000e+00> : vector<24x128xf32>
    %78 = tpu.matmul %76, %77, %cst_35 {dimension_numbers = #tpu.dot_dimension_numbers<[1], [0], [0], [1], [0, 0, 1, 1], [], []>} : vector<24x128xbf16>, vector<128x128xbf16>, vector<24x128xf32> -> vector<24x128xf32>
    %79 = arith.addf %75, %78 : vector<24x128xf32>
    %c0_36 = arith.constant 0 : index
    %c0_37 = arith.constant 0 : index
    %80 = vector.load %arg11[%c0_36, %c0_37] : memref<1x128xf32, #tpu.memory_space<vmem>>, vector<1x128xf32>
    %81 = vector.broadcast %80 : vector<1x128xf32> to vector<24x128xf32>
    %82 = arith.addf %79, %81 : vector<24x128xf32>
    %cst_38 = arith.constant 0.000000e+00 : f32
    %83 = vector.broadcast %cst_38 : f32 to vector<24x128xf32>
    %84 = arith.maximumf %82, %83 : vector<24x128xf32>
    %85 = vector.extract_strided_slice %32 {offsets = [8, 0], sizes = [8, 1], strides = [1, 1]} : vector<24x1xi1> to vector<8x1xi1>
    %86 = vector.extract_strided_slice %34 {offsets = [8, 0], sizes = [8, 1], strides = [1, 1]} : vector<24x1xi1> to vector<8x1xi1>
    %87 = vector.extract_strided_slice %84 {offsets = [7, 0], sizes = [8, 128], strides = [1, 1]} : vector<24x128xf32> to vector<8x128xf32>
    %cst_39 = arith.constant 0.000000e+00 : f32
    %88 = vector.shape_cast %85 : vector<8x1xi1> to vector<8x1xi1>
    %89 = vector.broadcast %88 : vector<8x1xi1> to vector<8x128xi1>
    %90 = vector.broadcast %cst_39 : f32 to vector<8x128xf32>
    %91 = arith.select %89, %90, %87 : vector<8x128xi1>, vector<8x128xf32>
    %92 = vector.extract_strided_slice %84 {offsets = [9, 0], sizes = [8, 128], strides = [1, 1]} : vector<24x128xf32> to vector<8x128xf32>
    %cst_40 = arith.constant 0.000000e+00 : f32
    %93 = vector.shape_cast %86 : vector<8x1xi1> to vector<8x1xi1>
    %94 = vector.broadcast %93 : vector<8x1xi1> to vector<8x128xi1>
    %95 = vector.broadcast %cst_40 : f32 to vector<8x128xf32>
    %96 = arith.select %94, %95, %92 : vector<8x128xi1>, vector<8x128xf32>
    %97 = arith.truncf %91 : vector<8x128xf32> to vector<8x128xbf16>
    %c0_41 = arith.constant 0 : index
    %c0_42 = arith.constant 0 : index
    %98 = vector.load %arg12[%c0_41, %c0_42] : memref<384x128xbf16, #tpu.memory_space<vmem>>, vector<128x128xbf16>
    %cst_43 = arith.constant dense<0.000000e+00> : vector<8x128xf32>
    %99 = tpu.matmul %97, %98, %cst_43 {dimension_numbers = #tpu.dot_dimension_numbers<[1], [0], [0], [1], [0, 0, 1, 1], [], []>} : vector<8x128xbf16>, vector<128x128xbf16>, vector<8x128xf32> -> vector<8x128xf32>
    %100 = vector.extract_strided_slice %84 {offsets = [8, 0], sizes = [8, 128], strides = [1, 1]} : vector<24x128xf32> to vector<8x128xf32>
    %101 = arith.truncf %100 : vector<8x128xf32> to vector<8x128xbf16>
    %c128_44 = arith.constant 128 : index
    %c0_45 = arith.constant 0 : index
    %102 = vector.load %arg12[%c128_44, %c0_45] : memref<384x128xbf16, #tpu.memory_space<vmem>>, vector<128x128xbf16>
    %cst_46 = arith.constant dense<0.000000e+00> : vector<8x128xf32>
    %103 = tpu.matmul %101, %102, %cst_46 {dimension_numbers = #tpu.dot_dimension_numbers<[1], [0], [0], [1], [0, 0, 1, 1], [], []>} : vector<8x128xbf16>, vector<128x128xbf16>, vector<8x128xf32> -> vector<8x128xf32>
    %104 = arith.addf %99, %103 : vector<8x128xf32>
    %105 = arith.truncf %96 : vector<8x128xf32> to vector<8x128xbf16>
    %c256_47 = arith.constant 256 : index
    %c0_48 = arith.constant 0 : index
    %106 = vector.load %arg12[%c256_47, %c0_48] : memref<384x128xbf16, #tpu.memory_space<vmem>>, vector<128x128xbf16>
    %cst_49 = arith.constant dense<0.000000e+00> : vector<8x128xf32>
    %107 = tpu.matmul %105, %106, %cst_49 {dimension_numbers = #tpu.dot_dimension_numbers<[1], [0], [0], [1], [0, 0, 1, 1], [], []>} : vector<8x128xbf16>, vector<128x128xbf16>, vector<8x128xf32> -> vector<8x128xf32>
    %108 = arith.addf %104, %107 : vector<8x128xf32>
    %109 = vector.extract_strided_slice %25 {offsets = [8, 0], sizes = [8, 128], strides = [1, 1]} : vector<24x128xf32> to vector<8x128xf32>
    %110 = arith.addf %109, %108 : vector<8x128xf32>
    %111 = vector.broadcast %15 : vector<1x128xf32> to vector<8x128xf32>
    %112 = arith.addf %110, %111 : vector<8x128xf32>
    %cst_50 = arith.constant dense<0.000000e+00> : vector<8xf32>
    %113 = vector.multi_reduction <add>, %112, %cst_50 [1] : vector<8x128xf32> to vector<8xf32>
    %114 = vector.shape_cast %113 : vector<8xf32> to vector<8x1xf32>
    %cst_51 = arith.constant 3.125000e-02 : f32
    %115 = vector.broadcast %cst_51 : f32 to vector<8x1xf32>
    %116 = arith.mulf %114, %115 : vector<8x1xf32>
    %117 = vector.broadcast %116 : vector<8x1xf32> to vector<8x128xf32>
    %118 = arith.subf %112, %117 : vector<8x128xf32>
    %119 = arith.mulf %118, %118 : vector<8x128xf32>
    %cst_52 = arith.constant dense<0.000000e+00> : vector<8xf32>
    %120 = vector.multi_reduction <add>, %119, %cst_52 [1] : vector<8x128xf32> to vector<8xf32>
    %121 = vector.shape_cast %120 : vector<8xf32> to vector<8x1xf32>
    %cst_53 = arith.constant 9.600000e+01 : f32
    %122 = vector.broadcast %cst_53 : f32 to vector<8x1xf32>
    %123 = arith.mulf %122, %116 : vector<8x1xf32>
    %124 = arith.mulf %123, %116 : vector<8x1xf32>
    %125 = arith.subf %121, %124 : vector<8x1xf32>
    %cst_54 = arith.constant 3.125000e-02 : f32
    %126 = vector.broadcast %cst_54 : f32 to vector<8x1xf32>
    %127 = arith.mulf %125, %126 : vector<8x1xf32>
    %cst_55 = arith.constant 9.99999997E-7 : f32
    %128 = vector.broadcast %cst_55 : f32 to vector<8x1xf32>
    %129 = arith.addf %127, %128 : vector<8x1xf32>
    %130 = math.rsqrt %129 : vector<8x1xf32>
    %131 = vector.broadcast %130 : vector<8x1xf32> to vector<8x128xf32>
    %132 = arith.mulf %118, %131 : vector<8x128xf32>
    %133 = vector.broadcast %16 : vector<1x128xf32> to vector<8x128xf32>
    %134 = arith.mulf %132, %133 : vector<8x128xf32>
    %135 = vector.broadcast %17 : vector<1x128xf32> to vector<8x128xf32>
    %136 = arith.addf %134, %135 : vector<8x128xf32>
    %c0_56 = arith.constant 0 : index
    %c0_57 = arith.constant 0 : index
    %c0_58 = arith.constant 0 : index
    %137 = vector.load %arg15[%c0_56, %c0_57, %c0_58] : memref<1x8x128xf32, #tpu.memory_space<vmem>>, vector<1x8x128xf32>
    %138 = vector.shape_cast %137 : vector<1x8x128xf32> to vector<8x128xf32>
    %139 = vector.shape_cast %136 : vector<8x128xf32> to vector<1x8x128xf32>
    tpu.vector_store %arg15[%c0_56, %c0_57, %c0_58], %139 {strides = array<i32>} : memref<1x8x128xf32, #tpu.memory_space<vmem>>, vector<1x8x128xf32>,
    %140 = arith.mulf %136, %136 : vector<8x128xf32>
    %cst_59 = arith.constant dense<0.000000e+00> : vector<8xf32>
    %141 = vector.multi_reduction <add>, %140, %cst_59 [1] : vector<8x128xf32> to vector<8xf32>
    %142 = vector.shape_cast %141 : vector<8xf32> to vector<8x1xf32>
    %cst_60 = arith.constant 1.000000e-24 : f32
    %143 = vector.broadcast %cst_60 : f32 to vector<8x1xf32>
    %144 = arith.maximumf %142, %143 : vector<8x1xf32>
    %145 = math.rsqrt %144 : vector<8x1xf32>
    %146 = vector.broadcast %145 : vector<8x1xf32> to vector<8x128xf32>
    %147 = arith.mulf %136, %146 : vector<8x128xf32>
    %c0_61 = arith.constant 0 : index
    %c0_62 = arith.constant 0 : index
    %c0_63 = arith.constant 0 : index
    %148 = vector.load %arg16[%c0_61, %c0_62, %c0_63] : memref<1x8x128xf32, #tpu.memory_space<vmem>>, vector<1x8x128xf32>
    %149 = vector.shape_cast %148 : vector<1x8x128xf32> to vector<8x128xf32>
    %150 = vector.shape_cast %147 : vector<8x128xf32> to vector<1x8x128xf32>
    tpu.vector_store %arg16[%c0_61, %c0_62, %c0_63], %150 {strides = array<i32>} : memref<1x8x128xf32, #tpu.memory_space<vmem>>, vector<1x8x128xf32>,
    %151 = arith.truncf %136 : vector<8x128xf32> to vector<8x128xbf16>
    %c0_64 = arith.constant 0 : index
    %c0_65 = arith.constant 0 : index
    %152 = vector.load %arg13[%c0_64, %c0_65] : memref<128x128xbf16, #tpu.memory_space<vmem>>, vector<128x128xbf16>
    %cst_66 = arith.constant dense<0.000000e+00> : vector<8x128xf32>
    %153 = tpu.matmul %151, %152, %cst_66 {dimension_numbers = #tpu.dot_dimension_numbers<[1], [0], [0], [1], [0, 0, 1, 1], [], []>} : vector<8x128xbf16>, vector<128x128xbf16>, vector<8x128xf32> -> vector<8x128xf32>
    %c0_67 = arith.constant 0 : index
    %c0_68 = arith.constant 0 : index
    %154 = vector.load %arg14[%c0_67, %c0_68] : memref<1x128xf32, #tpu.memory_space<vmem>>, vector<1x128xf32>
    %155 = vector.broadcast %154 : vector<1x128xf32> to vector<8x128xf32>
    %156 = arith.addf %153, %155 : vector<8x128xf32>
    %c0_69 = arith.constant 0 : index
    %c0_70 = arith.constant 0 : index
    %c0_71 = arith.constant 0 : index
    %157 = vector.load %arg17[%c0_69, %c0_70, %c0_71] : memref<1x8x128xf32, #tpu.memory_space<vmem>>, vector<1x8x128xf32>
    %158 = vector.shape_cast %157 : vector<1x8x128xf32> to vector<8x128xf32>
    %159 = vector.shape_cast %156 : vector<8x128xf32> to vector<1x8x128xf32>
    tpu.vector_store %arg17[%c0_69, %c0_70, %c0_71], %159 {strides = array<i32>} : memref<1x8x128xf32, #tpu.memory_space<vmem>>, vector<1x8x128xf32>,
    %cst_72 = arith.constant dense<0xFF800000> : vector<8xf32>
    %160 = vector.multi_reduction <maximumf>, %156, %cst_72 [1] : vector<8x128xf32> to vector<8xf32>
    %161 = vector.shape_cast %160 : vector<8xf32> to vector<8x1xf32>
    %162 = vector.broadcast %161 : vector<8x1xf32> to vector<8x128xf32>
    %163 = arith.subf %156, %162 : vector<8x128xf32>
    %164 = math.exp %163 : vector<8x128xf32>
    %cst_73 = arith.constant dense<0.000000e+00> : vector<8xf32>
    %165 = vector.multi_reduction <add>, %164, %cst_73 [1] : vector<8x128xf32> to vector<8xf32>
    %166 = vector.shape_cast %165 : vector<8xf32> to vector<8x1xf32>
    %167 = vector.broadcast %161 : vector<8x1xf32> to vector<8x128xf32>
    %168 = arith.subf %156, %167 : vector<8x128xf32>
    %169 = math.log %166 : vector<8x1xf32>
    %170 = vector.broadcast %169 : vector<8x1xf32> to vector<8x128xf32>
    %171 = arith.subf %168, %170 : vector<8x128xf32>
    %c0_74 = arith.constant 0 : index
    %c0_75 = arith.constant 0 : index
    %c0_76 = arith.constant 0 : index
    %172 = vector.load %arg18[%c0_74, %c0_75, %c0_76] : memref<1x8x128xf32, #tpu.memory_space<vmem>>, vector<1x8x128xf32>
    %173 = vector.shape_cast %172 : vector<1x8x128xf32> to vector<8x128xf32>
    %174 = vector.shape_cast %171 : vector<8x128xf32> to vector<1x8x128xf32>
    tpu.vector_store %arg18[%c0_74, %c0_75, %c0_76], %174 {strides = array<i32>} : memref<1x8x128xf32, #tpu.memory_space<vmem>>, vector<1x8x128xf32>,
    %cst_77 = arith.constant 1.000000e+00 : f32
    %175 = vector.broadcast %cst_77 : f32 to vector<8x1xf32>
    %176 = arith.divf %175, %166 : vector<8x1xf32>
    %177 = vector.broadcast %176 : vector<8x1xf32> to vector<8x128xf32>
    %178 = arith.mulf %164, %177 : vector<8x128xf32>
    %c0_78 = arith.constant 0 : index
    %c0_79 = arith.constant 0 : index
    %c0_80 = arith.constant 0 : index
    %179 = vector.load %arg19[%c0_78, %c0_79, %c0_80] : memref<1x8x128xf32, #tpu.memory_space<vmem>>, vector<1x8x128xf32>
    %180 = vector.shape_cast %179 : vector<1x8x128xf32> to vector<8x128xf32>
    %181 = vector.shape_cast %178 : vector<8x128xf32> to vector<1x8x128xf32>
    tpu.vector_store %arg19[%c0_78, %c0_79, %c0_80], %181 {strides = array<i32>} : memref<1x8x128xf32, #tpu.memory_space<vmem>>, vector<1x8x128xf32>,
    return
  }
  func.func @transform_0(%arg0: i32, %arg1: i32) -> (i32, i32, i32) {
    %c1_i32 = arith.constant 1 : i32
    %0 = arith.muli %arg1, %c1_i32 : i32
    %c1_i32_0 = arith.constant 1 : i32
    %1 = arith.subi %0, %c1_i32_0 : i32
    %c0_i32 = arith.constant 0 : i32
    %2 = arith.maxsi %1, %c0_i32 : i32
    %c0_i32_1 = arith.constant 0 : i32
    %c0_i32_2 = arith.constant 0 : i32
    return %arg0, %2, %c0_i32_1 : i32, i32, i32
  }
  func.func @transform_1(%arg0: i32, %arg1: i32) -> (i32, i32, i32) {
    %c0_i32 = arith.constant 0 : i32
    %c0_i32_0 = arith.constant 0 : i32
    return %arg0, %arg1, %c0_i32 : i32, i32, i32
  }
  func.func @transform_2(%arg0: i32, %arg1: i32) -> (i32, i32, i32) {
    %c1_i32 = arith.constant 1 : i32
    %0 = arith.addi %arg1, %c1_i32 : i32
    %c1_i32_0 = arith.constant 1 : i32
    %1 = arith.muli %0, %c1_i32_0 : i32
    %c2_i32 = arith.constant 2 : i32
    %2 = arith.minsi %1, %c2_i32 : i32
    %c0_i32 = arith.constant 0 : i32
    %c0_i32_1 = arith.constant 0 : i32
    return %arg0, %2, %c0_i32 : i32, i32, i32
  }
  func.func @transform_3(%arg0: i32, %arg1: i32) -> (i32, i32) {
    %c1_i32 = arith.constant 1 : i32
    %0 = arith.muli %arg1, %c1_i32 : i32
    %c1_i32_0 = arith.constant 1 : i32
    %1 = arith.subi %0, %c1_i32_0 : i32
    %c0_i32 = arith.constant 0 : i32
    %2 = arith.maxsi %1, %c0_i32 : i32
    %c0_i32_1 = arith.constant 0 : i32
    %c0_i32_2 = arith.constant 0 : i32
    return %2, %c0_i32_1 : i32, i32
  }
  func.func @transform_4(%arg0: i32, %arg1: i32) -> (i32, i32) {
    %c0_i32 = arith.constant 0 : i32
    %c0_i32_0 = arith.constant 0 : i32
    return %arg1, %c0_i32 : i32, i32
  }
  func.func @transform_5(%arg0: i32, %arg1: i32) -> (i32, i32) {
    %c1_i32 = arith.constant 1 : i32
    %0 = arith.addi %arg1, %c1_i32 : i32
    %c1_i32_0 = arith.constant 1 : i32
    %1 = arith.muli %0, %c1_i32_0 : i32
    %c2_i32 = arith.constant 2 : i32
    %2 = arith.minsi %1, %c2_i32 : i32
    %c0_i32 = arith.constant 0 : i32
    %c0_i32_1 = arith.constant 0 : i32
    return %2, %c0_i32 : i32, i32
  }
  func.func @transform_6(%arg0: i32, %arg1: i32) -> (i32, i32) {
    %c0_i32 = arith.constant 0 : i32
    %c0_i32_0 = arith.constant 0 : i32
    %c0_i32_1 = arith.constant 0 : i32
    return %c0_i32, %c0_i32_0 : i32, i32
  }
  func.func @transform_7(%arg0: i32, %arg1: i32) -> (i32, i32) {
    %c0_i32 = arith.constant 0 : i32
    %c0_i32_0 = arith.constant 0 : i32
    %c0_i32_1 = arith.constant 0 : i32
    return %c0_i32, %c0_i32_0 : i32, i32
  }
  func.func @transform_8(%arg0: i32, %arg1: i32) -> (i32, i32) {
    %c0_i32 = arith.constant 0 : i32
    %c0_i32_0 = arith.constant 0 : i32
    %c0_i32_1 = arith.constant 0 : i32
    return %c0_i32, %c0_i32_0 : i32, i32
  }
  func.func @transform_9(%arg0: i32, %arg1: i32) -> (i32, i32) {
    %c0_i32 = arith.constant 0 : i32
    %c0_i32_0 = arith.constant 0 : i32
    %c0_i32_1 = arith.constant 0 : i32
    return %c0_i32, %c0_i32_0 : i32, i32
  }
  func.func @transform_10(%arg0: i32, %arg1: i32) -> (i32, i32) {
    %c0_i32 = arith.constant 0 : i32
    %c0_i32_0 = arith.constant 0 : i32
    %c0_i32_1 = arith.constant 0 : i32
    return %c0_i32, %c0_i32_0 : i32, i32
  }
  func.func @transform_11(%arg0: i32, %arg1: i32) -> (i32, i32) {
    %c0_i32 = arith.constant 0 : i32
    %c0_i32_0 = arith.constant 0 : i32
    %c0_i32_1 = arith.constant 0 : i32
    return %c0_i32, %c0_i32_0 : i32, i32
  }
  func.func @transform_12(%arg0: i32, %arg1: i32) -> (i32, i32) {
    %c0_i32 = arith.constant 0 : i32
    %c0_i32_0 = arith.constant 0 : i32
    %c0_i32_1 = arith.constant 0 : i32
    return %c0_i32, %c0_i32_0 : i32, i32
  }
  func.func @transform_13(%arg0: i32, %arg1: i32) -> (i32, i32, i32) {
    %c0_i32 = arith.constant 0 : i32
    %c0_i32_0 = arith.constant 0 : i32
    return %arg0, %arg1, %c0_i32 : i32, i32, i32
  }
  func.func @transform_14(%arg0: i32, %arg1: i32) -> (i32, i32, i32) {
    %c0_i32 = arith.constant 0 : i32
    %c0_i32_0 = arith.constant 0 : i32
    return %arg0, %arg1, %c0_i32 : i32, i32, i32
  }
  func.func @transform_15(%arg0: i32, %arg1: i32) -> (i32, i32, i32) {
    %c0_i32 = arith.constant 0 : i32
    %c0_i32_0 = arith.constant 0 : i32
    return %arg0, %arg1, %c0_i32 : i32, i32, i32
  }
  func.func @transform_16(%arg0: i32, %arg1: i32) -> (i32, i32, i32) {
    %c0_i32 = arith.constant 0 : i32
    %c0_i32_0 = arith.constant 0 : i32
    return %arg0, %arg1, %c0_i32 : i32, i32, i32
  }
  func.func @transform_17(%arg0: i32, %arg1: i32) -> (i32, i32, i32) {
    %c0_i32 = arith.constant 0 : i32
    %c0_i32_0 = arith.constant 0 : i32
    return %arg0, %arg1, %c0_i32 : i32, i32, i32
  }
}

module attributes {stable_mosaic.version = 11 : i64} {
  func.func @kernel(%arg0: i32, %arg1: i32, %arg2: memref<1x8x32xf32, #tpu.memory_space<vmem>>, %arg3: memref<1x8x32xf32, #tpu.memory_space<vmem>>, %arg4: memref<1x8x32xf32, #tpu.memory_space<vmem>>, %arg5: memref<8x128xf32, #tpu.memory_space<vmem>>, %arg6: memref<8x128xf32, #tpu.memory_space<vmem>>, %arg7: memref<8x128xf32, #tpu.memory_space<vmem>>, %arg8: memref<32x128xbf16, #tpu.memory_space<vmem>>, %arg9: memref<8x128xf32, #tpu.memory_space<vmem>>, %arg10: memref<384x128xbf16, #tpu.memory_space<vmem>>, %arg11: memref<1x128xf32, #tpu.memory_space<vmem>>, %arg12: memref<384x128xbf16, #tpu.memory_space<vmem>>, %arg13: memref<128x128xbf16, #tpu.memory_space<vmem>>, %arg14: memref<1x128xf32, #tpu.memory_space<vmem>>, %arg15: memref<1x8x128xf32, #tpu.memory_space<vmem>>, %arg16: memref<1x8x128xf32, #tpu.memory_space<vmem>>, %arg17: memref<1x8x128xf32, #tpu.memory_space<vmem>>, %arg18: memref<1x8x128xf32, #tpu.memory_space<vmem>>, %arg19: memref<1x8x128xf32, #tpu.memory_space<vmem>>) attributes {dimension_semantics = [#tpu.dimension_semantics<parallel>, #tpu.dimension_semantics<parallel>], iteration_bounds = array<i64: 2, 3>, scalar_prefetch = 0 : i64, scratch_operands = 0 : i64, tpu.core_type = #tpu.core_type<tc>, window_params = [{transform_indices = @transform_0, window_bounds = array<i64: 1, 8, 32>}, {transform_indices = @transform_1, window_bounds = array<i64: 1, 8, 32>}, {transform_indices = @transform_2, window_bounds = array<i64: 1, 8, 32>}, {transform_indices = @transform_3, window_bounds = array<i64: 8, 128>}, {transform_indices = @transform_4, window_bounds = array<i64: 8, 128>}, {transform_indices = @transform_5, window_bounds = array<i64: 8, 128>}, {pipeline_mode = #tpu.pipeline_mode<synchronous>, transform_indices = @transform_6, window_bounds = array<i64: 32, 128>}, {pipeline_mode = #tpu.pipeline_mode<synchronous>, transform_indices = @transform_7, window_bounds = array<i64: 8, 128>}, {pipeline_mode = #tpu.pipeline_mode<synchronous>, transform_indices = @transform_8, window_bounds = array<i64: 384, 128>}, {pipeline_mode = #tpu.pipeline_mode<synchronous>, transform_indices = @transform_9, window_bounds = array<i64: 1, 128>}, {pipeline_mode = #tpu.pipeline_mode<synchronous>, transform_indices = @transform_10, window_bounds = array<i64: 384, 128>}, {pipeline_mode = #tpu.pipeline_mode<synchronous>, transform_indices = @transform_11, window_bounds = array<i64: 128, 128>}, {pipeline_mode = #tpu.pipeline_mode<synchronous>, transform_indices = @transform_12, window_bounds = array<i64: 1, 128>}, {transform_indices = @transform_13, window_bounds = array<i64: 1, 8, 128>}, {transform_indices = @transform_14, window_bounds = array<i64: 1, 8, 128>}, {transform_indices = @transform_15, window_bounds = array<i64: 1, 8, 128>}, {transform_indices = @transform_16, window_bounds = array<i64: 1, 8, 128>}, {transform_indices = @transform_17, window_bounds = array<i64: 1, 8, 128>}]} {
    %c0 = arith.constant 0 : index
    %c0_0 = arith.constant 0 : index
    %c0_1 = arith.constant 0 : index
    %0 = vector.load %arg2[%c0, %c0_0, %c0_1] : memref<1x8x32xf32, #tpu.memory_space<vmem>>, vector<1x8x32xf32>
    %1 = vector.shape_cast %0 : vector<1x8x32xf32> to vector<8x32xf32>
    %c0_2 = arith.constant 0 : index
    %c0_3 = arith.constant 0 : index
    %c0_4 = arith.constant 0 : index
    %2 = vector.load %arg3[%c0_2, %c0_3, %c0_4] : memref<1x8x32xf32, #tpu.memory_space<vmem>>, vector<1x8x32xf32>
    %3 = vector.shape_cast %2 : vector<1x8x32xf32> to vector<8x32xf32>
    %c0_5 = arith.constant 0 : index
    %c0_6 = arith.constant 0 : index
    %c0_7 = arith.constant 0 : index
    %4 = vector.load %arg4[%c0_5, %c0_6, %c0_7] : memref<1x8x32xf32, #tpu.memory_space<vmem>>, vector<1x8x32xf32>
    %5 = vector.shape_cast %4 : vector<1x8x32xf32> to vector<8x32xf32>
    %6 = tpu.concatenate %1, %3, %5 in 0 : vector<8x32xf32>, vector<8x32xf32>, vector<8x32xf32> -> vector<24x32xf32>
    %c0_8 = arith.constant 0 : index
    %c0_9 = arith.constant 0 : index
    %7 = vector.load %arg5[%c0_8, %c0_9] : memref<8x128xf32, #tpu.memory_space<vmem>>, vector<8x128xf32>
    %c0_10 = arith.constant 0 : index
    %c0_11 = arith.constant 0 : index
    %8 = vector.load %arg6[%c0_10, %c0_11] : memref<8x128xf32, #tpu.memory_space<vmem>>, vector<8x128xf32>
    %c0_12 = arith.constant 0 : index
    %c0_13 = arith.constant 0 : index
    %9 = vector.load %arg7[%c0_12, %c0_13] : memref<8x128xf32, #tpu.memory_space<vmem>>, vector<8x128xf32>
    %10 = tpu.concatenate %7, %8, %9 in 0 : vector<8x128xf32>, vector<8x128xf32>, vector<8x128xf32> -> vector<24x128xf32>
    %c0_14 = arith.constant 0 : index
    %c0_15 = arith.constant 0 : index
    %11 = vector.load %arg9[%c0_14, %c0_15] : memref<8x128xf32, #tpu.memory_space<vmem>>, vector<8x128xf32>
    %12 = vector.extract_strided_slice %11 {offsets = [0, 0], sizes = [1, 128], strides = [1, 1]} : vector<8x128xf32> to vector<1x128xf32>
    %13 = vector.extract_strided_slice %11 {offsets = [1, 0], sizes = [1, 128], strides = [1, 1]} : vector<8x128xf32> to vector<1x128xf32>
    %14 = vector.extract_strided_slice %11 {offsets = [2, 0], sizes = [1, 128], strides = [1, 1]} : vector<8x128xf32> to vector<1x128xf32>
    %15 = vector.extract_strided_slice %11 {offsets = [3, 0], sizes = [1, 128], strides = [1, 1]} : vector<8x128xf32> to vector<1x128xf32>
    %16 = vector.extract_strided_slice %11 {offsets = [4, 0], sizes = [1, 128], strides = [1, 1]} : vector<8x128xf32> to vector<1x128xf32>
    %17 = vector.extract_strided_slice %11 {offsets = [5, 0], sizes = [1, 128], strides = [1, 1]} : vector<8x128xf32> to vector<1x128xf32>
    %18 = arith.truncf %6 : vector<24x32xf32> to vector<24x32xbf16>
    %c0_16 = arith.constant 0 : index
    %c0_17 = arith.constant 0 : index
    %19 = vector.load %arg8[%c0_16, %c0_17] : memref<32x128xbf16, #tpu.memory_space<vmem>>, vector<32x128xbf16>
    %cst = arith.constant dense<0.000000e+00> : vector<24x128xf32>
    %20 = tpu.matmul %18, %19, %cst {dimension_numbers = #tpu.dot_dimension_numbers<[1], [0], [0], [1], [0, 0, 1, 1], [], []>} : vector<24x32xbf16>, vector<32x128xbf16>, vector<24x128xf32> -> vector<24x128xf32>
    %21 = vector.broadcast %12 : vector<1x128xf32> to vector<24x128xf32>
    %22 = arith.addf %20, %21 : vector<24x128xf32>
    %cst_18 = arith.constant 0.000000e+00 : f32
    %23 = vector.broadcast %cst_18 : f32 to vector<24x128xf32>
    %24 = arith.maximumf %22, %23 : vector<24x128xf32>
    %25 = arith.addf %24, %10 : vector<24x128xf32>
    %26 = tpu.iota {dimensions = array<i32: 0>} : vector<24x1xi32>
    %c8_i32 = arith.constant 8 : i32
    %27 = arith.muli %arg1, %c8_i32 : i32
    %c8_i32_19 = arith.constant 8 : i32
    %28 = arith.subi %27, %c8_i32_19 : i32
    %29 = vector.broadcast %28 : i32 to vector<24x1xi32>
    %30 = arith.addi %26, %29 : vector<24x1xi32>
    %c0_i32 = arith.constant 0 : i32
    %31 = vector.broadcast %c0_i32 : i32 to vector<24x1xi32>
    %32 = arith.cmpi eq, %30, %31 : vector<24x1xi32>
    %c23_i32 = arith.constant 23 : i32
    %33 = vector.broadcast %c23_i32 : i32 to vector<24x1xi32>
    %34 = arith.cmpi eq, %30, %33 : vector<24x1xi32>
    %cst_20 = arith.constant dense<0.000000e+00> : vector<24xf32>
    %35 = vector.multi_reduction <add>, %25, %cst_20 [1] : vector<24x128xf32> to vector<24xf32>
    %36 = vector.shape_cast %35 : vector<24xf32> to vector<24x1xf32>
    %cst_21 = arith.constant 3.125000e-02 : f32
    %37 = vector.broadcast %cst_21 : f32 to vector<24x1xf32>
    %38 = arith.mulf %36, %37 : vector<24x1xf32>
    %39 = vector.broadcast %38 : vector<24x1xf32> to vector<24x128xf32>
    %40 = arith.subf %25, %39 : vector<24x128xf32>
    %41 = arith.mulf %40, %40 : vector<24x128xf32>
    %cst_22 = arith.constant dense<0.000000e+00> : vector<24xf32>
    %42 = vector.multi_reduction <add>, %41, %cst_22 [1] : vector<24x128xf32> to vector<24xf32>
    %43 = vector.shape_cast %42 : vector<24xf32> to vector<24x1xf32>
    %cst_23 = arith.constant 9.600000e+01 : f32
    %44 = vector.broadcast %cst_23 : f32 to vector<24x1xf32>
    %45 = arith.mulf %44, %38 : vector<24x1xf32>
    %46 = arith.mulf %45, %38 : vector<24x1xf32>
    %47 = arith.subf %43, %46 : vector<24x1xf32>
    %cst_24 = arith.constant 3.125000e-02 : f32
    %48 = vector.broadcast %cst_24 : f32 to vector<24x1xf32>
    %49 = arith.mulf %47, %48 : vector<24x1xf32>
    %cst_25 = arith.constant 9.99999997E-7 : f32
    %50 = vector.broadcast %cst_25 : f32 to vector<24x1xf32>
    %51 = arith.addf %49, %50 : vector<24x1xf32>
    %52 = math.rsqrt %51 : vector<24x1xf32>
    %53 = vector.broadcast %52 : vector<24x1xf32> to vector<24x128xf32>
    %54 = arith.mulf %40, %53 : vector<24x128xf32>
    %55 = vector.broadcast %13 : vector<1x128xf32> to vector<24x128xf32>
    %56 = arith.mulf %54, %55 : vector<24x128xf32>
    %57 = vector.broadcast %14 : vector<1x128xf32> to vector<24x128xf32>
    %58 = arith.addf %56, %57 : vector<24x128xf32>
    %c1_i32 = arith.constant 1 : i32
    %59 = tpu.dynamic_rotate %58 by %c1_i32 dim 0 : vector<24x128xf32>, i32 -> vector<24x128xf32>
    %cst_26 = arith.constant 0.000000e+00 : f32
    %60 = vector.shape_cast %32 : vector<24x1xi1> to vector<24x1xi1>
    %61 = vector.broadcast %60 : vector<24x1xi1> to vector<24x128xi1>
    %62 = vector.broadcast %cst_26 : f32 to vector<24x128xf32>
    %63 = arith.select %61, %62, %59 : vector<24x128xi1>, vector<24x128xf32>
    %c23_i32_27 = arith.constant 23 : i32
    %64 = tpu.dynamic_rotate %58 by %c23_i32_27 dim 0 : vector<24x128xf32>, i32 -> vector<24x128xf32>
    %cst_28 = arith.constant 0.000000e+00 : f32
    %65 = vector.shape_cast %34 : vector<24x1xi1> to vector<24x1xi1>
    %66 = vector.broadcast %65 : vector<24x1xi1> to vector<24x128xi1>
    %67 = vector.broadcast %cst_28 : f32 to vector<24x128xf32>
    %68 = arith.select %66, %67, %64 : vector<24x128xi1>, vector<24x128xf32>
    %69 = arith.truncf %63 : vector<24x128xf32> to vector<24x128xbf16>
    %c0_29 = arith.constant 0 : index
    %c0_30 = arith.constant 0 : index
    %70 = vector.load %arg10[%c0_29, %c0_30] : memref<384x128xbf16, #tpu.memory_space<vmem>>, vector<128x128xbf16>
    %cst_31 = arith.constant dense<0.000000e+00> : vector<24x128xf32>
    %71 = tpu.matmul %69, %70, %cst_31 {dimension_numbers = #tpu.dot_dimension_numbers<[1], [0], [0], [1], [0, 0, 1, 1], [], []>} : vector<24x128xbf16>, vector<128x128xbf16>, vector<24x128xf32> -> vector<24x128xf32>
    %72 = arith.truncf %58 : vector<24x128xf32> to vector<24x128xbf16>
    %c128 = arith.constant 128 : index
    %c0_32 = arith.constant 0 : index
    %73 = vector.load %arg10[%c128, %c0_32] : memref<384x128xbf16, #tpu.memory_space<vmem>>, vector<128x128xbf16>
    %cst_33 = arith.constant dense<0.000000e+00> : vector<24x128xf32>
    %74 = tpu.matmul %72, %73, %cst_33 {dimension_numbers = #tpu.dot_dimension_numbers<[1], [0], [0], [1], [0, 0, 1, 1], [], []>} : vector<24x128xbf16>, vector<128x128xbf16>, vector<24x128xf32> -> vector<24x128xf32>
    %75 = arith.addf %71, %74 : vector<24x128xf32>
    %76 = arith.truncf %68 : vector<24x128xf32> to vector<24x128xbf16>
    %c256 = arith.constant 256 : index
    %c0_34 = arith.constant 0 : index
    %77 = vector.load %arg10[%c256, %c0_34] : memref<384x128xbf16, #tpu.memory_space<vmem>>, vector<128x128xbf16>
    %cst_35 = arith.constant dense<0.000000e+00> : vector<24x128xf32>
    %78 = tpu.matmul %76, %77, %cst_35 {dimension_numbers = #tpu.dot_dimension_numbers<[1], [0], [0], [1], [0, 0, 1, 1], [], []>} : vector<24x128xbf16>, vector<128x128xbf16>, vector<24x128xf32> -> vector<24x128xf32>
    %79 = arith.addf %75, %78 : vector<24x128xf32>
    %c0_36 = arith.constant 0 : index
    %c0_37 = arith.constant 0 : index
    %80 = vector.load %arg11[%c0_36, %c0_37] : memref<1x128xf32, #tpu.memory_space<vmem>>, vector<1x128xf32>
    %81 = vector.broadcast %80 : vector<1x128xf32> to vector<24x128xf32>
    %82 = arith.addf %79, %81 : vector<24x128xf32>
    %cst_38 = arith.constant 0.000000e+00 : f32
    %83 = vector.broadcast %cst_38 : f32 to vector<24x128xf32>
    %84 = arith.maximumf %82, %83 : vector<24x128xf32>
    %85 = vector.extract_strided_slice %32 {offsets = [8, 0], sizes = [8, 1], strides = [1, 1]} : vector<24x1xi1> to vector<8x1xi1>
    %86 = vector.extract_strided_slice %34 {offsets = [8, 0], sizes = [8, 1], strides = [1, 1]} : vector<24x1xi1> to vector<8x1xi1>
    %87 = vector.extract_strided_slice %84 {offsets = [7, 0], sizes = [8, 128], strides = [1, 1]} : vector<24x128xf32> to vector<8x128xf32>
    %cst_39 = arith.constant 0.000000e+00 : f32
    %88 = vector.shape_cast %85 : vector<8x1xi1> to vector<8x1xi1>
    %89 = vector.broadcast %88 : vector<8x1xi1> to vector<8x128xi1>
    %90 = vector.broadcast %cst_39 : f32 to vector<8x128xf32>
    %91 = arith.select %89, %90, %87 : vector<8x128xi1>, vector<8x128xf32>
    %92 = vector.extract_strided_slice %84 {offsets = [9, 0], sizes = [8, 128], strides = [1, 1]} : vector<24x128xf32> to vector<8x128xf32>
    %cst_40 = arith.constant 0.000000e+00 : f32
    %93 = vector.shape_cast %86 : vector<8x1xi1> to vector<8x1xi1>
    %94 = vector.broadcast %93 : vector<8x1xi1> to vector<8x128xi1>
    %95 = vector.broadcast %cst_40 : f32 to vector<8x128xf32>
    %96 = arith.select %94, %95, %92 : vector<8x128xi1>, vector<8x128xf32>
    %97 = arith.truncf %91 : vector<8x128xf32> to vector<8x128xbf16>
    %c0_41 = arith.constant 0 : index
    %c0_42 = arith.constant 0 : index
    %98 = vector.load %arg12[%c0_41, %c0_42] : memref<384x128xbf16, #tpu.memory_space<vmem>>, vector<128x128xbf16>
    %cst_43 = arith.constant dense<0.000000e+00> : vector<8x128xf32>
    %99 = tpu.matmul %97, %98, %cst_43 {dimension_numbers = #tpu.dot_dimension_numbers<[1], [0], [0], [1], [0, 0, 1, 1], [], []>} : vector<8x128xbf16>, vector<128x128xbf16>, vector<8x128xf32> -> vector<8x128xf32>
    %100 = vector.extract_strided_slice %84 {offsets = [8, 0], sizes = [8, 128], strides = [1, 1]} : vector<24x128xf32> to vector<8x128xf32>
    %101 = arith.truncf %100 : vector<8x128xf32> to vector<8x128xbf16>
    %c128_44 = arith.constant 128 : index
    %c0_45 = arith.constant 0 : index
    %102 = vector.load %arg12[%c128_44, %c0_45] : memref<384x128xbf16, #tpu.memory_space<vmem>>, vector<128x128xbf16>
    %cst_46 = arith.constant dense<0.000000e+00> : vector<8x128xf32>
    %103 = tpu.matmul %101, %102, %cst_46 {dimension_numbers = #tpu.dot_dimension_numbers<[1], [0], [0], [1], [0, 0, 1, 1], [], []>} : vector<8x128xbf16>, vector<128x128xbf16>, vector<8x128xf32> -> vector<8x128xf32>
    %104 = arith.addf %99, %103 : vector<8x128xf32>
    %105 = arith.truncf %96 : vector<8x128xf32> to vector<8x128xbf16>
    %c256_47 = arith.constant 256 : index
    %c0_48 = arith.constant 0 : index
    %106 = vector.load %arg12[%c256_47, %c0_48] : memref<384x128xbf16, #tpu.memory_space<vmem>>, vector<128x128xbf16>
    %cst_49 = arith.constant dense<0.000000e+00> : vector<8x128xf32>
    %107 = tpu.matmul %105, %106, %cst_49 {dimension_numbers = #tpu.dot_dimension_numbers<[1], [0], [0], [1], [0, 0, 1, 1], [], []>} : vector<8x128xbf16>, vector<128x128xbf16>, vector<8x128xf32> -> vector<8x128xf32>
    %108 = arith.addf %104, %107 : vector<8x128xf32>
    %109 = vector.extract_strided_slice %25 {offsets = [8, 0], sizes = [8, 128], strides = [1, 1]} : vector<24x128xf32> to vector<8x128xf32>
    %110 = arith.addf %109, %108 : vector<8x128xf32>
    %111 = vector.broadcast %15 : vector<1x128xf32> to vector<8x128xf32>
    %112 = arith.addf %110, %111 : vector<8x128xf32>
    %cst_50 = arith.constant dense<0.000000e+00> : vector<8xf32>
    %113 = vector.multi_reduction <add>, %112, %cst_50 [1] : vector<8x128xf32> to vector<8xf32>
    %114 = vector.shape_cast %113 : vector<8xf32> to vector<8x1xf32>
    %cst_51 = arith.constant 3.125000e-02 : f32
    %115 = vector.broadcast %cst_51 : f32 to vector<8x1xf32>
    %116 = arith.mulf %114, %115 : vector<8x1xf32>
    %117 = vector.broadcast %116 : vector<8x1xf32> to vector<8x128xf32>
    %118 = arith.subf %112, %117 : vector<8x128xf32>
    %119 = arith.mulf %118, %118 : vector<8x128xf32>
    %cst_52 = arith.constant dense<0.000000e+00> : vector<8xf32>
    %120 = vector.multi_reduction <add>, %119, %cst_52 [1] : vector<8x128xf32> to vector<8xf32>
    %121 = vector.shape_cast %120 : vector<8xf32> to vector<8x1xf32>
    %cst_53 = arith.constant 9.600000e+01 : f32
    %122 = vector.broadcast %cst_53 : f32 to vector<8x1xf32>
    %123 = arith.mulf %122, %116 : vector<8x1xf32>
    %124 = arith.mulf %123, %116 : vector<8x1xf32>
    %125 = arith.subf %121, %124 : vector<8x1xf32>
    %cst_54 = arith.constant 3.125000e-02 : f32
    %126 = vector.broadcast %cst_54 : f32 to vector<8x1xf32>
    %127 = arith.mulf %125, %126 : vector<8x1xf32>
    %cst_55 = arith.constant 9.99999997E-7 : f32
    %128 = vector.broadcast %cst_55 : f32 to vector<8x1xf32>
    %129 = arith.addf %127, %128 : vector<8x1xf32>
    %130 = math.rsqrt %129 : vector<8x1xf32>
    %131 = vector.broadcast %130 : vector<8x1xf32> to vector<8x128xf32>
    %132 = arith.mulf %118, %131 : vector<8x128xf32>
    %133 = vector.broadcast %16 : vector<1x128xf32> to vector<8x128xf32>
    %134 = arith.mulf %132, %133 : vector<8x128xf32>
    %135 = vector.broadcast %17 : vector<1x128xf32> to vector<8x128xf32>
    %136 = arith.addf %134, %135 : vector<8x128xf32>
    %c0_56 = arith.constant 0 : index
    %c0_57 = arith.constant 0 : index
    %c0_58 = arith.constant 0 : index
    %137 = vector.load %arg15[%c0_56, %c0_57, %c0_58] : memref<1x8x128xf32, #tpu.memory_space<vmem>>, vector<1x8x128xf32>
    %138 = vector.shape_cast %137 : vector<1x8x128xf32> to vector<8x128xf32>
    %139 = vector.shape_cast %136 : vector<8x128xf32> to vector<1x8x128xf32>
    tpu.vector_store %arg15[%c0_56, %c0_57, %c0_58], %139 {strides = array<i32>} : memref<1x8x128xf32, #tpu.memory_space<vmem>>, vector<1x8x128xf32>,
    %140 = arith.mulf %136, %136 : vector<8x128xf32>
    %cst_59 = arith.constant dense<0.000000e+00> : vector<8xf32>
    %141 = vector.multi_reduction <add>, %140, %cst_59 [1] : vector<8x128xf32> to vector<8xf32>
    %142 = vector.shape_cast %141 : vector<8xf32> to vector<8x1xf32>
    %cst_60 = arith.constant 1.000000e-24 : f32
    %143 = vector.broadcast %cst_60 : f32 to vector<8x1xf32>
    %144 = arith.maximumf %142, %143 : vector<8x1xf32>
    %145 = math.rsqrt %144 : vector<8x1xf32>
    %146 = vector.broadcast %145 : vector<8x1xf32> to vector<8x128xf32>
    %147 = arith.mulf %136, %146 : vector<8x128xf32>
    %c0_61 = arith.constant 0 : index
    %c0_62 = arith.constant 0 : index
    %c0_63 = arith.constant 0 : index
    %148 = vector.load %arg16[%c0_61, %c0_62, %c0_63] : memref<1x8x128xf32, #tpu.memory_space<vmem>>, vector<1x8x128xf32>
    %149 = vector.shape_cast %148 : vector<1x8x128xf32> to vector<8x128xf32>
    %150 = vector.shape_cast %147 : vector<8x128xf32> to vector<1x8x128xf32>
    tpu.vector_store %arg16[%c0_61, %c0_62, %c0_63], %150 {strides = array<i32>} : memref<1x8x128xf32, #tpu.memory_space<vmem>>, vector<1x8x128xf32>,
    %151 = arith.truncf %136 : vector<8x128xf32> to vector<8x128xbf16>
    %c0_64 = arith.constant 0 : index
    %c0_65 = arith.constant 0 : index
    %152 = vector.load %arg13[%c0_64, %c0_65] : memref<128x128xbf16, #tpu.memory_space<vmem>>, vector<128x128xbf16>
    %cst_66 = arith.constant dense<0.000000e+00> : vector<8x128xf32>
    %153 = tpu.matmul %151, %152, %cst_66 {dimension_numbers = #tpu.dot_dimension_numbers<[1], [0], [0], [1], [0, 0, 1, 1], [], []>} : vector<8x128xbf16>, vector<128x128xbf16>, vector<8x128xf32> -> vector<8x128xf32>
    %c0_67 = arith.constant 0 : index
    %c0_68 = arith.constant 0 : index
    %154 = vector.load %arg14[%c0_67, %c0_68] : memref<1x128xf32, #tpu.memory_space<vmem>>, vector<1x128xf32>
    %155 = vector.broadcast %154 : vector<1x128xf32> to vector<8x128xf32>
    %156 = arith.addf %153, %155 : vector<8x128xf32>
    %c0_69 = arith.constant 0 : index
    %c0_70 = arith.constant 0 : index
    %c0_71 = arith.constant 0 : index
    %157 = vector.load %arg17[%c0_69, %c0_70, %c0_71] : memref<1x8x128xf32, #tpu.memory_space<vmem>>, vector<1x8x128xf32>
    %158 = vector.shape_cast %157 : vector<1x8x128xf32> to vector<8x128xf32>
    %159 = vector.shape_cast %156 : vector<8x128xf32> to vector<1x8x128xf32>
    tpu.vector_store %arg17[%c0_69, %c0_70, %c0_71], %159 {strides = array<i32>} : memref<1x8x128xf32, #tpu.memory_space<vmem>>, vector<1x8x128xf32>,
    %cst_72 = arith.constant dense<0xFF800000> : vector<8xf32>
    %160 = vector.multi_reduction <maximumf>, %156, %cst_72 [1] : vector<8x128xf32> to vector<8xf32>
    %161 = vector.shape_cast %160 : vector<8xf32> to vector<8x1xf32>
    %162 = vector.broadcast %161 : vector<8x1xf32> to vector<8x128xf32>
    %163 = arith.subf %156, %162 : vector<8x128xf32>
    %164 = math.exp %163 : vector<8x128xf32>
    %cst_73 = arith.constant dense<0.000000e+00> : vector<8xf32>
    %165 = vector.multi_reduction <add>, %164, %cst_73 [1] : vector<8x128xf32> to vector<8xf32>
    %166 = vector.shape_cast %165 : vector<8xf32> to vector<8x1xf32>
    %167 = vector.broadcast %161 : vector<8x1xf32> to vector<8x128xf32>
    %168 = arith.subf %156, %167 : vector<8x128xf32>
    %169 = math.log %166 : vector<8x1xf32>
    %170 = vector.broadcast %169 : vector<8x1xf32> to vector<8x128xf32>
    %171 = arith.subf %168, %170 : vector<8x128xf32>
    %c0_74 = arith.constant 0 : index
    %c0_75 = arith.constant 0 : index
    %c0_76 = arith.constant 0 : index
    %172 = vector.load %arg18[%c0_74, %c0_75, %c0_76] : memref<1x8x128xf32, #tpu.memory_space<vmem>>, vector<1x8x128xf32>
    %173 = vector.shape_cast %172 : vector<1x8x128xf32> to vector<8x128xf32>
    %174 = vector.shape_cast %171 : vector<8x128xf32> to vector<1x8x128xf32>
    tpu.vector_store %arg18[%c0_74, %c0_75, %c0_76], %174 {strides = array<i32>} : memref<1x8x128xf32, #tpu.memory_space<vmem>>, vector<1x8x128xf32>,
    %cst_77 = arith.constant 1.000000e+00 : f32
    %175 = vector.broadcast %cst_77 : f32 to vector<8x1xf32>
    %176 = arith.divf %175, %166 : vector<8x1xf32>
    %177 = vector.broadcast %176 : vector<8x1xf32> to vector<8x128xf32>
    %178 = arith.mulf %164, %177 : vector<8x128xf32>
    %c0_78 = arith.constant 0 : index
    %c0_79 = arith.constant 0 : index
    %c0_80 = arith.constant 0 : index
    %179 = vector.load %arg19[%c0_78, %c0_79, %c0_80] : memref<1x8x128xf32, #tpu.memory_space<vmem>>, vector<1x8x128xf32>
    %180 = vector.shape_cast %179 : vector<1x8x128xf32> to vector<8x128xf32>
    %181 = vector.shape_cast %178 : vector<8x128xf32> to vector<1x8x128xf32>
    tpu.vector_store %arg19[%c0_78, %c0_79, %c0_80], %181 {strides = array<i32>} : memref<1x8x128xf32, #tpu.memory_space<vmem>>, vector<1x8x128xf32>,
    return
  }
  func.func @transform_0(%arg0: i32, %arg1: i32) -> (i32, i32, i32) {
    %c1_i32 = arith.constant 1 : i32
    %0 = arith.muli %arg1, %c1_i32 : i32
    %c1_i32_0 = arith.constant 1 : i32
    %1 = arith.subi %0, %c1_i32_0 : i32
    %c0_i32 = arith.constant 0 : i32
    %2 = arith.maxsi %1, %c0_i32 : i32
    %c0_i32_1 = arith.constant 0 : i32
    %c0_i32_2 = arith.constant 0 : i32
    return %arg0, %2, %c0_i32_1 : i32, i32, i32
  }
  func.func @transform_1(%arg0: i32, %arg1: i32) -> (i32, i32, i32) {
    %c0_i32 = arith.constant 0 : i32
    %c0_i32_0 = arith.constant 0 : i32
    return %arg0, %arg1, %c0_i32 : i32, i32, i32
  }
  func.func @transform_2(%arg0: i32, %arg1: i32) -> (i32, i32, i32) {
    %c1_i32 = arith.constant 1 : i32
    %0 = arith.addi %arg1, %c1_i32 : i32
    %c1_i32_0 = arith.constant 1 : i32
    %1 = arith.muli %0, %c1_i32_0 : i32
    %c2_i32 = arith.constant 2 : i32
    %2 = arith.minsi %1, %c2_i32 : i32
    %c0_i32 = arith.constant 0 : i32
    %c0_i32_1 = arith.constant 0 : i32
    return %arg0, %2, %c0_i32 : i32, i32, i32
  }
  func.func @transform_3(%arg0: i32, %arg1: i32) -> (i32, i32) {
    %c1_i32 = arith.constant 1 : i32
    %0 = arith.muli %arg1, %c1_i32 : i32
    %c1_i32_0 = arith.constant 1 : i32
    %1 = arith.subi %0, %c1_i32_0 : i32
    %c0_i32 = arith.constant 0 : i32
    %2 = arith.maxsi %1, %c0_i32 : i32
    %c0_i32_1 = arith.constant 0 : i32
    %c0_i32_2 = arith.constant 0 : i32
    return %2, %c0_i32_1 : i32, i32
  }
  func.func @transform_4(%arg0: i32, %arg1: i32) -> (i32, i32) {
    %c0_i32 = arith.constant 0 : i32
    %c0_i32_0 = arith.constant 0 : i32
    return %arg1, %c0_i32 : i32, i32
  }
  func.func @transform_5(%arg0: i32, %arg1: i32) -> (i32, i32) {
    %c1_i32 = arith.constant 1 : i32
    %0 = arith.addi %arg1, %c1_i32 : i32
    %c1_i32_0 = arith.constant 1 : i32
    %1 = arith.muli %0, %c1_i32_0 : i32
    %c2_i32 = arith.constant 2 : i32
    %2 = arith.minsi %1, %c2_i32 : i32
    %c0_i32 = arith.constant 0 : i32
    %c0_i32_1 = arith.constant 0 : i32
    return %2, %c0_i32 : i32, i32
  }
  func.func @transform_6(%arg0: i32, %arg1: i32) -> (i32, i32) {
    %c0_i32 = arith.constant 0 : i32
    %c0_i32_0 = arith.constant 0 : i32
    %c0_i32_1 = arith.constant 0 : i32
    return %c0_i32, %c0_i32_0 : i32, i32
  }
  func.func @transform_7(%arg0: i32, %arg1: i32) -> (i32, i32) {
    %c0_i32 = arith.constant 0 : i32
    %c0_i32_0 = arith.constant 0 : i32
    %c0_i32_1 = arith.constant 0 : i32
    return %c0_i32, %c0_i32_0 : i32, i32
  }
  func.func @transform_8(%arg0: i32, %arg1: i32) -> (i32, i32) {
    %c0_i32 = arith.constant 0 : i32
    %c0_i32_0 = arith.constant 0 : i32
    %c0_i32_1 = arith.constant 0 : i32
    return %c0_i32, %c0_i32_0 : i32, i32
  }
  func.func @transform_9(%arg0: i32, %arg1: i32) -> (i32, i32) {
    %c0_i32 = arith.constant 0 : i32
    %c0_i32_0 = arith.constant 0 : i32
    %c0_i32_1 = arith.constant 0 : i32
    return %c0_i32, %c0_i32_0 : i32, i32
  }
  func.func @transform_10(%arg0: i32, %arg1: i32) -> (i32, i32) {
    %c0_i32 = arith.constant 0 : i32
    %c0_i32_0 = arith.constant 0 : i32
    %c0_i32_1 = arith.constant 0 : i32
    return %c0_i32, %c0_i32_0 : i32, i32
  }
  func.func @transform_11(%arg0: i32, %arg1: i32) -> (i32, i32) {
    %c0_i32 = arith.constant 0 : i32
    %c0_i32_0 = arith.constant 0 : i32
    %c0_i32_1 = arith.constant 0 : i32
    return %c0_i32, %c0_i32_0 : i32, i32
  }
  func.func @transform_12(%arg0: i32, %arg1: i32) -> (i32, i32) {
    %c0_i32 = arith.constant 0 : i32
    %c0_i32_0 = arith.constant 0 : i32
    %c0_i32_1 = arith.constant 0 : i32
    return %c0_i32, %c0_i32_0 : i32, i32
  }
  func.func @transform_13(%arg0: i32, %arg1: i32) -> (i32, i32, i32) {
    %c0_i32 = arith.constant 0 : i32
    %c0_i32_0 = arith.constant 0 : i32
    return %arg0, %arg1, %c0_i32 : i32, i32, i32
  }
  func.func @transform_14(%arg0: i32, %arg1: i32) -> (i32, i32, i32) {
    %c0_i32 = arith.constant 0 : i32
    %c0_i32_0 = arith.constant 0 : i32
    return %arg0, %arg1, %c0_i32 : i32, i32, i32
  }
  func.func @transform_15(%arg0: i32, %arg1: i32) -> (i32, i32, i32) {
    %c0_i32 = arith.constant 0 : i32
    %c0_i32_0 = arith.constant 0 : i32
    return %arg0, %arg1, %c0_i32 : i32, i32, i32
  }
  func.func @transform_16(%arg0: i32, %arg1: i32) -> (i32, i32, i32) {
    %c0_i32 = arith.constant 0 : i32
    %c0_i32_0 = arith.constant 0 : i32
    return %arg0, %arg1, %c0_i32 : i32, i32, i32
  }
  func.func @transform_17(%arg0: i32, %arg1: i32) -> (i32, i32, i32) {
    %c0_i32 = arith.constant 0 : i32
    %c0_i32_0 = arith.constant 0 : i32
    return %arg0, %arg1, %c0_i32 : i32, i32, i32
  }
}

</mosaic_0001>

<bundles_post_ra>
// kernel: tpu_custom_call.1
= control target key start
LH: loop header
LB: loop body
LE: loop exit
PB: predicated region body
PF: predicated region fallthrough
CT: control target
= control target key end

     0   :  { %s4832_s0 = inlined_call_operand.hbm [shape: f32[2,24,32], index: 0, kind: input, shape index: {}]   ;;  %s4833_s1 = inlined_call_operand.hbm [shape: f32[2,24,32], index: 1, kind: input, shape index: {}]   ;;  %s4834_s2 = inlined_call_operand.hbm [shape: f32[2,24,32], index: 2, kind: input, shape index: {}]   ;;  %s4835_s3 = inlined_call_operand.hbm [shape: f32[24,128], index: 3, kind: input, shape index: {}]   ;;  %s4836_s4 = inlined_call_operand.hbm [shape: f32[24,128], index: 4, kind: input, shape index: {}]   ;;  %s4837_s5 = inlined_call_operand.hbm [shape: f32[24,128], index: 5, kind: input, shape index: {}]   ;;  %s4838_s6 = inlined_call_operand.hbm [shape: bf16[32,128], index: 6, kind: input, shape index: {}]   ;;  %s4839_s7 = inlined_call_operand.vmem [shape: f32[8,128], index: 7, kind: input, shape index: {}]   ;;  %s4840_s8 = inlined_call_operand.hbm [shape: bf16[384,128], index: 8, kind: input, shape index: {}]   ;;  %s4841_s9 = inlined_call_operand.vmem [shape: f32[1,128], index: 9, kind: input, shape index: {}]   ;;  %s4842_s10 = inlined_call_operand.hbm [shape: bf16[384,128], index: 10, kind: input, shape index: {}]   ;;  %s4843_s11 = inlined_call_operand.hbm [shape: bf16[128,128], index: 11, kind: input, shape index: {}]   ;;  %s4844_s12 = inlined_call_operand.vmem [shape: f32[1,128], index: 12, kind: input, shape index: {}]   ;;  %s4845_s13 = inlined_call_operand.hbm [shape: f32[2,24,128], index: 13, kind: output, shape index: {0}]   ;;  %s4846_s14 = inlined_call_operand.hbm [shape: f32[2,24,128], index: 14, kind: output, shape index: {1}]   ;;  %s4847_s15 = inlined_call_operand.hbm [shape: f32[2,24,128], index: 15, kind: output, shape index: {2}]   ;;  %s4848_s16 = inlined_call_operand.hbm [shape: f32[2,24,128], index: 16, kind: output, shape index: {3}]   ;;  %s4849_s17 = inlined_call_operand.hbm [shape: f32[2,24,128], index: 17, kind: output, shape index: {4}]  }
   0x1   :  { %4898 = sst [smem:[#allocation67_spill]] %s4832_s0 }
   0x2   :  { %4899 = sst [smem:[#allocation68_spill]] %s4833_s1 }
   0x3   :  { %4900 = sst [smem:[#allocation69_spill]] %s4834_s2 }
   0x4   :  { %4901 = sst [smem:[#allocation70_spill]] %s4835_s3 }
   0x5   :  { %4902 = sst [smem:[#allocation71_spill]] %s4836_s4 }
   0x6   :  { %4903 = sst [smem:[#allocation72_spill]] %s4837_s5 }
   0x7   :  { %4904 = sst [smem:[#allocation73_spill]] %s4838_s6 }
   0x8   :  { %4905 = sst [smem:[#allocation74_spill]] %s4839_s7 }
   0x9   :  { %4906 = sst [smem:[#allocation75_spill]] %s4840_s8 }
   0xa   :  { %4907 = sst [smem:[#allocation76_spill]] %s4841_s9 }
   0xb   :  { %4908 = sst [smem:[#allocation77_spill]] %s4842_s10 }
   0xc   :  { %4909 = sst [smem:[#allocation78_spill]] %s4843_s11 }
   0xd   :  { %4910 = sst [smem:[#allocation79_spill]] %s4844_s12 }
   0xe   :  { %4911 = sst [smem:[#allocation80_spill]] %s4845_s13 }
   0xf   :  { %4912 = sst [smem:[#allocation81_spill]] %s4846_s14 }
  0x10   :  { %4913 = sst [smem:[#allocation82_spill]] %s4847_s15 }
  0x11   :  { %4914 = sst [smem:[#allocation83_spill]] %s4848_s16 }
  0x12   :  { %4915 = sst [smem:[#allocation84_spill]] %s4849_s17 }
  0x13   :  { %23 = vsyncpa [#allocation3], 0 }
  0x14   :  { %25 = vsyncpa [#allocation3 + $0x1], 0 }
  0x15   :  { %26 = vsyncpa [#allocation6], 0 }
  0x16   :  { %28 = vsyncpa [#allocation6 + $0x1], 0 }
  0x17   :  { %29 = vsyncpa [#allocation9], 0 }
  0x18   :  { %31 = vsyncpa [#allocation9 + $0x1], 0 }
  0x19   :  { %32 = vsyncpa [#allocation12], 0 }
  0x1a   :  { %34 = vsyncpa [#allocation12 + $0x1], 0 }
  0x1b   :  { %35 = vsyncpa [#allocation15], 0 }
  0x1c   :  { %36 = vsyncpa [#allocation18], 0 }
  0x1d   :  { %37 = vsyncpa [#allocation4], 0 }
  0x1e   :  { %39 = vsyncpa [#allocation4 + $0x1], 0 }
  0x1f   :  { %40 = vsyncpa [#allocation21], 0 }
  0x20   :  { %42 = vsyncpa [#allocation21 + $0x1], 0 }
  0x21   :  { %43 = vsyncpa [#allocation24], 0 }
  0x22   :  { %45 = vsyncpa [#allocation24 + $0x1], 0  ;;  %s3915_s24 = smov 0   ;;  %s3917_s25 = smov 0  }
  0x23   :  { %s3919_s26 = smov 0   ;;  %s3921_s27 = smov 0  }
  0x24   :  { %s3923_s28 = smov 0   ;;  %s3925_s29 = smov 0  }
  0x25   :  { %s3927_s0 = smov 0   ;;  %s3929_s30 = smov 0  }
  0x26   :  { %s3931_s18 = smov 0   ;;  %s3933_s19 = smov 0  }
  0x27   :  { %s3935_s1 = smov 0   ;;  %s3937_s20 = smov 0  }
  0x28   :  { %s3939_s21 = smov 0   ;;  %s3941_s22 = smov 0  }
  0x29   :  { %s3943_s23 = smov 0   ;;  %s3945_s17 = smov 0  }
  0x2a   :  { %s3947_s16 = smov 0   ;;  %s3949_s15 = smov 0  }
  0x2b   :  { %s3951_s13 = smov 0   ;;  %s3953_s14 = smov 0  }
  0x2c   :  { %s3955_s12 = smov 0   ;;  %s3957_s9 = smov 0  }
  0x2d   :  { %s3959_s7 = smov 0  }
  0x2e LB: > { %4916 = sst [smem:[#allocation38_spill]] %s3716_s24  ;;  %s4031_s5 = sadd.s32 4294967295, %s3804_s7   ;;  %s3804_s7 = sphi %s3959_s7, %s51_s7   ;;  %s3800_s9 = sphi %s3957_s9, %s5066_s9   ;;  %s3796_s12 = sphi %s3955_s12, %s5075_s12   ;;  %s3792_s14 = sphi %s3953_s14, %s5063_s14   ;;  %s3788_s13 = sphi %s3951_s13, %s5074_s13   ;;  %s3784_s15 = sphi %s3949_s15, %s5060_s15   ;;  %s3780_s16 = sphi %s3947_s16, %s5059_s16   ;;  %s3776_s17 = sphi %s3945_s17, %s5058_s17   ;;  %s3772_s23 = sphi %s3943_s23, %s5057_s23   ;;  %s3768_s22 = sphi %s3941_s22, %s5056_s22   ;;  %s3764_s21 = sphi %s3939_s21, %s5073_s21   ;;  %s3760_s20 = sphi %s3937_s20, %s5072_s20   ;;  %s3756_s1 = sphi %s3935_s1, %s5071_s1   ;;  %s3752_s19 = sphi %s3933_s19, %s5052_s19   ;;  %s3748_s18 = sphi %s3931_s18, %s5070_s18   ;;  %s3744_s30 = sphi %s3929_s30, %s5068_s30   ;;  %s3740_s0 = sphi %s3927_s0, %s5067_s0   ;;  %s3736_s29 = sphi %s3925_s29, %s5065_s29   ;;  %s3732_s28 = sphi %s3923_s28, %s5051_s28   ;;  %s3728_s27 = sphi %s3921_s27, %s5050_s27   ;;  %s3724_s26 = sphi %s3919_s26, %s5061_s26   ;;  %s3720_s25 = sphi %s3917_s25, %s5049_s25   ;;  %s3716_s24 = sphi %s3915_s24, %s5048_s24  }
  0x2f   : > { %4917 = sst [smem:[#allocation39_spill]] %s3720_s25  ;;  %p2436_p0 = scmp.ge.s32.totalorder %s3804_s7, 1 }
  0x30   : > { %4918 = sst [smem:[#allocation40_spill]] %s3724_s26  ;;  %p4882_p1 = scmp.eq.s32.totalorder %s4031_s5, 0 }
  0x31   : > { %4919 = sst [smem:[#allocation41_spill]] %s3728_s27  ;;  %p541_p2 = scmp.lt.s32.totalorder %s3804_s7, 7 }
  0x32   : > { %4920 = sst [smem:[#allocation42_spill]] %s3732_s28  ;;  %s3807_s26 = smov [#allocation14]  }
  0x33   : > { %4921 = sst [smem:[#allocation43_spill]] %s3736_s29  ;;  %p4036_p3 = pnand %p2436_p0, %p541_p2 }
  0x34   : > { %4922 = sst [smem:[#allocation44_spill]] %s3752_s19  ;;  %s569_s4 = sshll.u32 %s3807_s26, 4  ;;  %s570_s4 = int_to_ptr.vmem [resolvable:$true] %s569_s4 }
  0x35   : > { %4923 = sst [smem:[#allocation45_spill]] %s3756_s1  ;;  %p2848_p4 = pneg %p4036_p3 }
  0x36   : > { %4924 = sst [smem:[#allocation46_spill]] %s3760_s20 }
  0x37   : > { %4925 = sst [smem:[#allocation47_spill]] %s3764_s21  ;;  %p4044_p5 = pnand %p2848_p4, %p4882_p1 }
  0x38   : > { %4926 = sst [smem:[#allocation48_spill]] %s3768_s22 }
  0x39   : > { %4927 = sst [smem:[#allocation49_spill]] %s3772_s23  ;;  %p4866_p6 = pneg %p4044_p5 }
  0x3a   : > { %4928 = sst [smem:[#allocation50_spill]] %s3776_s17 }
  0x3b   : > { %4929 = sst [smem:[#allocation51_spill]] %s3780_s16 }
  0x3c   : > { %4930 = sst [smem:[#allocation52_spill]] %s3784_s15 }
  0x3d   : > { %4931 = sst [smem:[#allocation53_spill]] %s3788_s13 }
  0x3e   : > { %4932 = sst [smem:[#allocation54_spill]] %s3792_s14  ;;  %s3806_s14 = smov [#allocation13]  }
  0x3f   : > { %4933 = sst [smem:[#allocation55_spill]] %s3796_s12  ;;  %s553_s24 = sshll.u32 %s3806_s14, 4  ;;  %s554_s24 = int_to_ptr.vmem [resolvable:$true] %s553_s24 }
  0x40   : > { %4934 = sst [smem:[#allocation56_spill]] %s3800_s9  ;;  %s3183_s27 = scalar_lea.vmem %s554_s24, 256 }
  0x41   : > { %s4935_s13 = scalar_select %p4036_p3, 1, 0 }
  0x42   : > { %p3184_p7 = scmp.ne.s32.totalorder %s554_s24, %s3183_s27  ;;  %p3191_p10 = scmp.lt.s32.totalorder %s554_s24, %s554_s24 }
  0x43   : > { %4936 = sst [smem:[#allocation57_spill]] %s4935_s13  ;;  %p3192_p11 = scmp.lt.s32.totalorder %s3183_s27, %s3183_s27 }
  0x44   : > { %p3186_p8 = pnand %p3184_p7, %p4866_p6 }
  0x45   : > { %p3193_p12 = por %p3192_p11, %p3191_p10 }
  0x46   : > { %p3187_p9 = pneg %p3186_p8 }
  0x48   : > { %p3194_p13 = pnand %p3193_p12, %p3187_p9 }
  0x4a   : > { %3197 = shalt.err (!%p3194_p13)
}
  0x4b   : > { %s4861_s14 = smov 64   ;;  %s4863_s13 = smov 4  }
  0x4c   : > { %s4938_s6 = sld [smem:[#allocation73_spill]]  ;;  %s3209_s29 = scalar_lea.vmem %s570_s4, 3072 }
  0x4d   : > { %p3210_p0 = scmp.ne.s32.totalorder %s570_s4, %s3209_s29  ;;  %p3217_p7 = scmp.lt.s32.totalorder %s570_s4, %s570_s4 }
  0x4e   : > { %p3218_p8 = scmp.lt.s32.totalorder %s3209_s29, %s3209_s29 }
  0x4f   : > { %p3212_p2 = pnand %p3210_p0, %p4866_p6 }
  0x50   : > { %p3219_p9 = por %p3218_p8, %p3217_p7 }
  0x51   : > { %p3213_p4 = pneg %p3212_p2 }
  0x52   : > { %2851 = dma.hbm_to_vmem [thread:$0]  (!%p4044_p5), %s4938_s6, 256, %s554_s24, [#allocation12], %s4861_s14, %s4861_s14, %s4863_s13  }
  0x53   : > { %p3220_p10 = pnand %p3219_p9, %p3213_p4 }
  0x55   : > { %3223 = shalt.err (!%p3220_p10)
}
  0x56   : > { %s4939_s8 = sld [smem:[#allocation75_spill]]  ;;  %s4872_s24 = sadd.s32 4294967294, %s3804_s7  }
  0x57   : > { %s4074_s28 = sadd.s32 1, %s3796_s12  ;;  %s63_s2 = sadd.s32 1, %s3800_s9 }
  0x58   : > { %4940 = sst [smem:[#allocation58_spill]] %s4074_s28  ;;  %p61_p11 = scmp.ge.s32.totalorder %s4074_s28, 3 }
  0x59   : > { %p4883_p12 = scmp.eq.s32.totalorder %s3804_s7, 0  ;;  %s106_s29 = sadd.s32 1, %s3772_s23 }
  0x5a   : > { %s4081_s26 = scalar_select %p61_p11, 0, %s4074_s28  }
  0x5b   : > { %s5077_s2 = smov (!%p61_p11, %s63_s2), %s3800_s9  ;;  %p113_p13 = scmp.ne.s32.totalorder %s3772_s23, %s3768_s22 }
  0x5c   : > { %2854 = dma.hbm_to_vmem [thread:$0]  (!%p4044_p5), %s4939_s8, 3072, %s570_s4, [#allocation15], %s4861_s14, %s4861_s14, %s4863_s13  }
  0x5d   : > { %4941 = sst [smem:[#allocation59_spill]] %s4081_s26  ;;  %s4942_s6 = smov %s4081_s26 }
  0x5e   : > { %s4086_s27 = ssub.s32 %s3796_s12, %s4942_s6  ;;  %p65_p0 = scmp.ge.s32.totalorder %s5077_s2, 2 }
  0x5f   : > { %4943 = sst [smem:[#allocation60_spill]] %s4086_s27  ;;  %p119_p2 = scmp.ne.s32.totalorder %s3768_s22, %s3764_s21 }
  0x60   : > { %p4094_p4 = por %p113_p13, %p4883_p12  ;;  %s5079_s2 = smov (%p65_p0, %s5077_s2), 0 }
  0x61   : > { %4945 = sst [smem:[#allocation61_spill]] %s5079_s2  ;;  %p4103_p8 = por %p119_p2, %p4882_p1 }
  0x62   : > { %p416_p9 = scmp.eq.s32.totalorder %s4031_s5, 5  ;;  %s4110_s14 = ssub.s32 %s3800_s9, %s5079_s2 }
  0x63   : > { %s4946_s26 = scalar_select %p4103_p8, 1, 0 }
  0x64   : > { %p422_p10 = scmp.eq.s32.totalorder %s4872_s24, 5  ;;  %s103_s13 = sor.u32 %s4086_s27, %s4110_s14 }
  0x65   : > { %4947 = sst [smem:[#allocation62_spill]] %s4946_s26  ;;  %p4116_p11 = por %p416_p9, %p113_p13 }
  0x66   : > { %p104_p0 = scmp.eq.s32.totalorder %s103_s13, 0  ;;  %p4120_p7 = por %p422_p10, %p119_p2 }
  0x67   : > { %s4948_s8 = scalar_select %p4116_p11, 1, 0 }
  0x68   : > { %s4950_s21 = scalar_select %p4120_p7, 1, 0 }
  0x69   : > { %4949 = sst [smem:[#allocation63_spill]] %s4948_s8  ;;  %p4887_p6 = scmp.lt.s32.totalorder %s3804_s7, 6 }
  0x6a   : > { %s4126_s26 = smul.u32 3, %s3800_s9  ;;  %s4132_s22 = sand.u32 1, %s3804_s7  }
  0x6b   : > { %s4129_s2 = scalar_select %p104_p0, %s3772_s23, %s106_s29  }
  0x6c   : > { %s640_s24 = sand.u32 1, %s3772_s23   ;;  %s647_s19 = sadd.s32 %s3796_s12, %s4126_s26 }
  0x6d   : > { %4951 = sst [smem:[#allocation64_spill]] %s4129_s2  ;;  %s2445_s27 = sshll.u32 %s640_s24, 3 }
  0x6e   : > { %s2446_s1 = sshll.u32 %s647_s19, 7  ;;  %s642_s20 = scalar_lea.vmem [#allocation5], %s2445_s27 }
  0x6f   : > { %s651_s8 = sshll.u32 %s642_s20, 4  ;;  %s4952_s17 = sld [smem:[#allocation68_spill]]  ;;  %s652_s8 = int_to_ptr.vmem [resolvable:$true] %s651_s8 }
  0x70   : > { %p4144_p13 = pnand %p4887_p6, %p4094_p4  ;;  %s4885_s29 = scalar_lea.sflag [#allocation6], %s4132_s22 }
  0x71   : > { %s3237_s24 = scalar_lea.vmem %s652_s8, 128  ;;  %s3810_s19 = smov [#allocation5]  }
  0x72   : > { %p3226_p2 = pneg %p4144_p13  ;;  %p3238_p9 = scmp.ne.s32.totalorder %s652_s8, %s3237_s24 }
  0x73   : > { %s3242_s20 = sshll.u32 %s3810_s19, 4  ;;  %s3243_s20 = int_to_ptr.vmem [resolvable:$false] %s3242_s20 }
  0x74   : > { %p3240_p10 = pnand %p3238_p9, %p3226_p2  ;;  %s3244_s28 = scalar_lea.vmem %s3243_s20, 256 }
  0x75   : > { %s649_s16 = scalar_lea.hbm %s4952_s17, %s2446_s1  ;;  %p3245_p1 = scmp.lt.s32.totalorder %s652_s8, %s3243_s20 }
  0x76   : > { %p3241_p0 = pneg %p3240_p10  ;;  %p3246_p12 = scmp.lt.s32.totalorder %s3244_s28, %s3237_s24 }
  0x78   : > { %p3247_p7 = por %p3246_p12, %p3245_p1 }
  0x7a   : > { %p3248_p11 = pnand %p3247_p7, %p3241_p0 }
  0x7c   : > { %3251 = shalt.err (!%p3248_p11)
}
  0x7d   : > { %2867 = dma.hbm_to_vmem [thread:$0]  (!%p4144_p13), %s649_s16, 128, %s652_s8, %s4885_s29  }
  0x7e   : > { %s2432_s17 = sadd.s32 4294967295, %s3796_s12  ;;  %s2433_s1 = sadd.s32 4294967295, %s4942_s6 }
  0x7f   : > { %p68_p1 = scmp.gt.s32.totalorder %s2432_s17, 0  ;;  %p71_p12 = scmp.gt.s32.totalorder %s2433_s1, 0 }
  0x80   : > { %s172_s9 = sadd.s32 1, %s3748_s18  ;;  %p179_p4 = scmp.ne.s32.totalorder %s3748_s18, %s3744_s30 }
  0x81   : > { %s5081_s17 = smov (!%p68_p1, %s2432_s17), 0  ;;  %s5083_s1 = smov (!%p71_p12, %s2433_s1), 0 }
  0x82   : > { %p4954_p7 = scmp.eq.s32.totalorder %s3804_s7, 0  ;;  %p185_p2 = scmp.ne.s32.totalorder %s3744_s30, %s3740_s0 }
  0x83   : > { %s74_s27 = ssub.s32 %s5081_s17, %s5083_s1  ;;  %p4956_p10 = scmp.eq.s32.totalorder %s4031_s5, 0 }
  0x84   : > { %p181_p11 = por %p179_p4, %p4954_p7  ;;  %s75_s8 = sor.u32 %s74_s27, %s4110_s14 }
  0x85   : > { %p170_p13 = scmp.eq.s32.totalorder %s74_s27, 0  ;;  %p4168_p9 = scmp.eq.s32.totalorder %s75_s8, 0 }
  0x86   : > { %p4174_p0 = por %p185_p2, %p4956_p10  ;;  %s683_s24 = sand.u32 1, %s3748_s18  }
  0x87   : > { %s4179_s13 = scalar_select %p170_p13, %s3748_s18, %s172_s9  }
  0x88   : > { %s4957_s4 = scalar_select %p4174_p0, 1, 0 }
  0x89   : > { %s2451_s19 = sshll.u32 %s5081_s17, 7  ;;  %s2449_s20 = sshll.u32 %s683_s24, 3 }
  0x8a   : > { %s4958_s3 = sld [smem:[#allocation70_spill]]  ;;  %p4188_p1 = pnand %p4887_p6, %p181_p11 }
  0x8b   : > { %s685_s27 = scalar_lea.vmem [#allocation8], %s2449_s20  ;;  %s4889_s2 = scalar_lea.sflag [#allocation9], %s4132_s22 }
  0x8c   : > { %s695_s8 = sshll.u32 %s685_s27, 4  ;;  %p3254_p12 = pneg %p4188_p1  ;;  %s696_s8 = int_to_ptr.vmem [resolvable:$true] %s695_s8 }
  0x8d   : > { %s3265_s9 = scalar_lea.vmem %s696_s8, 128  ;;  %s3811_s24 = smov [#allocation8]  }
  0x8e   : > { %p3266_p4 = scmp.ne.s32.totalorder %s696_s8, %s3265_s9  ;;  %s3270_s23 = sshll.u32 %s3811_s24, 4  ;;  %s3271_s23 = int_to_ptr.vmem [resolvable:$false] %s3270_s23 }
  0x8f   : > { %s3272_s29 = scalar_lea.vmem %s3271_s23, 256  ;;  %p3273_p13 = scmp.lt.s32.totalorder %s696_s8, %s3271_s23 }
  0x90   : > { %s693_s0 = scalar_lea.hbm %s4958_s3, %s2451_s19  ;;  %p3268_p7 = pnand %p3266_p4, %p3254_p12 }
  0x91   : > { %p3274_p11 = scmp.lt.s32.totalorder %s3272_s29, %s3265_s9 }
  0x92   : > { %p3269_p2 = pneg %p3268_p7 }
  0x93   : > { %p3275_p10 = por %p3274_p11, %p3273_p13 }
  0x95   : > { %p3276_p6 = pnand %p3275_p10, %p3269_p2 }
  0x97   : > { %3279 = shalt.err (!%p3276_p6)
}
  0x98   : > { %2873 = dma.hbm_to_vmem [thread:$0]  (!%p4188_p1), %s693_s0, 128, %s696_s8, %s4889_s2  }
  0x99   : > { %s3812_s19 = smov [#allocation16]   ;;  %s3813_s28 = smov [#allocation17]  }
  0x9a   : > { %s585_s20 = sshll.u32 %s3812_s19, 4  ;;  %s598_s27 = sshll.u32 %s3813_s28, 4  ;;  %s586_s20 = int_to_ptr.vmem [resolvable:$true] %s585_s20  ;;  %s599_s27 = int_to_ptr.vmem [resolvable:$true] %s598_s27 }
  0x9b   : > { %s3291_s3 = scalar_lea.vmem %s586_s20, 3072  ;;  %p4960_p4 = pneg %p4044_p5 }
  0x9c   : > { %p3292_p12 = scmp.ne.s32.totalorder %s586_s20, %s3291_s3  ;;  %p3299_p13 = scmp.lt.s32.totalorder %s586_s20, %s586_s20 }
  0x9d   : > { %p3300_p2 = scmp.lt.s32.totalorder %s3291_s3, %s3291_s3 }
  0x9e   : > { %p3294_p7 = pnand %p3292_p12, %p4960_p4 }
  0x9f   : > { %p3301_p6 = por %p3300_p2, %p3299_p13 }
  0xa0   : > { %p3295_p0 = pneg %p3294_p7 }
  0xa2   : > { %p3302_p11 = pnand %p3301_p6, %p3295_p0 }
  0xa4   : > { %3305 = shalt.err (!%p3302_p11)
}
  0xa5   : > { %s4961_s23 = smov 4   ;;  %s4962_s0 = smov 64  }
  0xa6   : > { %s4963_s10 = sld [smem:[#allocation77_spill]]  ;;  %s3317_s9 = scalar_lea.vmem %s599_s27, 1024 }
  0xa7   : > { %p3318_p1 = scmp.ne.s32.totalorder %s599_s27, %s3317_s9  ;;  %p4964_p10 = pmov %p4960_p4 }
  0xa8   : > { %p3325_p7 = scmp.lt.s32.totalorder %s599_s27, %s599_s27  ;;  %p3326_p0 = scmp.lt.s32.totalorder %s3317_s9, %s3317_s9 }
  0xa9   : > { %p3320_p12 = pnand %p3318_p1, %p4964_p10 }
  0xaa   : > { %p3327_p13 = por %p3326_p0, %p3325_p7 }
  0xab   : > { %p3321_p4 = pneg %p3320_p12 }
  0xac   : > { %2857 = dma.hbm_to_vmem [thread:$0]  (!%p4044_p5), %s4963_s10, 3072, %s586_s20, [#allocation15], %s4962_s0, %s4962_s0, %s4961_s23  }
  0xad   : > { %p3328_p2 = pnand %p3327_p13, %p3321_p4 }
  0xaf   : > { %3331 = shalt.err (!%p3328_p2)
}
  0xb0   : > { %s4965_s11 = sld [smem:[#allocation78_spill]]  ;;  %s78_s25 = sadd.s32 1, %s3784_s15 }
  0xb1   : > { %s4966_s29 = sld [smem:[#allocation51_spill]]  ;;  %s615_s28 = sand.u32 1, %s3784_s15  }
  0xb2   : > { %s4967_s19 = sld [smem:[#allocation50_spill]]  ;;  %s627_s1 = sadd.s32 %s4126_s26, %s5081_s17 }
  0xb3   : > { %s4225_s20 = scalar_select %p4168_p9, %s3784_s15, %s78_s25  }
  0xb4   : > { %p4969_p1 = scmp.eq.s32.totalorder %s3804_s7, 0  ;;  %p4970_p12 = scmp.eq.s32.totalorder %s4031_s5, 0 }
  0xb5   : > { %4968 = sst [smem:[#allocation65_spill]] %s4225_s20  ;;  %s2442_s9 = sshll.u32 %s615_s28, 3 }
  0xb6   : > { %2860 = dma.hbm_to_vmem [thread:$0]  (!%p4044_p5), %s4965_s11, 1024, %s599_s27, [#allocation18], %s4962_s0, %s4962_s0, %s4961_s23  }
  0xb7   : > { %p85_p6 = scmp.ne.s32.totalorder %s3784_s15, %s4966_s29  ;;  %s2444_s3 = sshll.u32 %s627_s1, 7 }
  0xb8   : > { %p91_p11 = scmp.ne.s32.totalorder %s4966_s29, %s4967_s19  ;;  %s4972_s27 = sld [smem:[#allocation67_spill]] }
  0xb9   : > { %p87_p10 = por %p4969_p1, %p85_p6  ;;  %s619_s16 = scalar_lea.vmem [#allocation2], %s2442_s9 }
  0xba   : > { %p4238_p4 = por %p4970_p12, %p91_p11  ;;  %s631_s0 = sshll.u32 %s619_s16, 4  ;;  %s632_s0 = int_to_ptr.vmem [resolvable:$true] %s631_s0 }
  0xbb   : > { %p4973_p5 = scmp.lt.s32.totalorder %s3804_s7, 6  ;;  %s616_s17 = scalar_lea.sflag [#allocation3], %s615_s28 }
  0xbc   : > { %s3345_s19 = scalar_lea.vmem %s632_s0, 128  ;;  %s3814_s25 = smov [#allocation2]  }
  0xbd   : > { %p4247_p9 = pnand %p4973_p5, %p87_p10  ;;  %p3346_p0 = scmp.ne.s32.totalorder %s632_s0, %s3345_s19 }
  0xbe   : > { %s629_s23 = scalar_lea.hbm %s4972_s27, %s2444_s3  ;;  %s3350_s1 = sshll.u32 %s3814_s25, 4  ;;  %s3351_s1 = int_to_ptr.vmem [resolvable:$false] %s3350_s1 }
  0xbf   : > { %p3334_p7 = pneg %p4247_p9  ;;  %s3352_s2 = scalar_lea.vmem %s3351_s1, 256 }
  0xc0   : > { %p3353_p6 = scmp.lt.s32.totalorder %s632_s0, %s3351_s1  ;;  %p3354_p11 = scmp.lt.s32.totalorder %s3352_s2, %s3345_s19 }
  0xc1   : > { %p3348_p13 = pnand %p3346_p0, %p3334_p7 }
  0xc2   : > { %p3355_p1 = por %p3354_p11, %p3353_p6 }
  0xc3   : > { %p3349_p2 = pneg %p3348_p13 }
  0xc5   : > { %p3356_p12 = pnand %p3355_p1, %p3349_p2 }
  0xc7   : > { %3359 = shalt.err (!%p3356_p12)
}
  0xc8   : > { %s4975_s9 = sld [smem:[#allocation58_spill]]  ;;  %s132_s27 = sadd.s32 1, %s4942_s6 }
  0xc9   : > { %s4976_s28 = sld [smem:[#allocation46_spill]]  ;;  %p133_p5 = scmp.lt.s32.totalorder %s132_s27, 2 }
  0xca   : > { %s4977_s3 = sld [smem:[#allocation45_spill]]  ;;  %p4979_p13 = scmp.eq.s32.totalorder %s3804_s7, 0 }
  0xcb   : > { %s4978_s24 = sld [smem:[#allocation44_spill]]  ;;  %s5087_s27 = smov (!%p133_p5, %s132_s27), 2 }
  0xcc   : > { %2864 = dma.hbm_to_vmem [thread:$0]  (!%p4247_p9), %s629_s23, 128, %s632_s0, %s616_s17  }
  0xcd   : > { %p4981_p9 = scmp.eq.s32.totalorder %s4031_s5, 0  ;;  %s4984_s6 = sld [smem:[#allocation69_spill]] }
  0xce   : > { %p130_p10 = scmp.lt.s32.totalorder %s4975_s9, 2  ;;  %p4985_p12 = scmp.lt.s32.totalorder %s3804_s7, 6 }
  0xcf   : > { %s140_s16 = sadd.s32 1, %s4976_s28  ;;  %s660_s29 = sand.u32 1, %s4976_s28  }
  0xd0   : > { %s5085_s9 = smov (!%p130_p10, %s4975_s9), 2  ;;  %p147_p7 = scmp.ne.s32.totalorder %s4976_s28, %s4977_s3 }
  0xd1   : > { %p153_p0 = scmp.ne.s32.totalorder %s4977_s3, %s4978_s24  ;;  %s4279_s0 = ssub.s32 %s5085_s9, %s5087_s27 }
  0xd2   : > { %p4268_p2 = por %p147_p7, %p4979_p13  ;;  %s2447_s17 = sshll.u32 %s660_s29, 3 }
  0xd3   : > { %p4274_p6 = por %p153_p0, %p4981_p9  ;;  %s137_s25 = sor.u32 %s4279_s0, %s4110_s14 }
  0xd4   : > { %p138_p1 = scmp.eq.s32.totalorder %s137_s25, 0  ;;  %s670_s1 = sadd.s32 %s4126_s26, %s5085_s9 }
  0xd5   : > { %s4982_s23 = scalar_select %p4274_p6, 1, 0 }
  0xd6   : > { %s662_s2 = scalar_lea.vmem [#allocation7], %s2447_s17  ;;  %s5089_s28 = smov (!%p138_p1, %s4976_s28), %s140_s16 }
  0xd7   : > { %s674_s3 = sshll.u32 %s662_s2, 4  ;;  %4983 = sst [smem:[#allocation66_spill]] %s5089_s28  ;;  %s675_s3 = int_to_ptr.vmem [resolvable:$true] %s674_s3 }
  0xd8   : > { %s2448_s24 = sshll.u32 %s670_s1, 7  ;;  %p4296_p10 = pnand %p4985_p12, %p4268_p2 }
  0xd9   : > { %s672_s20 = scalar_lea.hbm %s4984_s6, %s2448_s24  ;;  %s3373_s14 = scalar_lea.vmem %s675_s3, 128 }
  0xda   : > { %p3362_p5 = pneg %p4296_p10  ;;  %p3374_p7 = scmp.ne.s32.totalorder %s675_s3, %s3373_s14 }
  0xdb   : > { %s3815_s26 = smov [#allocation7]  }
  0xdc   : > { %p3376_p0 = pnand %p3374_p7, %p3362_p5  ;;  %s3378_s16 = sshll.u32 %s3815_s26, 4  ;;  %s3379_s16 = int_to_ptr.vmem [resolvable:$false] %s3378_s16 }
  0xdd   : > { %s3380_s29 = scalar_lea.vmem %s3379_s16, 256  ;;  %p3381_p9 = scmp.lt.s32.totalorder %s675_s3, %s3379_s16 }
  0xde   : > { %p3377_p13 = pneg %p3376_p0  ;;  %p3382_p1 = scmp.lt.s32.totalorder %s3380_s29, %s3373_s14 }
  0xe0   : > { %p3383_p11 = por %p3382_p1, %p3381_p9 }
  0xe2   : > { %p3384_p6 = pnand %p3383_p11, %p3377_p13 }
  0xe4   : > { %3387 = shalt.err (!%p3384_p6)
}
  0xe5   : > { %s4987_s6 = scalar_lea.sflag [#allocation6], %s4132_s22  ;;  %s4988_s10 = sld [smem:[#allocation43_spill]] }
  0xe6   : > { %s4989_s11 = sld [smem:[#allocation60_spill]]  ;;  %s2453_s24 = sshll.u32 %s3796_s12, 7 }
  0xe7   : > { %s4990_s19 = sld [smem:[#allocation42_spill]]  ;;  %p4993_p12 = scmp.eq.s32.totalorder %s3804_s7, 0 }
  0xe8   : > { %s4991_s17 = sld [smem:[#allocation41_spill]]  ;;  %p4994_p7 = scmp.eq.s32.totalorder %s4031_s5, 0 }
  0xe9   : > { %2870 = dma.hbm_to_vmem [thread:$0]  (!%p4296_p10), %s672_s20, 128, %s675_s3, %s4987_s6  }
  0xea   : > { %s4996_s29 = sld [smem:[#allocation71_spill]]  ;;  %p4997_p10 = scmp.lt.s32.totalorder %s3804_s7, 6 }
  0xeb   : > { %s198_s25 = sadd.s32 1, %s4988_s10  ;;  %s704_s2 = sand.u32 1, %s4988_s10  }
  0xec   : > { %p4992_p2 = scmp.eq.s32.totalorder %s4989_s11, 0  ;;  %s2452_s14 = sshll.u32 %s704_s2, 3 }
  0xed   : > { %p205_p6 = scmp.ne.s32.totalorder %s4988_s10, %s4990_s19  ;;  %s706_s6 = scalar_lea.vmem [#allocation10], %s2452_s14 }
  0xee   : > { %s4310_s1 = scalar_select %p4992_p2, %s4988_s10, %s198_s25  }
  0xef   : > { %p211_p11 = scmp.ne.s32.totalorder %s4990_s19, %s4991_s17  ;;  %p207_p5 = por %p205_p6, %p4993_p12 }
  0xf0   : > { %s711_s20 = scalar_lea.hbm %s4996_s29, %s2453_s24  ;;  %s713_s10 = sshll.u32 %s706_s6, 4  ;;  %s714_s10 = int_to_ptr.vmem [resolvable:$true] %s713_s10 }
  0xf1   : > { %p4322_p0 = por %p211_p11, %p4994_p7  ;;  %p4331_p13 = pnand %p4997_p10, %p207_p5 }
  0xf2   : > { %s3401_s11 = scalar_lea.vmem %s714_s10, 128  ;;  %s3816_s19 = smov [#allocation10]  }
  0xf3   : > { %p3390_p9 = pneg %p4331_p13  ;;  %p3402_p1 = scmp.ne.s32.totalorder %s714_s10, %s3401_s11 }
  0xf4   : > { %s3406_s17 = sshll.u32 %s3816_s19, 4  ;;  %s3407_s17 = int_to_ptr.vmem [resolvable:$false] %s3406_s17 }
  0xf5   : > { %p3404_p2 = pnand %p3402_p1, %p3390_p9  ;;  %s3408_s25 = scalar_lea.vmem %s3407_s17, 256 }
  0xf6   : > { %p3409_p11 = scmp.lt.s32.totalorder %s714_s10, %s3407_s17  ;;  %p3410_p12 = scmp.lt.s32.totalorder %s3408_s25, %s3401_s11 }
  0xf7   : > { %p3405_p6 = pneg %p3404_p2 }
  0xf8   : > { %p3411_p5 = por %p3410_p12, %p3409_p11 }
  0xfa   : > { %p3412_p7 = pnand %p3411_p5, %p3405_p6 }
  0xfc   : > { %3415 = shalt.err (!%p3412_p7)
}
  0xfd   : > { %s4999_s2 = scalar_lea.sflag [#allocation9], %s4132_s22  ;;  %s5000_s24 = sld [smem:[#allocation40_spill]] }
  0xfe   : > { %s5001_s14 = sld [smem:[#allocation39_spill]]  ;;  %p5003_p10 = scmp.eq.s32.totalorder %s4279_s0, 0 }
  0xff   : > { %s5002_s26 = sld [smem:[#allocation38_spill]]  ;;  %p5004_p2 = scmp.eq.s32.totalorder %s3804_s7, 0 }
 0x100   : > { %2876 = dma.hbm_to_vmem [thread:$0]  (!%p4331_p13), %s711_s20, 128, %s714_s10, %s4999_s2  }
 0x101   : > { %p5005_p11 = scmp.eq.s32.totalorder %s4031_s5, 0  ;;  %s2455_s19 = sshll.u32 %s5085_s9, 7 }
 0x102   : > { %s5007_s12 = sld [smem:[#allocation72_spill]]  ;;  %p5008_p13 = scmp.lt.s32.totalorder %s3804_s7, 6 }
 0x103   : > { %s230_s16 = sadd.s32 1, %s5000_s24  ;;  %s722_s3 = sand.u32 1, %s5000_s24  }
 0x104   : > { %s4345_s29 = scalar_select %p5003_p10, %s5000_s24, %s230_s16  }
 0x105   : > { %p237_p9 = scmp.ne.s32.totalorder %s5000_s24, %s5001_s14  ;;  %p243_p1 = scmp.ne.s32.totalorder %s5001_s14, %s5002_s26 }
 0x106   : > { %s2454_s11 = sshll.u32 %s722_s3, 3  ;;  %s721_s24 = scalar_lea.sflag [#allocation12], %s4132_s22 }
 0x107   : > { %p239_p6 = por %p237_p9, %p5004_p2  ;;  %p4356_p12 = por %p243_p1, %p5005_p11 }
 0x108   : > { %s732_s20 = scalar_lea.hbm %s5007_s12, %s2455_s19  ;;  %s724_s10 = scalar_lea.vmem [#allocation11], %s2454_s11 }
 0x109   : > { %s5006_s6 = scalar_select %p4356_p12, 1, 0 }
 0x10a   : > { %s734_s0 = sshll.u32 %s724_s10, 4  ;;  %p4366_p5 = pnand %p5008_p13, %p239_p6  ;;  %s735_s0 = int_to_ptr.vmem [resolvable:$true] %s734_s0 }
 0x10b   : > { %s3429_s14 = scalar_lea.vmem %s735_s0, 128  ;;  %s3817_s9 = smov [#allocation11]  }
 0x10c   : > { %p3418_p7 = pneg %p4366_p5  ;;  %p3430_p10 = scmp.ne.s32.totalorder %s735_s0, %s3429_s14 }
 0x10d   : > { %s3434_s26 = sshll.u32 %s3817_s9, 4  ;;  %s3435_s26 = int_to_ptr.vmem [resolvable:$false] %s3434_s26 }
 0x10e   : > { %p3432_p9 = pnand %p3430_p10, %p3418_p7  ;;  %s3436_s12 = scalar_lea.vmem %s3435_s26, 256 }
 0x10f   : > { %p3437_p2 = scmp.lt.s32.totalorder %s735_s0, %s3435_s26  ;;  %p3438_p11 = scmp.lt.s32.totalorder %s3436_s12, %s3429_s14 }
 0x110   : > { %p3433_p1 = pneg %p3432_p9 }
 0x111   : > { %p3439_p12 = por %p3438_p11, %p3437_p2 }
 0x113   : > { %p3440_p6 = pnand %p3439_p12, %p3433_p1 }
 0x115   : > { %3443 = shalt.err (!%p3440_p6)
}
 0x116   : > { %2879 = dma.hbm_to_vmem [thread:$0]  (!%p4366_p5), %s732_s20, 128, %s735_s0, %s721_s24  }
 0x117   : > { %743 = sbr.rel (%p4036_p3) target bundleno = 2189 (0x88d), region = 72  ;;  %s5011_s22 = sld [smem:[#allocation51_spill]] (!%p4036_p3) }
 0x11d   : > { %s745_s3 = sand.u32 1, %s5011_s22  }
 0x11e   : > { %s4378_s11 = sshll.u32 %s745_s3, 3  ;;  %s746_s19 = scalar_lea.sflag [#allocation3], %s745_s3 }
 0x11f   : > { %s749_s17 = scalar_lea.vmem [#allocation2], %s4378_s11 }
 0x120   : > { %3667 = dma.done.wait (%p4238_p4), %s746_s19, 128  }
 0x121   : > { %3669 = vsyncadd (%p4238_p4), %s746_s19, 4294967168  ;;  %s5012_s25 = sld [smem:[#allocation48_spill]]  ;;  %s4386_s10 = sand.u32 1, %s4031_s5  }
 0x122   : > { %s755_s24 = scalar_lea.sflag [#allocation6], %s4386_s10 }
 0x127   : > { %s4894_s0 = sand.u32 1, %s5012_s25  }
 0x128   : > { %s4391_s2 = sshll.u32 %s4894_s0, 3 }
 0x129   : > { %s758_s14 = scalar_lea.vmem [#allocation5], %s4391_s2 }
 0x12a   : > { %3671 = dma.done.wait (%p4103_p8), %s755_s24, 128  }
 0x12b   : > { %3673 = vsyncadd (%p4103_p8), %s755_s24, 4294967168  ;;  %s5014_s8 = sld [smem:[#allocation45_spill]]  ;;  %p5015_p3 = scmp.ne.s32.totalorder %s4982_s23, 0 }
 0x131   : > { %s765_s9 = sand.u32 1, %s5014_s8  }
 0x132   : > { %s4400_s26 = sshll.u32 %s765_s9, 3 }
 0x133   : > { %s767_s12 = scalar_lea.vmem [#allocation7], %s4400_s26 }
 0x134   : > { %3675 = dma.done.wait (%p5015_p3), %s755_s24, 128  }
 0x135   : > { %3677 = vsyncadd (%p5015_p3), %s755_s24, 4294967168  ;;  %s774_s16 = sand.u32 1, %s3744_s30   ;;  %s773_s3 = scalar_lea.sflag [#allocation9], %s4386_s10 }
 0x136   : > { %s4408_s22 = sshll.u32 %s774_s16, 3  ;;  %p5016_p8 = scmp.ne.s32.totalorder %s4957_s4, 0 }
 0x138   : > { %3679 = dma.done.wait (%p5016_p8), %s773_s3, 128  }
 0x139   : > { %3681 = vsyncadd (%p5016_p8), %s773_s3, 4294967168  ;;  %s5017_s20 = sld [smem:[#allocation42_spill]] }
 0x13f   : > { %s783_s8 = sand.u32 1, %s5017_s20  }
 0x140   : > { %s4417_s9 = sshll.u32 %s783_s8, 3 }
 0x141   : > { %s785_s23 = scalar_lea.vmem [#allocation10], %s4417_s9 }
 0x142   : > { %3683 = dma.done.wait (%p4322_p0), %s773_s3, 128  }
 0x143   : > { %3685 = vsyncadd (%p4322_p0), %s773_s3, 4294967168  ;;  %s5018_s24 = sld [smem:[#allocation39_spill]]  ;;  %s791_s4 = scalar_lea.sflag [#allocation12], %s4386_s10 }
 0x144   : > { %p5019_p4 = scmp.ne.s32.totalorder %s5006_s6, 0 }
 0x149   : > { %s792_s16 = sand.u32 1, %s5018_s24  }
 0x14a   : > { %s4425_s0 = sshll.u32 %s792_s16, 3 }
 0x14b   : > { %s794_s19 = scalar_lea.vmem [#allocation11], %s4425_s0 }
 0x14c   : > { %3687 = dma.done.wait (%p5019_p4), %s791_s4, 128  }
 0x14d   : > { %3689 = vsyncadd (%p5019_p4), %s791_s4, 4294967168  ;;  %p5020_p12 = scmp.eq.s32.totalorder %s4031_s5, 0 }
 0x14f   : > { %3691 = dma.done.wait (%p5020_p12), [#allocation12], 256   ;;  %p5021_p13 = pmov %p5020_p12 }
 0x150   : > { %p5022_p0 = pmov %p5020_p12 }
 0x151   : > { %3693 = vsyncadd (%p5021_p13), [#allocation12], 4294967040 }
 0x152   : > { %3695 = dma.done.wait (%p5022_p0), [#allocation15], 6144   ;;  %p5023_p5 = pmov %p5022_p0 }
 0x153   : > { %p5024_p7 = pmov %p5022_p0 }
 0x154   : > { %3697 = vsyncadd (%p5023_p5), [#allocation15], 4294961152 }
 0x155   : > { %3699 = dma.done.wait (%p5024_p7), [#allocation18], 1024   ;;  %p5025_p10 = pmov %p5022_p0 }
 0x156   : > { %v3098_v0 = vld [vmem:[#allocation13 + $0x8] sm:$0xff]   ;;  %v3099_v1 = vld [vmem:[#allocation13] sm:$0xff]   ;;  %v920_v3 = vld [vmem:[%s758_s14] sm:$0xff]  ;;  %vm948_vm0 = vcmask 261120   ;;  %v932_v7 = vlaneseq  ;;  %s5026_s6 = sld [smem:[#allocation74_spill]]  ;;  %s5027_s11 = scalar_lea.vmem [#allocation8], %s4408_s22 }
 0x157   : > { %3701 = vsyncadd (%p5025_p10), [#allocation18], 4294966272  ;;  %2654 = vmatprep.subr.bf16.mxu0 %v3098_v0  ;;  %v919_v2 = vld [vmem:[%s749_s17] sm:$0xff]  ;;  %v924_v15 = vld [vmem:[%s794_s19] sm:$0xff]  ;;  %s5028_s17 = sld [smem:[#allocation53_spill]]  ;;  %vm3819_vm13 = vmmov 0  }
 0x158   : > { %2655 = vmatpush3.bf16.msra.mxu0 %v3098_v0  ;;  %v926_v4 = vpack.c.bf16 %v920_v3, %v919_v2  ;;  %v921_v5 = vld [vmem:[%s767_s12] sm:$0xff]  ;;  %v4451_v8 = vshrl.u32 %v932_v7, 7  ;;  %v922_v19 = vld [vmem:[%s5027_s11] sm:$0xff]  ;;  %s5029_s22 = sld [smem:[#allocation76_spill]]  ;;  %vm1473_vm14 = vcmask 1040384   ;;  %s877_s3 = scalar_lea.vmem [#allocation19], %s4391_s2 }
 0x159   : > { %2656 = vmatprep.subr.bf16.mxu0 %v3099_v1  ;;  %v927_v6 = vpack.c.bf16 %v921_v5, %v921_v5  ;;  %v923_v25 = vld [vmem:[%s785_s23] sm:$0xff]  ;;  %v3103_v43 = vld [vmem:[#allocation14 + $0x68] sm:$0xff]   ;;  %v3105_v45 = vld [vmem:[#allocation14 + $0x60] sm:$0xff]   ;;  %s884_s19 = scalar_lea.vmem [#allocation20], %s4391_s2  ;;  %s5030_s9 = sld [smem:[#allocation79_spill]] }
 0x15a   : > { %2658 = vmatprep.mubr.msk.bf16.mxu0 %vm948_vm0, %v926_v4  ;;  %v934_v9 = vsub.s32 0, %v4451_v8  ;;  %v3100_v40 = vld [vmem:[#allocation14 + $0x78] sm:$0xff]   ;;  %v3101_v41 = vld [vmem:[#allocation14 + $0x70] sm:$0xff]   ;;  %v3106_v46 = vld [vmem:[#allocation14 + $0x28] sm:$0xff]   ;;  %vm1084_vm1 = vcmp.lt.s32.totalorder %v4451_v8, 1  ;;  %vm1100_vm4 = vcmp.lt.s32.totalorder %v4451_v8, 7 }
 0x15b   : > { %2662 = vmatprep.subr.bf16.mxu1 %v3100_v40  ;;  %v3102_v42 = vld [vmem:[#allocation14 + $0x38] sm:$0xff]   ;;  %v3104_v44 = vld [vmem:[#allocation14 + $0x30] sm:$0xff]   ;;  %v3108_v48 = vld [vmem:[#allocation14 + $0x20] sm:$0xff]   ;;  %s5031_s23 = sld [smem:[#allocation54_spill]]  ;;  %s891_s24 = scalar_lea.vmem [#allocation22], %s4391_s2 }
 0x15c   : > { %2657 = vmatpush3.bf16.msra.mxu0 %v3099_v1  ;;  %v4457_v10 = vld [vmem:[%s5026_s6] sm:$0xff]  ;;  %2663 = vmatpush3.bf16.msra.mxu1 %v3100_v40  ;;  %v3107_v47 = vld [vmem:[#allocation14 + $0x58] sm:$0xff]   ;;  %v3111_v51 = vld [vmem:[#allocation14 + $0x48] sm:$0xff]   ;;  %s5032_s16 = sld [smem:[#allocation63_spill]]  ;;  %s2019_s5 = sshll.u32 %s884_s19, 4  ;;  %s2020_s5 = int_to_ptr.vmem [resolvable:$true] %s2019_s5 }
 0x15d   : > { %v935_v11 = vrot.slane %v4457_v10, %v934_v9  ;;  %2664 = vmatprep.subr.bf16.mxu1 %v3101_v41  ;;  %2682 = vmatprep.subr.bf16.mxu0 %v3102_v42  ;;  %v3109_v49 = vld [vmem:[#allocation14 + $0x50] sm:$0xff]   ;;  %v3110_v50 = vld [vmem:[#allocation14 + $0x18] sm:$0xff]   ;;  %v3113_v53 = vld [vmem:[#allocation14 + $0x40] sm:$0xff]   ;;  %s2476_s0 = sshll.u32 %s5028_s17, 3  ;;  %s1974_s12 = scalar_lea.sflag [#allocation21], %s4386_s10 }
 0x15e   : > { %v3112_v52 = vld [vmem:[#allocation14 + $0x10] sm:$0xff]   ;;  %v3114_v54 = vld [vmem:[#allocation14 + $0x8] sm:$0xff]   ;;  %v3115_v55 = vld [vmem:[#allocation14] sm:$0xff]   ;;  %s2477_s14 = sadd.s32 4294967288, %s2476_s0  ;;  %s3820_s20 = smov [#allocation20]  }
 0x15f   : > { %2659 = vmatmul.mubr.msk.bf16.vlgmr.msra.gmra.mxu0 %vm948_vm0, %v927_v6  ;;  %v4491_v56 = vld [vmem:[#allocation14 + $0xb8] sm:$0xff]   ;;  %vm1480_vm0 = vcmask 1046528  }
 0x160   : > { %2665 = vmatpush3.bf16.msra.mxu1 %v3101_v41  ;;  %2683 = vmatpush3.bf16.msra.mxu0 %v3102_v42 }
 0x161   : > { %2666 = vmatprep.subr.bf16.mxu1 %v3103_v43  ;;  %2684 = vmatprep.subr.bf16.mxu0 %v3104_v44  ;;  %s2805_s4 = smul.u32 3, %s5031_s23 }
 0x162   : > { %p5035_p1 = scmp.ne.s32.totalorder %s5032_s16, 0 }
 0x163   : > { %s2000_s27 = sadd.s32 %s5028_s17, %s2805_s4 }
 0x164   : > { %2667 = vmatpush3.bf16.msra.mxu1 %v3103_v43  ;;  %2685 = vmatpush3.bf16.msra.mxu0 %v3104_v44  ;;  %s4610_s6 = sshll.u32 %s2000_s27, 7 }
 0x165   : > { %2668 = vmatprep.subr.bf16.mxu1 %v3105_v45  ;;  %2686 = vmatprep.subr.bf16.mxu0 %v3106_v46 }
 0x168   : > { %2669 = vmatpush3.bf16.msra.mxu1 %v3105_v45  ;;  %2687 = vmatpush3.bf16.msra.mxu0 %v3106_v46 }
 0x169   : > { %2670 = vmatprep.subr.bf16.mxu1 %v3107_v47  ;;  %2688 = vmatprep.subr.bf16.mxu0 %v3108_v48 }
 0x16c   : > { %2671 = vmatpush3.bf16.msra.mxu1 %v3107_v47  ;;  %2689 = vmatpush3.bf16.msra.mxu0 %v3108_v48 }
 0x16d   : > { %2672 = vmatprep.subr.bf16.mxu1 %v3109_v49  ;;  %2690 = vmatprep.subr.bf16.mxu0 %v3110_v50 }
 0x170   : > { %2673 = vmatpush3.bf16.msra.mxu1 %v3109_v49  ;;  %2691 = vmatpush3.bf16.msra.mxu0 %v3110_v50  ;;  %v3117_v50 = vld [vmem:[#allocation14 + $0xb0] sm:$0xff]  }
 0x171   : > { %2674 = vmatprep.subr.bf16.mxu1 %v3111_v51  ;;  %2692 = vmatprep.subr.bf16.mxu0 %v3112_v52 }
 0x174   : > { %2675 = vmatpush3.bf16.msra.mxu1 %v3111_v51  ;;  %2693 = vmatpush3.bf16.msra.mxu0 %v3112_v52 }
 0x175   : > { %2676 = vmatprep.subr.bf16.mxu1 %v3113_v53  ;;  %2694 = vmatprep.subr.bf16.mxu0 %v3114_v54 }
 0x178   : > { %2677 = vmatpush3.bf16.msra.mxu1 %v3113_v53  ;;  %2695 = vmatpush3.bf16.msra.mxu0 %v3114_v54  ;;  %v3118_v54 = vld [vmem:[#allocation14 + $0xa8] sm:$0xff]  }
 0x179   : > { %2696 = vmatprep.subr.bf16.mxu0 %v3115_v55  ;;  %2702 = vmatprep.subr.bf16.mxu1 %v4491_v56 }
 0x17c   : > { %2697 = vmatpush3.bf16.msra.mxu0 %v3115_v55  ;;  %v3119_v55 = vld [vmem:[#allocation14 + $0xa0] sm:$0xff]  }
 0x21f   : > { %v2660_v12 = vpop.f32.mrf.mxu0 }
 0x220   : > { %v998_v13 = vadd.f32 %v2660_v12, %v935_v11 }
 0x221   : > { %v989_v14 = vpop.f32.mrf.mxu0 }
 0x222   : > { %v1005_v16 = vmax.f32 %v998_v13, 0.0  ;;  %v990_v17 = vadd.f32 %v989_v14, %v935_v11  ;;  %v1069_v13 = vsub.s32 1, %v4451_v8  ;;  %v1076_v14 = vsub.s32 2, %v4451_v8 }
 0x223   : > { %v2661_v18 = vpop.f32.mrf.mxu0 }
 0x224   : > { %v1003_v20 = vmax.f32 %v990_v17, 0.0  ;;  %v1008_v21 = vadd.f32 %v1005_v16, %v924_v15  ;;  %v1070_v15 = vrot.slane %v4457_v10, %v1069_v13  ;;  %v1011_v18 = vadd.s32 8, %v4451_v8  ;;  %v3137_v13 = vld [vmem:[#allocation16 + $0x40] sm:$0xff]  }
 0x225   : > { %v992_v22 = vpop.f32.mrf.mxu0 }
 0x226   : > { %v993_v23 = vadd.f32 %v992_v22, %v935_v11  ;;  %1029 = vadd.xlane.f32.xlu1 %v1008_v21  ;;  %v1006_v24 = vadd.f32 %v1003_v20, %v922_v19  ;;  %v1077_v19 = vrot.slane %v4457_v10, %v1076_v14  ;;  %v1015_v20 = vstv %s2477_s14  ;;  %v3138_v14 = vld [vmem:[#allocation16 + $0x8] sm:$0xff]   ;;  %s5033_s14 = sld [smem:[#allocation81_spill]] }
 0x228   : > { %v1004_v26 = vmax.f32 %v993_v23, 0.0  ;;  %1025 = vadd.xlane.f32.xlu0 %v1006_v24  ;;  %v1012_v23 = vadd.s32 16, %v4451_v8 }
 0x22a   : > { %v4466_v27 = vadd.f32 %v1004_v26, %v923_v25  ;;  %v1016_v26 = vadd.s32 %v1015_v20, %v4451_v8 }
 0x22c   : > { %1027 = vadd.xlane.f32.xlu0 %v4466_v27  ;;  %vm2578_vm3 = vcmp.ne.s32.totalorder %v1016_v26, 0  ;;  %vm2579_vm6 = vcmp.ne.s32.totalorder %v1016_v26, 23  ;;  %s5034_s8 = smov %s5033_s14  ;;  %s2017_s26 = scalar_lea.hbm %s5033_s14, %s4610_s6 }
 0x2af   : > { %v1030_v28 = vpop.xlane.xlu1 %1029 }
 0x2b0   : > { %v4469_v30 = vmul.f32 0.03125, %v1030_v28  ;;  %v4510_v28 = vadd.s32 %v1015_v20, %v1011_v18 }
 0x2b1   : > { %v1026_v29 = vpop.xlane.xlu0 %1025 }
 0x2b2   : > { %v4471_v31 = vmul.f32 0.03125, %v1026_v29  ;;  %v4481_v36 = vsub.f32 %v1008_v21, %v4469_v30  ;;  %v1048_v59 = vmul.f32 96.0, %v4469_v30  ;;  %vm2580_vm2 = vcmp.ne.s32.totalorder %v4510_v28, 0 }
 0x2b3   : > { %vm2582_vm5 = vcmp.ne.s32.totalorder %v4510_v28, 23  ;;  %vm2496_vm8 = vmpackc.low %vm2580_vm2, %vm2578_vm3 }
 0x2b4   : > { %v4474_v32 = vsub.f32 %v1006_v24, %v4471_v31  ;;  %v1039_v38 = vmul.f32 %v4481_v36, %v4481_v36  ;;  %v1046_v57 = vmul.f32 96.0, %v4471_v31  ;;  %v1051_v0 = vmul.f32 %v1048_v59, %v4469_v30  ;;  %vm2514_vm9 = vmpackc.low %vm2582_vm5, %vm2579_vm6  ;;  %v3122_v59 = vld [vmem:[#allocation14 + $0x88] sm:$0xff]  }
 0x2b5   : > { %v1028_v33 = vpop.xlane.xlu0 %1027  ;;  %vm2541_vm15 = vmpackc.low %vm2580_vm2, %vm2580_vm2 }
 0x2b6   : > { %v4476_v34 = vmul.f32 0.03125, %v1028_v33  ;;  %v1037_v35 = vmul.f32 %v4474_v32, %v4474_v32  ;;  %v1049_v58 = vmul.f32 %v1046_v57, %v4471_v31  ;;  %v1018_v33 = vadd.s32 %v1015_v20, %v1012_v23  ;;  %v3120_v57 = vld [vmem:[#allocation14 + $0x98] sm:$0xff]  }
 0x2b8   : > { %1040 = vadd.xlane.f32.xlu1 %v1037_v35  ;;  %v4485_v37 = vsub.f32 %v4466_v27, %v4476_v34  ;;  %v1047_v60 = vmul.f32 96.0, %v4476_v34  ;;  %vm2581_vm7 = vcmp.ne.s32.totalorder %v1018_v33, 0  ;;  %vm2583_vm11 = vcmp.ne.s32.totalorder %v1018_v33, 23 }
 0x2b9   : > { %vm2501_vm10 = vmpackc.low %vm2581_vm7, %vm2581_vm7 }
 0x2ba   : > { %v1038_v39 = vmul.f32 %v4485_v37, %v4485_v37  ;;  %v1050_v1 = vmul.f32 %v1047_v60, %v4476_v34  ;;  %vm2519_vm12 = vmpackc.low %vm2583_vm11, %vm2583_vm11 }
 0x2bc   : > { %1044 = vadd.xlane.f32.xlu1 %v1039_v38  ;;  %1042 = vadd.xlane.f32.xlu0 %v1038_v39 }
 0x341   : > { %v1041_v61 = vpop.xlane.xlu1 %1040 }
 0x342   : > { %v1052_v62 = vsub.f32 %v1041_v61, %v1049_v58  ;;  %v3121_v58 = vld [vmem:[#allocation14 + $0x90] sm:$0xff]   ;;  %v3124_v61 = vld [vmem:[#allocation16 + $0x78] sm:$0xff]  }
 0x344   : > { %v1055_v63 = vmul.f32 0.03125, %v1052_v62  ;;  %v3126_v62 = vld [vmem:[#allocation16 + $0x38] sm:$0xff]  }
 0x345   : > { %v1045_v2 = vpop.xlane.xlu1 %1044  ;;  %v1043_v3 = vpop.xlane.xlu0 %1042 }
 0x346   : > { %v1058_v4 = vadd.f32 1e-06, %v1055_v63  ;;  %v1054_v5 = vsub.f32 %v1045_v2, %v1051_v0  ;;  %v1053_v6 = vsub.f32 %v1043_v3, %v1050_v1  ;;  %v3818_v63 = vmov 0.0   ;;  %v3125_v0 = vld [vmem:[#allocation16 + $0x70] sm:$0xff]   ;;  %v3127_v2 = vld [vmem:[#allocation16 + $0x68] sm:$0xff]  }
 0x347   : > { %2722 = vmatprep.subr.bf16.mxu0 %v3818_v63  ;;  %v3128_v1 = vld [vmem:[#allocation16 + $0x30] sm:$0xff]   ;;  %v3130_v3 = vld [vmem:[#allocation16 + $0x28] sm:$0xff]  }
 0x348   : > { %3156 = vrsqrt.f32 %v1058_v4  ;;  %v1057_v7 = vmul.f32 0.03125, %v1054_v5  ;;  %v1056_v9 = vmul.f32 0.03125, %v1053_v6  ;;  %v3129_v4 = vld [vmem:[#allocation16 + $0x60] sm:$0xff]   ;;  %v3131_v6 = vld [vmem:[#allocation16 + $0x58] sm:$0xff]  }
 0x349   : > { %v3132_v5 = vld [vmem:[#allocation16 + $0x20] sm:$0xff]  }
 0x34a   : > { %v1060_v11 = vadd.f32 1e-06, %v1057_v7  ;;  %v1059_v12 = vadd.f32 1e-06, %v1056_v9  ;;  %v3133_v7 = vld [vmem:[#allocation16 + $0x50] sm:$0xff]   ;;  %v3134_v9 = vld [vmem:[#allocation16 + $0x18] sm:$0xff]  }
 0x34c   : > { %3158 = vrsqrt.f32 %v1060_v11  ;;  %v3135_v11 = vld [vmem:[#allocation16 + $0x48] sm:$0xff]  }
 0x34d   : > { %3160 = vrsqrt.f32 %v1059_v12  ;;  %v3136_v12 = vld [vmem:[#allocation16 + $0x10] sm:$0xff]  }
 0x355   : > { %v3157_v16 = vpop.eup %3156 }
 0x356   : > { %v1064_v17 = vmul.f32 %v3157_v16, %v4474_v32 }
 0x358   : > { %v1071_v21 = vmul.f32 %v1070_v15, %v1064_v17 }
 0x359   : > { %v3159_v22 = vpop.eup %3158 }
 0x35a   : > { %v3161_v24 = vpop.eup %3160  ;;  %v1066_v25 = vmul.f32 %v3159_v22, %v4481_v36  ;;  %v1078_v30 = vadd.f32 %v1077_v19, %v1071_v21 }
 0x35b   : > { %v1065_v29 = vmul.f32 %v3161_v24, %v4485_v37 }
 0x35c   : > { %v1073_v31 = vmul.f32 %v1070_v15, %v1066_v25  ;;  %v1081_v36 = vrot.slane %v1078_v30, 7  ;;  %v1097_v38 = vrot.slane %v1078_v30, 1 }
 0x35d   : > { %v1072_v32 = vmul.f32 %v1070_v15, %v1065_v29  ;;  %v3139_v15 = vld [vmem:[#allocation16] sm:$0xff]  }
 0x35e   : > { %v1080_v34 = vadd.f32 %v1077_v19, %v1073_v31 }
 0x35f   : > { %v1079_v35 = vadd.f32 %v1077_v19, %v1072_v32 }
 0x360   : > { %v1132_v39 = vpack.c.bf16 %v1080_v34, %v1080_v34  ;;  %v1083_v37 = vrot.slane %v1080_v34, 7  ;;  %v1099_v40 = vrot.slane %v1080_v34, 1 }
 0x361   : > { %v1082_v41 = vrot.slane %v1079_v35, 7  ;;  %v1098_v42 = vrot.slane %v1079_v35, 1  ;;  %v1131_v43 = vpack.c.bf16 %v1079_v35, %v1078_v30  ;;  %v2522_v30 = vld [vmem:[%s5029_s22] ss:$0 sm:$0xff]  ;;  %s3444_s22 = scalar_lea.vmem %s2020_s5, 128 }
 0x362   : > { %v1087_v44 = vsel %vm1084_vm1, %v1083_v37, %v1081_v36  ;;  %v1103_v45 = vsel %vm1100_vm4, %v1099_v40, %v1097_v38  ;;  %p3445_p9 = scmp.ne.s32.totalorder %s2020_s5, %s3444_s22 }
 0x363   : > { %2678 = vmatprep.mubr.bf16.mxu1 %v1131_v43  ;;  %v1086_v46 = vsel %vm1084_vm1, %v1081_v36, %v1082_v41  ;;  %v1101_v47 = vsel %vm1100_vm4, %v1098_v42, %v1099_v40  ;;  %v1102_v48 = vsel %vm1100_vm4, %v1097_v38, %v1098_v42  ;;  %v1085_v49 = vsel %vm1084_vm1, %v1082_v41, %v1083_v37  ;;  %v3140_v37 = vld [vmem:[#allocation16 + $0xb8] sm:$0xff]   ;;  %vm2554_vm1 = vmpackc.low %vm2582_vm5, %vm2582_vm5 }
 0x364   : > { %2679 = vmatmul.mubr.bf16.vlgmr.msra.gmra.mxu1 %v1132_v39  ;;  %v2497_v51 = vpack.c.bf16 %v1086_v46, %v1087_v44  ;;  %v2515_v52 = vpack.c.bf16 %v1101_v47, %v1102_v48  ;;  %v2502_v53 = vpack.c.bf16 %v1085_v49, %v1085_v49  ;;  %v2520_v60 = vpack.c.bf16 %v1103_v45, %v1103_v45  ;;  %v3141_v45 = vld [vmem:[#allocation16 + $0xb0] sm:$0xff]   ;;  %v3142_v46 = vld [vmem:[#allocation16 + $0xa8] sm:$0xff]   ;;  %v3143_v47 = vld [vmem:[#allocation16 + $0xa0] sm:$0xff]   ;;  %p3446_p2 = pnand %p3445_p9, %p5035_p1 }
 0x365   : > { %2703 = vmatpush3.bf16.msra.mxu1 %v4491_v56  ;;  %v3123_v56 = vld [vmem:[#allocation14 + $0x80] sm:$0xff]  }
 0x366   : > { %2698 = vmatprep.mubr.msk.bf16.mxu0 %vm2496_vm8, %v2497_v51  ;;  %2718 = vmatprep.mubr.msk.bf16.mxu1 %vm2514_vm9, %v2515_v52  ;;  %v3145_v52 = vld [vmem:[#allocation16 + $0x90] sm:$0xff]   ;;  %p3447_p11 = pneg %p3446_p2 }
 0x367   : > { %2699 = vmatmul.mubr.msk.bf16.vlgmr.msra.gmra.mxu0 %vm2501_vm10, %v2502_v53  ;;  %2704 = vmatprep.subr.bf16.mxu1 %v3117_v50 }
 0x368   : > { %2723 = vmatpush3.bf16.msra.mxu0 %v3124_v61  ;;  %2738 = vmatprep.mubr.msk.bf16.mxu0 %vm3819_vm13, %v3818_v63 }
 0x369   : > { %2705 = vmatpush3.bf16.msra.mxu1 %v3117_v50  ;;  %2724 = vmatprep.subr.bf16.mxu0 %v3818_v63  ;;  %v3144_v50 = vld [vmem:[#allocation16 + $0x98] sm:$0xff]  }
 0x36a   : > { %2706 = vmatprep.subr.bf16.mxu1 %v3118_v54 }
 0x36c   : > { %2725 = vmatpush3.bf16.msra.mxu0 %v3125_v0 }
 0x36d   : > { %2707 = vmatpush3.bf16.msra.mxu1 %v3118_v54  ;;  %2726 = vmatprep.subr.bf16.mxu0 %v3818_v63  ;;  %v3146_v54 = vld [vmem:[#allocation16 + $0x88] sm:$0xff]  }
 0x36e   : > { %2708 = vmatprep.subr.bf16.mxu1 %v3119_v55 }
 0x370   : > { %2727 = vmatpush3.bf16.msra.mxu0 %v3127_v2 }
 0x371   : > { %2709 = vmatpush3.bf16.msra.mxu1 %v3119_v55  ;;  %2728 = vmatprep.subr.bf16.mxu0 %v3818_v63 }
 0x372   : > { %2710 = vmatprep.subr.bf16.mxu1 %v3120_v57 }
 0x374   : > { %2729 = vmatpush3.bf16.msra.mxu0 %v3129_v4 }
 0x375   : > { %2711 = vmatpush3.bf16.msra.mxu1 %v3120_v57  ;;  %2730 = vmatprep.subr.bf16.mxu0 %v3818_v63 }
 0x376   : > { %2712 = vmatprep.subr.bf16.mxu1 %v3121_v58 }
 0x378   : > { %2731 = vmatpush3.bf16.msra.mxu0 %v3131_v6 }
 0x379   : > { %2713 = vmatpush3.bf16.msra.mxu1 %v3121_v58  ;;  %2732 = vmatprep.subr.bf16.mxu0 %v3818_v63  ;;  %v3147_v58 = vld [vmem:[#allocation16 + $0x80] sm:$0xff]  }
 0x37a   : > { %2714 = vmatprep.subr.bf16.mxu1 %v3122_v59 }
 0x37c   : > { %2733 = vmatpush3.bf16.msra.mxu0 %v3133_v7 }
 0x37d   : > { %2715 = vmatpush3.bf16.msra.mxu1 %v3122_v59  ;;  %2734 = vmatprep.subr.bf16.mxu0 %v3818_v63 }
 0x37e   : > { %2716 = vmatprep.subr.bf16.mxu1 %v3123_v56 }
 0x380   : > { %2735 = vmatpush3.bf16.msra.mxu0 %v3135_v11 }
 0x381   : > { %2717 = vmatpush3.bf16.msra.mxu1 %v3123_v56  ;;  %2736 = vmatprep.subr.bf16.mxu0 %v3818_v63 }
 0x382   : > { %2742 = vmatprep.subr.bf16.mxu1 %v3818_v63 }
 0x384   : > { %2719 = vmatmul.mubr.msk.bf16.vlgmr.msra.gmra.mxu1 %vm2519_vm12, %v2520_v60  ;;  %2737 = vmatpush3.bf16.msra.mxu0 %v3137_v13 }
 0x385   : > { %2743 = vmatpush3.bf16.msra.mxu1 %v3126_v62  ;;  %2762 = vmatprep.subr.bf16.mxu0 %v3818_v63 }
 0x386   : > { %2744 = vmatprep.subr.bf16.mxu1 %v3818_v63  ;;  %2758 = vmatprep.mubr.msk.bf16.mxu1 %vm3819_vm13, %v3818_v63 }
 0x389   : > { %2745 = vmatpush3.bf16.msra.mxu1 %v3128_v1 }
 0x38a   : > { %2746 = vmatprep.subr.bf16.mxu1 %v3818_v63 }
 0x38d   : > { %2747 = vmatpush3.bf16.msra.mxu1 %v3130_v3 }
 0x38e   : > { %2748 = vmatprep.subr.bf16.mxu1 %v3818_v63 }
 0x391   : > { %2749 = vmatpush3.bf16.msra.mxu1 %v3132_v5  ;;  %v1805_v5 = vsub.s32 3, %v4451_v8 }
 0x392   : > { %2750 = vmatprep.subr.bf16.mxu1 %v3818_v63 }
 0x393   : > { %v1806_v28 = vrot.slane %v4457_v10, %v1805_v5 }
 0x395   : > { %2751 = vmatpush3.bf16.msra.mxu1 %v3134_v9 }
 0x396   : > { %2752 = vmatprep.subr.bf16.mxu1 %v3818_v63 }
 0x399   : > { %2753 = vmatpush3.bf16.msra.mxu1 %v3136_v12 }
 0x39a   : > { %2754 = vmatprep.subr.bf16.mxu1 %v3818_v63 }
 0x39d   : > { %2755 = vmatpush3.bf16.msra.mxu1 %v3138_v14 }
 0x39e   : > { %2756 = vmatprep.subr.bf16.mxu1 %v3818_v63 }
 0x3a1   : > { %2757 = vmatpush3.bf16.msra.mxu1 %v3139_v15 }
 0x3a2   : > { %2782 = vmatprep.subr.bf16.mxu1 %v3818_v63 }
 0x424   : > { %v2680_v16 = vpop.f32.mrf.mxu1 }
 0x426   : > { %v1231_v17 = vpop.f32.mrf.mxu1 }
 0x427   : > { %v2700_v18 = vpop.f32.mrf.mxu0 }
 0x428   : > { %v2681_v19 = vpop.f32.mrf.mxu1  ;;  %v1336_v48 = vadd.f32 %v2700_v18, %v2680_v16  ;;  %v3148_v16 = vld [vmem:[#allocation17 + $0x38] sm:$0xff]  }
 0x429   : > { %v1327_v20 = vpop.f32.mrf.mxu0 }
 0x42a   : > { %v1234_v22 = vpop.f32.mrf.mxu1  ;;  %v1328_v24 = vadd.f32 %v1327_v20, %v1231_v17 }
 0x42b   : > { %v2701_v21 = vpop.f32.mrf.mxu0 }
 0x42c   : > { %v3149_v21 = vld [vmem:[#allocation17 + $0x30] sm:$0xff]  }
 0x42d   : > { %v1330_v25 = vpop.f32.mrf.mxu0 }
 0x42e   : > { %v1331_v32 = vadd.f32 %v1330_v25, %v1234_v22  ;;  %v3150_v22 = vld [vmem:[#allocation17 + $0x28] sm:$0xff]  }
 0x42f   : > { %v3154_v25 = vld [vmem:[#allocation17 + $0x8] sm:$0xff]  }
 0x444   : > { %v2720_v23 = vpop.f32.mrf.mxu1 }
 0x445   : > { %v1457_v49 = vadd.f32 %v2720_v23, %v1336_v48  ;;  %v3152_v23 = vld [vmem:[#allocation17 + $0x18] sm:$0xff]  }
 0x446   : > { %v1441_v26 = vpop.f32.mrf.mxu1 }
 0x447   : > { %v1455_v29 = vadd.f32 %v1441_v26, %v1328_v24  ;;  %v1467_v51 = vadd.f32 %v2522_v30, %v1457_v49  ;;  %v3153_v24 = vld [vmem:[#allocation17 + $0x10] sm:$0xff]   ;;  %v3155_v26 = vld [vmem:[#allocation17] sm:$0xff]  }
 0x448   : > { %v2721_v31 = vpop.f32.mrf.mxu1 }
 0x449   : > { %v1465_v33 = vadd.f32 %v2522_v30, %v1455_v29  ;;  %v1470_v53 = vmax.f32 %v1467_v51, 0.0 }
 0x44a   : > { %v1444_v34 = vpop.f32.mrf.mxu1 }
 0x44b   : > { %v1456_v35 = vadd.f32 %v1444_v34, %v1331_v32  ;;  %v1468_v36 = vmax.f32 %v1465_v33, 0.0  ;;  %v1482_v57 = vrot.slane %v1470_v53, 1 }
 0x44d   : > { %v1466_v38 = vadd.f32 %v2522_v30, %v1456_v35  ;;  %v1474_v40 = vrot.slane %v1468_v36, 7  ;;  %v1824_v35 = vsub.s32 4, %v4451_v8  ;;  %v1829_v36 = vsub.s32 5, %v4451_v8 }
 0x44f   : > { %v1469_v39 = vmax.f32 %v1466_v38, 0.0  ;;  %v1825_v38 = vrot.slane %v4457_v10, %v1824_v35 }
 0x451   : > { %v1475_v41 = vrot.slane %v1469_v39, 7  ;;  %v1503_v42 = vpack.c.bf16 %v1469_v39, %v1469_v39  ;;  %v1481_v55 = vrot.slane %v1469_v39, 1 }
 0x453   : > { %v1476_v43 = vsel %vm1473_vm14, %v1474_v40, %v1475_v41  ;;  %2739 = vmatmul.mubr.bf16.vlgmr.msra.gmra.mxu0 %v1503_v42  ;;  %v1483_v59 = vsel %vm1480_vm0, %v1481_v55, %v1482_v57 }
 0x454   : > { %2763 = vmatpush3.bf16.msra.mxu0 %v3140_v37  ;;  %v2542_v44 = vpack.c.bf16 %v1476_v43, %v1476_v43  ;;  %2778 = vmatprep.mubr.msk.bf16.mxu0 %vm3819_vm13, %v3818_v63  ;;  %v2555_v56 = vpack.c.bf16 %v1483_v59, %v1483_v59 }
 0x455   : > { %2764 = vmatprep.subr.bf16.mxu0 %v3818_v63 }
 0x456   : > { %2759 = vmatmul.mubr.msk.bf16.vlgmr.msra.gmra.mxu1 %vm2541_vm15, %v2542_v44 }
 0x457   : > { %2798 = vmatprep.mubr.msk.bf16.mxu1 %vm3819_vm13, %v3818_v63  ;;  %2783 = vmatpush3.bf16.msra.mxu1 %v3148_v16 }
 0x458   : > { %2765 = vmatpush3.bf16.msra.mxu0 %v3141_v45  ;;  %2784 = vmatprep.subr.bf16.mxu1 %v3818_v63 }
 0x459   : > { %2766 = vmatprep.subr.bf16.mxu0 %v3818_v63 }
 0x45b   : > { %2785 = vmatpush3.bf16.msra.mxu1 %v3149_v21 }
 0x45c   : > { %2767 = vmatpush3.bf16.msra.mxu0 %v3142_v46  ;;  %2786 = vmatprep.subr.bf16.mxu1 %v3818_v63 }
 0x45d   : > { %2768 = vmatprep.subr.bf16.mxu0 %v3818_v63 }
 0x45f   : > { %2787 = vmatpush3.bf16.msra.mxu1 %v3150_v22 }
 0x460   : > { %2769 = vmatpush3.bf16.msra.mxu0 %v3143_v47  ;;  %2788 = vmatprep.subr.bf16.mxu1 %v3818_v63 }
 0x461   : > { %2770 = vmatprep.subr.bf16.mxu0 %v3818_v63 }
 0x464   : > { %2771 = vmatpush3.bf16.msra.mxu0 %v3144_v50 }
 0x465   : > { %2772 = vmatprep.subr.bf16.mxu0 %v3818_v63 }
 0x468   : > { %2773 = vmatpush3.bf16.msra.mxu0 %v3145_v52 }
 0x469   : > { %2774 = vmatprep.subr.bf16.mxu0 %v3818_v63 }
 0x46c   : > { %2775 = vmatpush3.bf16.msra.mxu0 %v3146_v54 }
 0x46d   : > { %2776 = vmatprep.subr.bf16.mxu0 %v3818_v63 }
 0x470   : > { %2777 = vmatpush3.bf16.msra.mxu0 %v3147_v58 }
 0x473   : > { %2779 = vmatmul.mubr.msk.bf16.vlgmr.msra.gmra.mxu0 %vm2554_vm1, %v2555_v56 }
 0x513   : > { %v1602_v60 = vpop.f32.mrf.mxu0 }
 0x515   : > { %v2740_v61 = vpop.f32.mrf.mxu0 }
 0x516   : > { %v1690_v62 = vpop.f32.mrf.mxu1 }
 0x517   : > { %v1605_v0 = vpop.f32.mrf.mxu0  ;;  %v1691_v6 = vadd.f32 %v1690_v62, %v1602_v60 }
 0x518   : > { %v2760_v1 = vpop.f32.mrf.mxu1 }
 0x519   : > { %v2741_v2 = vpop.f32.mrf.mxu0 }
 0x51a   : > { %v1693_v3 = vpop.f32.mrf.mxu1 }
 0x51c   : > { %v2761_v4 = vpop.f32.mrf.mxu1 }
 0x533   : > { %v1795_v7 = vpop.f32.mrf.mxu0 }
 0x534   : > { %v1801_v9 = vadd.f32 %v1795_v7, %v1691_v6 }
 0x535   : > { %v2780_v11 = vpop.f32.mrf.mxu0 }
 0x536   : > { %v1802_v12 = vadd.f32 %v1801_v9, %v4466_v27  ;;  %v3151_v27 = vld [vmem:[#allocation17 + $0x20] sm:$0xff]  }
 0x537   : > { %v1798_v13 = vpop.f32.mrf.mxu0  ;;  %2789 = vmatpush3.bf16.msra.mxu1 %v3151_v27 }
 0x538   : > { %v1807_v14 = vadd.f32 %v1806_v28, %v1802_v12  ;;  %2790 = vmatprep.subr.bf16.mxu1 %v3818_v63 }
 0x539   : > { %v2781_v15 = vpop.f32.mrf.mxu0 }
 0x53a   : > { %1808 = vadd.xlane.f32.xlu0 %v1807_v14 }
 0x53b   : > { %2791 = vmatpush3.bf16.msra.mxu1 %v3152_v23 }
 0x53c   : > { %2792 = vmatprep.subr.bf16.mxu1 %v3818_v63 }
 0x53f   : > { %2793 = vmatpush3.bf16.msra.mxu1 %v3153_v24 }
 0x540   : > { %2794 = vmatprep.subr.bf16.mxu1 %v3818_v63 }
 0x543   : > { %2795 = vmatpush3.bf16.msra.mxu1 %v3154_v25 }
 0x544   : > { %2796 = vmatprep.subr.bf16.mxu1 %v3818_v63  ;;  %v1830_v63 = vrot.slane %v4457_v10, %v1829_v36  ;;  %v2557_v10 = vld [vmem:[%s5030_s9] ss:$0 sm:$0xff]  ;;  %s3448_s9 = sshll.u32 %s3820_s20, 4  ;;  %s3449_s9 = int_to_ptr.vmem [resolvable:$false] %s3448_s9 }
 0x545   : > { %s3450_s23 = scalar_lea.vmem %s3449_s9, 256  ;;  %p3451_p6 = scmp.lt.s32.totalorder %s2020_s5, %s3449_s9 }
 0x546   : > { %p3452_p3 = scmp.lt.s32.totalorder %s3450_s23, %s3444_s22 }
 0x547   : > { %2797 = vmatpush3.bf16.msra.mxu1 %v3155_v26 }
 0x548   : > { %p3453_p8 = por %p3452_p3, %p3451_p6 }
 0x54a   : > { %p3454_p4 = pnand %p3453_p8, %p3447_p11 }
 0x5c3   : > { %v1809_v17 = vpop.xlane.xlu0 %1808 }
 0x5c4   : > { %v1810_v18 = vmul.f32 0.03125, %v1809_v17 }
 0x5c6   : > { %v1811_v19 = vsub.f32 %v1807_v14, %v1810_v18  ;;  %v1815_v29 = vmul.f32 96.0, %v1810_v18 }
 0x5c8   : > { %v1812_v20 = vmul.f32 %v1811_v19, %v1811_v19  ;;  %v1816_v30 = vmul.f32 %v1815_v29, %v1810_v18 }
 0x5ca   : > { %1813 = vadd.xlane.f32.xlu1 %v1812_v20 }
 0x653   : > { %v1814_v31 = vpop.xlane.xlu1 %1813 }
 0x654   : > { %v1817_v32 = vsub.f32 %v1814_v31, %v1816_v30 }
 0x656   : > { %v1818_v33 = vmul.f32 0.03125, %v1817_v32 }
 0x658   : > { %v1819_v34 = vadd.f32 1e-06, %v1818_v33 }
 0x65a   : > { %3162 = vrsqrt.f32 %v1819_v34 }
 0x667   : > { %v3163_v39 = vpop.eup %3162 }
 0x668   : > { %v1821_v37 = vmul.f32 %v3163_v39, %v1811_v19 }
 0x66a   : > { %v1826_v40 = vmul.f32 %v1825_v38, %v1821_v37 }
 0x66c   : > { %v1831_v41 = vadd.f32 %v1830_v63, %v1826_v40 }
 0x66e   : > { %v1840_v42 = vpack.c.bf16 %v1831_v41, %v1831_v41  ;;  %v1833_v43 = vmul.f32 %v1831_v41, %v1831_v41  ;;  %1832 = vst [vmem:[%s877_s3] sm:$0xff] %v1831_v41 }
 0x670   : > { %2799 = vmatmul.mubr.bf16.vlgmr.msra.gmra.mxu1 %v1840_v42  ;;  %1834 = vadd.xlane.f32.xlu1 %v1833_v43 }
 0x6f9   : > { %v1835_v44 = vpop.xlane.xlu1 %1834 }
 0x6fa   : > { %v1836_v8 = vmax.f32 %v1835_v44, 1e-24 }
 0x6fc   : > { %3164 = vrsqrt.f32 %v1836_v8 }
 0x709   : > { %v3165_v45 = vpop.eup %3164 }
 0x70a   : > { %v1838_v46 = vmul.f32 %v3165_v45, %v1831_v41 }
 0x70c   : > { %1839 = vst [vmem:[%s884_s19] sm:$0xff] %v1838_v46 }
 0x730   : > { %v1946_v47 = vpop.f32.mrf.mxu1 }
 0x731   : > { %v1947_v48 = vadd.f32 %v2557_v10, %v1946_v47 }
 0x732   : > { %v2800_v49 = vpop.f32.mrf.mxu1 }
 0x733   : > { %1952 = vst [vmem:[%s891_s24] sm:$0xff] %v1947_v48  ;;  %1953 = vmax.xlane.f32.xlu0 %v1947_v48 }
 0x734   : > { %v1949_v50 = vpop.f32.mrf.mxu1 }
 0x736   : > { %v2801_v51 = vpop.f32.mrf.mxu1 }
 0x7bc   : > { %v1954_v52 = vpop.xlane.xlu0 %1953 }
 0x7bd   : > { %v4602_v53 = vsub.f32 %v1947_v48, %v1954_v52 }
 0x7bf   : > { %v1956_v54 = vmul.f32 1.442695, %v4602_v53 }
 0x7c1   : > { %3166 = vpow2.f32 %v1956_v54 }
 0x7ce   : > { %v4605_v55 = vpop.eup %3166 }
 0x7cf   : > { %1958 = vadd.xlane.f32.xlu0 %v4605_v55 }
 0x7d0   : > { %3457 = shalt.err (!%p3454_p4)
}
 0x7d1   : > { %s3458_s17 = scalar_lea.hbm %s2017_s26, 128  ;;  %s3462_s27 = scalar_lea.hbm %s5034_s8, 768 }
 0x7d2   : > { %p3459_p12 = scmp.ne.s32.totalorder %s2017_s26, %s3458_s17  ;;  %p3463_p5 = scmp.lt.s32.totalorder %s2017_s26, %s5034_s8 }
 0x7d3   : > { %p3464_p7 = scmp.lt.s32.totalorder %s3462_s27, %s3458_s17 }
 0x7d4   : > { %p3460_p13 = pnand %p3459_p12, %p5035_p1 }
 0x7d5   : > { %p3465_p10 = por %p3464_p7, %p3463_p5 }
 0x7d6   : > { %p3461_p0 = pneg %p3460_p13 }
 0x7d8   : > { %p3466_p9 = pnand %p3465_p10, %p3461_p0 }
 0x7da   : > { %3469 = shalt.err (!%p3466_p9)
}
 0x7db   : > { %2839 = dma.vmem_to_hbm [thread:$0]  (%p5035_p1), %s2020_s5, 128, %s2017_s26, %s1974_s12  }
 0x7dc   : > { %s4633_s14 = sshll.u32 %s891_s24, 4  ;;  %s5036_s9 = sld [smem:[#allocation80_spill]]  ;;  %s2035_s14 = int_to_ptr.vmem [resolvable:$true] %s4633_s14 }
 0x7dd   : > { %s2004_s17 = sshll.u32 %s877_s3, 4  ;;  %s5038_s11 = sld [smem:[#allocation82_spill]]  ;;  %s2005_s17 = int_to_ptr.vmem [resolvable:$true] %s2004_s17 }
 0x7de   : > { %s5039_s8 = sand.u32 1, %s5012_s25   ;;  %s3470_s28 = scalar_lea.vmem %s2005_s17, 128 }
 0x7df   : > { %s1969_s15 = scalar_lea.sflag [#allocation4], %s5039_s8  ;;  %p3471_p2 = scmp.ne.s32.totalorder %s2005_s17, %s3470_s28 }
 0x7e0   : > { %s3821_s24 = smov [#allocation19]  }
 0x7e1   : > { %p3472_p11 = pnand %p3471_p2, %p5035_p1  ;;  %s3474_s5 = sshll.u32 %s3821_s24, 4  ;;  %s3475_s5 = int_to_ptr.vmem [resolvable:$false] %s3474_s5 }
 0x7e2   : > { %s5037_s4 = smov %s5036_s9  ;;  %s4639_s23 = scalar_lea.hbm %s5036_s9, %s4610_s6 }
 0x7e3   : > { %s4647_s0 = scalar_lea.hbm %s5038_s11, %s4610_s6  ;;  %p3473_p6 = pneg %p3472_p11 }
 0x7e4   : > { %s3476_s26 = scalar_lea.vmem %s3475_s5, 256  ;;  %p3477_p3 = scmp.lt.s32.totalorder %s2005_s17, %s3475_s5 }
 0x7e5   : > { %p3478_p8 = scmp.lt.s32.totalorder %s3476_s26, %s3470_s28 }
 0x7e7   : > { %p3479_p4 = por %p3478_p8, %p3477_p3 }
 0x7e9   : > { %p3480_p12 = pnand %p3479_p4, %p3473_p6 }
 0x7eb   : > { %3483 = shalt.err (!%p3480_p12)
}
 0x7ec   : > { %s3484_s25 = scalar_lea.hbm %s4639_s23, 128  ;;  %s3488_s22 = scalar_lea.hbm %s5037_s4, 768 }
 0x7ed   : > { %p3485_p13 = scmp.ne.s32.totalorder %s4639_s23, %s3484_s25  ;;  %p3489_p7 = scmp.lt.s32.totalorder %s4639_s23, %s5037_s4 }
 0x7ee   : > { %p3490_p10 = scmp.lt.s32.totalorder %s3488_s22, %s3484_s25 }
 0x7ef   : > { %p3486_p0 = pnand %p3485_p13, %p5035_p1 }
 0x7f0   : > { %p3491_p9 = por %p3490_p10, %p3489_p7 }
 0x7f1   : > { %p3487_p5 = pneg %p3486_p0 }
 0x7f3   : > { %p3492_p2 = pnand %p3491_p9, %p3487_p5 }
 0x7f5   : > { %3495 = shalt.err (!%p3492_p2)
}
 0x7f6   : > { %2838 = dma.vmem_to_hbm [thread:$0]  (%p5035_p1), %s2005_s17, 128, %s4639_s23, %s1969_s15  }
 0x7f7   : > { %s3496_s28 = scalar_lea.vmem %s2035_s14, 128  ;;  %s3822_s19 = smov [#allocation22]  }
 0x7f8   : > { %p3497_p11 = scmp.ne.s32.totalorder %s2035_s14, %s3496_s28  ;;  %s3500_s27 = sshll.u32 %s3822_s19, 4  ;;  %s3501_s27 = int_to_ptr.vmem [resolvable:$false] %s3500_s27 }
 0x7f9   : > { %s3502_s24 = scalar_lea.vmem %s3501_s27, 256  ;;  %p3503_p8 = scmp.lt.s32.totalorder %s2035_s14, %s3501_s27 }
 0x7fa   : > { %p3498_p6 = pnand %p3497_p11, %p5035_p1  ;;  %p3504_p4 = scmp.lt.s32.totalorder %s3502_s24, %s3496_s28 }
 0x7fc   : > { %p3499_p3 = pneg %p3498_p6  ;;  %p3505_p12 = por %p3504_p4, %p3503_p8 }
 0x7fe   : > { %p3506_p13 = pnand %p3505_p12, %p3499_p3 }
 0x800   : > { %3509 = shalt.err (!%p3506_p13)
}
 0x801   : > { %s3510_s15 = scalar_lea.hbm %s4647_s0, 128  ;;  %s3514_s5 = scalar_lea.hbm %s5038_s11, 768 }
 0x802   : > { %p3511_p0 = scmp.ne.s32.totalorder %s4647_s0, %s3510_s15  ;;  %p3515_p10 = scmp.lt.s32.totalorder %s4647_s0, %s5038_s11 }
 0x803   : > { %p3516_p9 = scmp.lt.s32.totalorder %s3514_s5, %s3510_s15 }
 0x804   : > { %p3512_p5 = pnand %p3511_p0, %p5035_p1 }
 0x805   : > { %p3517_p2 = por %p3516_p9, %p3515_p10 }
 0x806   : > { %p3513_p7 = pneg %p3512_p5 }
 0x808   : > { %p3518_p11 = pnand %p3517_p2, %p3513_p7 }
 0x80a   : > { %3521 = shalt.err (!%p3518_p11)
}
 0x80b   : > { %2840 = dma.vmem_to_hbm [thread:$0]  (%p5035_p1), %s2035_s14, 128, %s4647_s0, %s1974_s12  }
 0x80c   : > { %s898_s3 = scalar_lea.vmem [#allocation23], %s4391_s2  ;;  %s905_s22 = scalar_lea.vmem [#allocation25], %s4391_s2 }
 0x80d   : > { %s2049_s8 = sshll.u32 %s898_s3, 4  ;;  %s2064_s20 = sshll.u32 %s905_s22, 4  ;;  %s4696_s8 = int_to_ptr.vmem [resolvable:$true] %s2049_s8  ;;  %s4704_s20 = int_to_ptr.vmem [resolvable:$true] %s2064_s20 }
 0x80e   : > { %s5040_s12 = sld [smem:[#allocation83_spill]]  ;;  %s1984_s24 = scalar_lea.sflag [#allocation24], %s4386_s10 }
 0x80f   : > { %s5042_s27 = sld [smem:[#allocation84_spill]]  ;;  %s3522_s15 = scalar_lea.vmem %s4696_s8, 128 }
 0x810   : > { %p3523_p6 = scmp.ne.s32.totalorder %s4696_s8, %s3522_s15  ;;  %s3823_s23 = smov [#allocation23]  }
 0x811   : > { %s3526_s17 = sshll.u32 %s3823_s23, 4  ;;  %s3527_s17 = int_to_ptr.vmem [resolvable:$false] %s3526_s17 }
 0x812   : > { %p3524_p3 = pnand %p3523_p6, %p5035_p1  ;;  %s3528_s26 = scalar_lea.vmem %s3527_s17, 256 }
 0x813   : > { %p3529_p4 = scmp.lt.s32.totalorder %s4696_s8, %s3527_s17  ;;  %p3530_p12 = scmp.lt.s32.totalorder %s3528_s26, %s3522_s15 }
 0x814   : > { %s5041_s5 = smov %s5040_s12  ;;  %s4694_s14 = scalar_lea.hbm %s5040_s12, %s4610_s6 }
 0x815   : > { %s5043_s4 = smov %s5042_s27  ;;  %s4702_s2 = scalar_lea.hbm %s5042_s27, %s4610_s6 }
 0x816   : > { %p3525_p8 = pneg %p3524_p3  ;;  %p3531_p13 = por %p3530_p12, %p3529_p4 }
 0x818   : > { %p3532_p0 = pnand %p3531_p13, %p3525_p8 }
 0x858   : > { %v1959_v57 = vpop.xlane.xlu0 %1958 }
 0x859   : > { %3168 = vlog2.f32 %v1959_v57 }
 0x85a   : > { %3170 = vrcp.f32 %v1959_v57 }
 0x866   : > { %v3169_v58 = vpop.eup %3168 }
 0x867   : > { %v3171_v59 = vpop.eup %3170  ;;  %v1961_v56 = vmul.f32 0.6931472, %v3169_v58 }
 0x868   : > { %v1966_v60 = vmul.f32 %v3171_v59, %v4605_v55 }
 0x869   : > { %v1962_v61 = vsub.f32 %v4602_v53, %v1961_v56 }
 0x86a   : > { %1967 = vst [vmem:[%s905_s22] sm:$0xff] %v1966_v60 }
 0x86b   : > { %1963 = vst [vmem:[%s898_s3] sm:$0xff] %v1962_v61 }
 0x86c   : > { %3535 = shalt.err (!%p3532_p0)
}
 0x86d   : > { %s3536_s6 = scalar_lea.hbm %s4694_s14, 128  ;;  %s3540_s22 = scalar_lea.hbm %s5041_s5, 768 }
 0x86e   : > { %p3537_p5 = scmp.ne.s32.totalorder %s4694_s14, %s3536_s6  ;;  %p3541_p9 = scmp.lt.s32.totalorder %s4694_s14, %s5041_s5 }
 0x86f   : > { %p3542_p2 = scmp.lt.s32.totalorder %s3540_s22, %s3536_s6 }
 0x870   : > { %p3538_p7 = pnand %p3537_p5, %p5035_p1 }
 0x871   : > { %p3543_p11 = por %p3542_p2, %p3541_p9 }
 0x872   : > { %p3539_p10 = pneg %p3538_p7 }
 0x874   : > { %p3544_p6 = pnand %p3543_p11, %p3539_p10 }
 0x876   : > { %3547 = shalt.err (!%p3544_p6)
}
 0x877   : > { %2841 = dma.vmem_to_hbm [thread:$0]  (%p5035_p1), %s4696_s8, 128, %s4694_s14, %s1984_s24  }
 0x878   : > { %s3548_s12 = scalar_lea.vmem %s4704_s20, 128  ;;  %s3824_s0 = smov [#allocation25]  }
 0x879   : > { %p3549_p3 = scmp.ne.s32.totalorder %s4704_s20, %s3548_s12  ;;  %s3552_s19 = sshll.u32 %s3824_s0, 4  ;;  %s3553_s19 = int_to_ptr.vmem [resolvable:$false] %s3552_s19 }
 0x87a   : > { %s3554_s27 = scalar_lea.vmem %s3553_s19, 256  ;;  %p3555_p12 = scmp.lt.s32.totalorder %s4704_s20, %s3553_s19 }
 0x87b   : > { %p3550_p8 = pnand %p3549_p3, %p5035_p1  ;;  %p3556_p13 = scmp.lt.s32.totalorder %s3554_s27, %s3548_s12 }
 0x87d   : > { %p3551_p4 = pneg %p3550_p8  ;;  %p3557_p0 = por %p3556_p13, %p3555_p12 }
 0x87f   : > { %p3558_p5 = pnand %p3557_p0, %p3551_p4 }
 0x881   : > { %3561 = shalt.err (!%p3558_p5)
}
 0x882   : > { %s3562_s15 = scalar_lea.hbm %s4702_s2, 128  ;;  %s3566_s23 = scalar_lea.hbm %s5043_s4, 768 }
 0x883   : > { %p3563_p7 = scmp.ne.s32.totalorder %s4702_s2, %s3562_s15  ;;  %p3567_p2 = scmp.lt.s32.totalorder %s4702_s2, %s5043_s4 }
 0x884   : > { %p3568_p11 = scmp.lt.s32.totalorder %s3566_s23, %s3562_s15 }
 0x885   : > { %p3564_p10 = pnand %p3563_p7, %p5035_p1 }
 0x886   : > { %p3569_p6 = por %p3568_p11, %p3567_p2 }
 0x887   : > { %p3565_p9 = pneg %p3564_p10 }
 0x889   : > { %p3570_p3 = pnand %p3569_p6, %p3565_p9 }
 0x88b   : > { %3573 = shalt.err (!%p3570_p3)
}
 0x88c   : > { %2842 = dma.vmem_to_hbm [thread:$0]  (%p5035_p1), %s4704_s20, 128, %s4702_s2, %s1984_s24  }
 0x88d PF: > { %s5044_s6 = sld [smem:[#allocation47_spill]]  ;;  %p2905_p8 = scmp.ge.s32.totalorder %s3804_s7, 2 }
 0x88e   : > { %p5045_p4 = scmp.ne.s32.totalorder %s4950_s21, 0 }
 0x890   : > { %p2881_p12 = pnand %p2905_p8, %p5045_p4 }
 0x892   : > { %p2882_p13 = pneg %p2881_p12 }
 0x893   : > { %s2076_s25 = sand.u32 1, %s5044_s6  }
 0x894   : > { %s2077_s3 = scalar_lea.sflag [#allocation4], %s2076_s25 }
 0x895   : > { %3703 = dma.done.wait (%p2882_p13), %s2077_s3, 128  }
 0x896   : > { %3705 = vsyncadd (%p2882_p13), %s2077_s3, 4294967168  ;;  %s5046_s22 = sadd.s32 4294967294, %s3804_s7  }
 0x897   : > { %s2085_s16 = sand.u32 1, %s5046_s22  }
 0x898   : > { %s2086_s9 = scalar_lea.sflag [#allocation21], %s2085_s16 }
 0x899   : > { %3707 = dma.done.wait (%p2882_p13), %s2086_s9, 256  }
 0x89a   : > { %3709 = vsyncadd (%p2882_p13), %s2086_s9, 4294967040  ;;  %s2104_s10 = scalar_lea.sflag [#allocation24], %s2085_s16 }
 0x89b   : > { %3711 = dma.done.wait (%p2882_p13), %s2104_s10, 256  }
 0x89c   : > { %3713 = vsyncadd (%p2882_p13), %s2104_s10, 4294967040  ;;  %s51_s7 = sadd.s32 1, %s3804_s7   ;;  %s5048_s24 = sld [smem:[#allocation39_spill]] }
 0x89d   : > { %p4758_p1 = scmp.ge.s32.totalorder %s51_s7, 8   ;;  %s5049_s25 = sld [smem:[#allocation40_spill]] }
 0x89e   : > { %s5050_s27 = sld [smem:[#allocation42_spill]]  ;;  %s5061_s26 = smov %s4345_s29 }
 0x89f   : > { %s5051_s28 = sld [smem:[#allocation43_spill]]  ;;  %s5065_s29 = smov %s4310_s1 }
 0x8a0   : > { %s5052_s19 = sld [smem:[#allocation45_spill]]  ;;  %s5067_s0 = smov %s3744_s30 }
 0x8a1   : > { %s5053_s21 = sld [smem:[#allocation46_spill]]  ;;  %s5068_s30 = smov %s3748_s18 }
 0x8a2   : > { %s5054_s2 = sld [smem:[#allocation66_spill]]  ;;  %s5070_s18 = smov %s4179_s13 }
 0x8a3   : > { %s5055_s12 = sld [smem:[#allocation48_spill]] }
 0x8a4   : > { %s5056_s22 = sld [smem:[#allocation49_spill]] }
 0x8a5   : > { %s5057_s23 = sld [smem:[#allocation64_spill]] }
 0x8a6   : > { %s5058_s17 = sld [smem:[#allocation51_spill]] }
 0x8a7   : > { %s5059_s16 = sld [smem:[#allocation52_spill]]  ;;  %s5071_s1 = smov %s5053_s21 }
 0x8a8   : > { %s5060_s15 = sld [smem:[#allocation65_spill]]  ;;  %s5072_s20 = smov %s5054_s2 }
 0x8a9   : > { %s5062_s8 = sld [smem:[#allocation55_spill]]  ;;  %s5073_s21 = smov %s5055_s12 }
 0x8aa   : > { %s5063_s14 = sld [smem:[#allocation56_spill]] }
 0x8ab   : > { %s5064_s6 = sld [smem:[#allocation59_spill]] }
 0x8ac   : > { %s5066_s9 = sld [smem:[#allocation61_spill]] }
 0x8ad   :  { %50 = sbr.rel (!%p4758_p1) target bundleno = 46 (0x2e), region = 258 }
 0x8af   : > { %s5074_s13 = smov %s5062_s8 }
 0x8b1   : > { %s5075_s12 = smov %s5064_s6 }
 0x8b2   :  { %2118 = vsyncpa [#allocation3], 1 }
 0x8b3   :  { %2120 = vsyncpa [#allocation3 + $0x1], 1 }
 0x8b4   :  { %2121 = vsyncpa [#allocation6], 1 }
 0x8b5   :  { %2123 = vsyncpa [#allocation6 + $0x1], 1 }
 0x8b6   :  { %2124 = vsyncpa [#allocation9], 1 }
 0x8b7   :  { %2126 = vsyncpa [#allocation9 + $0x1], 1 }
 0x8b8   :  { %2127 = vsyncpa [#allocation12], 1 }
 0x8b9   :  { %2129 = vsyncpa [#allocation12 + $0x1], 1 }
 0x8ba   :  { %2130 = vsyncpa [#allocation15], 1 }
 0x8bb   :  { %2131 = vsyncpa [#allocation18], 1 }
 0x8bc   :  { %2132 = vsyncpa [#allocation4], 1 }
 0x8bd   :  { %2134 = vsyncpa [#allocation4 + $0x1], 1 }
 0x8be   :  { %2135 = vsyncpa [#allocation21], 1 }
 0x8bf   :  { %2137 = vsyncpa [#allocation21 + $0x1], 1 }
 0x8c0   :  { %2138 = vsyncpa [#allocation24], 1 }
 0x8c1   :  { %2140 = vsyncpa [#allocation24 + $0x1], 1 }

// kernel: tpu_custom_call.1
= control target key start
LH: loop header
LB: loop body
LE: loop exit
PB: predicated region body
PF: predicated region fallthrough
CT: control target
= control target key end

     0   :  { %s4832_s0 = inlined_call_operand.hbm [shape: f32[2,24,32], index: 0, kind: input, shape index: {}]   ;;  %s4833_s1 = inlined_call_operand.hbm [shape: f32[2,24,32], index: 1, kind: input, shape index: {}]   ;;  %s4834_s2 = inlined_call_operand.hbm [shape: f32[2,24,32], index: 2, kind: input, shape index: {}]   ;;  %s4835_s3 = inlined_call_operand.hbm [shape: f32[24,128], index: 3, kind: input, shape index: {}]   ;;  %s4836_s4 = inlined_call_operand.hbm [shape: f32[24,128], index: 4, kind: input, shape index: {}]   ;;  %s4837_s5 = inlined_call_operand.hbm [shape: f32[24,128], index: 5, kind: input, shape index: {}]   ;;  %s4838_s6 = inlined_call_operand.hbm [shape: bf16[32,128], index: 6, kind: input, shape index: {}]   ;;  %s4839_s7 = inlined_call_operand.vmem [shape: f32[8,128], index: 7, kind: input, shape index: {}]   ;;  %s4840_s8 = inlined_call_operand.hbm [shape: bf16[384,128], index: 8, kind: input, shape index: {}]   ;;  %s4841_s9 = inlined_call_operand.vmem [shape: f32[1,128], index: 9, kind: input, shape index: {}]   ;;  %s4842_s10 = inlined_call_operand.hbm [shape: bf16[384,128], index: 10, kind: input, shape index: {}]   ;;  %s4843_s11 = inlined_call_operand.hbm [shape: bf16[128,128], index: 11, kind: input, shape index: {}]   ;;  %s4844_s12 = inlined_call_operand.vmem [shape: f32[1,128], index: 12, kind: input, shape index: {}]   ;;  %s4845_s13 = inlined_call_operand.hbm [shape: f32[2,24,128], index: 13, kind: output, shape index: {0}]   ;;  %s4846_s14 = inlined_call_operand.hbm [shape: f32[2,24,128], index: 14, kind: output, shape index: {1}]   ;;  %s4847_s15 = inlined_call_operand.hbm [shape: f32[2,24,128], index: 15, kind: output, shape index: {2}]   ;;  %s4848_s16 = inlined_call_operand.hbm [shape: f32[2,24,128], index: 16, kind: output, shape index: {3}]   ;;  %s4849_s17 = inlined_call_operand.hbm [shape: f32[2,24,128], index: 17, kind: output, shape index: {4}]  }
   0x1   :  { %4898 = sst [smem:[#allocation67_spill]] %s4832_s0 }
   0x2   :  { %4899 = sst [smem:[#allocation68_spill]] %s4833_s1 }
   0x3   :  { %4900 = sst [smem:[#allocation69_spill]] %s4834_s2 }
   0x4   :  { %4901 = sst [smem:[#allocation70_spill]] %s4835_s3 }
   0x5   :  { %4902 = sst [smem:[#allocation71_spill]] %s4836_s4 }
   0x6   :  { %4903 = sst [smem:[#allocation72_spill]] %s4837_s5 }
   0x7   :  { %4904 = sst [smem:[#allocation73_spill]] %s4838_s6 }
   0x8   :  { %4905 = sst [smem:[#allocation74_spill]] %s4839_s7 }
   0x9   :  { %4906 = sst [smem:[#allocation75_spill]] %s4840_s8 }
   0xa   :  { %4907 = sst [smem:[#allocation76_spill]] %s4841_s9 }
   0xb   :  { %4908 = sst [smem:[#allocation77_spill]] %s4842_s10 }
   0xc   :  { %4909 = sst [smem:[#allocation78_spill]] %s4843_s11 }
   0xd   :  { %4910 = sst [smem:[#allocation79_spill]] %s4844_s12 }
   0xe   :  { %4911 = sst [smem:[#allocation80_spill]] %s4845_s13 }
   0xf   :  { %4912 = sst [smem:[#allocation81_spill]] %s4846_s14 }
  0x10   :  { %4913 = sst [smem:[#allocation82_spill]] %s4847_s15 }
  0x11   :  { %4914 = sst [smem:[#allocation83_spill]] %s4848_s16 }
  0x12   :  { %4915 = sst [smem:[#allocation84_spill]] %s4849_s17 }
  0x13   :  { %23 = vsyncpa [#allocation3], 0 }
  0x14   :  { %25 = vsyncpa [#allocation3 + $0x1], 0 }
  0x15   :  { %26 = vsyncpa [#allocation6], 0 }
  0x16   :  { %28 = vsyncpa [#allocation6 + $0x1], 0 }
  0x17   :  { %29 = vsyncpa [#allocation9], 0 }
  0x18   :  { %31 = vsyncpa [#allocation9 + $0x1], 0 }
  0x19   :  { %32 = vsyncpa [#allocation12], 0 }
  0x1a   :  { %34 = vsyncpa [#allocation12 + $0x1], 0 }
  0x1b   :  { %35 = vsyncpa [#allocation15], 0 }
  0x1c   :  { %36 = vsyncpa [#allocation18], 0 }
  0x1d   :  { %37 = vsyncpa [#allocation4], 0 }
  0x1e   :  { %39 = vsyncpa [#allocation4 + $0x1], 0 }
  0x1f   :  { %40 = vsyncpa [#allocation21], 0 }
  0x20   :  { %42 = vsyncpa [#allocation21 + $0x1], 0 }
  0x21   :  { %43 = vsyncpa [#allocation24], 0 }
  0x22   :  { %45 = vsyncpa [#allocation24 + $0x1], 0  ;;  %s3915_s24 = smov 0   ;;  %s3917_s25 = smov 0  }
  0x23   :  { %s3919_s26 = smov 0   ;;  %s3921_s27 = smov 0  }
  0x24   :  { %s3923_s28 = smov 0   ;;  %s3925_s29 = smov 0  }
  0x25   :  { %s3927_s0 = smov 0   ;;  %s3929_s30 = smov 0  }
  0x26   :  { %s3931_s18 = smov 0   ;;  %s3933_s19 = smov 0  }
  0x27   :  { %s3935_s1 = smov 0   ;;  %s3937_s20 = smov 0  }
  0x28   :  { %s3939_s21 = smov 0   ;;  %s3941_s22 = smov 0  }
  0x29   :  { %s3943_s23 = smov 0   ;;  %s3945_s17 = smov 0  }
  0x2a   :  { %s3947_s16 = smov 0   ;;  %s3949_s15 = smov 0  }
  0x2b   :  { %s3951_s13 = smov 0   ;;  %s3953_s14 = smov 0  }
  0x2c   :  { %s3955_s12 = smov 0   ;;  %s3957_s9 = smov 0  }
  0x2d   :  { %s3959_s7 = smov 0  }
  0x2e LB: > { %4916 = sst [smem:[#allocation38_spill]] %s3716_s24  ;;  %s4031_s5 = sadd.s32 4294967295, %s3804_s7   ;;  %s3804_s7 = sphi %s3959_s7, %s51_s7   ;;  %s3800_s9 = sphi %s3957_s9, %s5066_s9   ;;  %s3796_s12 = sphi %s3955_s12, %s5075_s12   ;;  %s3792_s14 = sphi %s3953_s14, %s5063_s14   ;;  %s3788_s13 = sphi %s3951_s13, %s5074_s13   ;;  %s3784_s15 = sphi %s3949_s15, %s5060_s15   ;;  %s3780_s16 = sphi %s3947_s16, %s5059_s16   ;;  %s3776_s17 = sphi %s3945_s17, %s5058_s17   ;;  %s3772_s23 = sphi %s3943_s23, %s5057_s23   ;;  %s3768_s22 = sphi %s3941_s22, %s5056_s22   ;;  %s3764_s21 = sphi %s3939_s21, %s5073_s21   ;;  %s3760_s20 = sphi %s3937_s20, %s5072_s20   ;;  %s3756_s1 = sphi %s3935_s1, %s5071_s1   ;;  %s3752_s19 = sphi %s3933_s19, %s5052_s19   ;;  %s3748_s18 = sphi %s3931_s18, %s5070_s18   ;;  %s3744_s30 = sphi %s3929_s30, %s5068_s30   ;;  %s3740_s0 = sphi %s3927_s0, %s5067_s0   ;;  %s3736_s29 = sphi %s3925_s29, %s5065_s29   ;;  %s3732_s28 = sphi %s3923_s28, %s5051_s28   ;;  %s3728_s27 = sphi %s3921_s27, %s5050_s27   ;;  %s3724_s26 = sphi %s3919_s26, %s5061_s26   ;;  %s3720_s25 = sphi %s3917_s25, %s5049_s25   ;;  %s3716_s24 = sphi %s3915_s24, %s5048_s24  }
  0x2f   : > { %4917 = sst [smem:[#allocation39_spill]] %s3720_s25  ;;  %p2436_p0 = scmp.ge.s32.totalorder %s3804_s7, 1 }
  0x30   : > { %4918 = sst [smem:[#allocation40_spill]] %s3724_s26  ;;  %p4882_p1 = scmp.eq.s32.totalorder %s4031_s5, 0 }
  0x31   : > { %4919 = sst [smem:[#allocation41_spill]] %s3728_s27  ;;  %p541_p2 = scmp.lt.s32.totalorder %s3804_s7, 7 }
  0x32   : > { %4920 = sst [smem:[#allocation42_spill]] %s3732_s28  ;;  %s3807_s26 = smov [#allocation14]  }
  0x33   : > { %4921 = sst [smem:[#allocation43_spill]] %s3736_s29  ;;  %p4036_p3 = pnand %p2436_p0, %p541_p2 }
  0x34   : > { %4922 = sst [smem:[#allocation44_spill]] %s3752_s19  ;;  %s569_s4 = sshll.u32 %s3807_s26, 4  ;;  %s570_s4 = int_to_ptr.vmem [resolvable:$true] %s569_s4 }
  0x35   : > { %4923 = sst [smem:[#allocation45_spill]] %s3756_s1  ;;  %p2848_p4 = pneg %p4036_p3 }
  0x36   : > { %4924 = sst [smem:[#allocation46_spill]] %s3760_s20 }
  0x37   : > { %4925 = sst [smem:[#allocation47_spill]] %s3764_s21  ;;  %p4044_p5 = pnand %p2848_p4, %p4882_p1 }
  0x38   : > { %4926 = sst [smem:[#allocation48_spill]] %s3768_s22 }
  0x39   : > { %4927 = sst [smem:[#allocation49_spill]] %s3772_s23  ;;  %p4866_p6 = pneg %p4044_p5 }
  0x3a   : > { %4928 = sst [smem:[#allocation50_spill]] %s3776_s17 }
  0x3b   : > { %4929 = sst [smem:[#allocation51_spill]] %s3780_s16 }
  0x3c   : > { %4930 = sst [smem:[#allocation52_spill]] %s3784_s15 }
  0x3d   : > { %4931 = sst [smem:[#allocation53_spill]] %s3788_s13 }
  0x3e   : > { %4932 = sst [smem:[#allocation54_spill]] %s3792_s14  ;;  %s3806_s14 = smov [#allocation13]  }
  0x3f   : > { %4933 = sst [smem:[#allocation55_spill]] %s3796_s12  ;;  %s553_s24 = sshll.u32 %s3806_s14, 4  ;;  %s554_s24 = int_to_ptr.vmem [resolvable:$true] %s553_s24 }
  0x40   : > { %4934 = sst [smem:[#allocation56_spill]] %s3800_s9  ;;  %s3183_s27 = scalar_lea.vmem %s554_s24, 256 }
  0x41   : > { %s4935_s13 = scalar_select %p4036_p3, 1, 0 }
  0x42   : > { %p3184_p7 = scmp.ne.s32.totalorder %s554_s24, %s3183_s27  ;;  %p3191_p10 = scmp.lt.s32.totalorder %s554_s24, %s554_s24 }
  0x43   : > { %4936 = sst [smem:[#allocation57_spill]] %s4935_s13  ;;  %p3192_p11 = scmp.lt.s32.totalorder %s3183_s27, %s3183_s27 }
  0x44   : > { %p3186_p8 = pnand %p3184_p7, %p4866_p6 }
  0x45   : > { %p3193_p12 = por %p3192_p11, %p3191_p10 }
  0x46   : > { %p3187_p9 = pneg %p3186_p8 }
  0x48   : > { %p3194_p13 = pnand %p3193_p12, %p3187_p9 }
  0x4a   : > { %3197 = shalt.err (!%p3194_p13)
}
  0x4b   : > { %s4861_s14 = smov 64   ;;  %s4863_s13 = smov 4  }
  0x4c   : > { %s4938_s6 = sld [smem:[#allocation73_spill]]  ;;  %s3209_s29 = scalar_lea.vmem %s570_s4, 3072 }
  0x4d   : > { %p3210_p0 = scmp.ne.s32.totalorder %s570_s4, %s3209_s29  ;;  %p3217_p7 = scmp.lt.s32.totalorder %s570_s4, %s570_s4 }
  0x4e   : > { %p3218_p8 = scmp.lt.s32.totalorder %s3209_s29, %s3209_s29 }
  0x4f   : > { %p3212_p2 = pnand %p3210_p0, %p4866_p6 }
  0x50   : > { %p3219_p9 = por %p3218_p8, %p3217_p7 }
  0x51   : > { %p3213_p4 = pneg %p3212_p2 }
  0x52   : > { %2851 = dma.hbm_to_vmem [thread:$0]  (!%p4044_p5), %s4938_s6, 256, %s554_s24, [#allocation12], %s4861_s14, %s4861_s14, %s4863_s13  }
  0x53   : > { %p3220_p10 = pnand %p3219_p9, %p3213_p4 }
  0x55   : > { %3223 = shalt.err (!%p3220_p10)
}
  0x56   : > { %s4939_s8 = sld [smem:[#allocation75_spill]]  ;;  %s4872_s24 = sadd.s32 4294967294, %s3804_s7  }
  0x57   : > { %s4074_s28 = sadd.s32 1, %s3796_s12  ;;  %s63_s2 = sadd.s32 1, %s3800_s9 }
  0x58   : > { %4940 = sst [smem:[#allocation58_spill]] %s4074_s28  ;;  %p61_p11 = scmp.ge.s32.totalorder %s4074_s28, 3 }
  0x59   : > { %p4883_p12 = scmp.eq.s32.totalorder %s3804_s7, 0  ;;  %s106_s29 = sadd.s32 1, %s3772_s23 }
  0x5a   : > { %s4081_s26 = scalar_select %p61_p11, 0, %s4074_s28  }
  0x5b   : > { %s5077_s2 = smov (!%p61_p11, %s63_s2), %s3800_s9  ;;  %p113_p13 = scmp.ne.s32.totalorder %s3772_s23, %s3768_s22 }
  0x5c   : > { %2854 = dma.hbm_to_vmem [thread:$0]  (!%p4044_p5), %s4939_s8, 3072, %s570_s4, [#allocation15], %s4861_s14, %s4861_s14, %s4863_s13  }
  0x5d   : > { %4941 = sst [smem:[#allocation59_spill]] %s4081_s26  ;;  %s4942_s6 = smov %s4081_s26 }
  0x5e   : > { %s4086_s27 = ssub.s32 %s3796_s12, %s4942_s6  ;;  %p65_p0 = scmp.ge.s32.totalorder %s5077_s2, 2 }
  0x5f   : > { %4943 = sst [smem:[#allocation60_spill]] %s4086_s27  ;;  %p119_p2 = scmp.ne.s32.totalorder %s3768_s22, %s3764_s21 }
  0x60   : > { %p4094_p4 = por %p113_p13, %p4883_p12  ;;  %s5079_s2 = smov (%p65_p0, %s5077_s2), 0 }
  0x61   : > { %4945 = sst [smem:[#allocation61_spill]] %s5079_s2  ;;  %p4103_p8 = por %p119_p2, %p4882_p1 }
  0x62   : > { %p416_p9 = scmp.eq.s32.totalorder %s4031_s5, 5  ;;  %s4110_s14 = ssub.s32 %s3800_s9, %s5079_s2 }
  0x63   : > { %s4946_s26 = scalar_select %p4103_p8, 1, 0 }
  0x64   : > { %p422_p10 = scmp.eq.s32.totalorder %s4872_s24, 5  ;;  %s103_s13 = sor.u32 %s4086_s27, %s4110_s14 }
  0x65   : > { %4947 = sst [smem:[#allocation62_spill]] %s4946_s26  ;;  %p4116_p11 = por %p416_p9, %p113_p13 }
  0x66   : > { %p104_p0 = scmp.eq.s32.totalorder %s103_s13, 0  ;;  %p4120_p7 = por %p422_p10, %p119_p2 }
  0x67   : > { %s4948_s8 = scalar_select %p4116_p11, 1, 0 }
  0x68   : > { %s4950_s21 = scalar_select %p4120_p7, 1, 0 }
  0x69   : > { %4949 = sst [smem:[#allocation63_spill]] %s4948_s8  ;;  %p4887_p6 = scmp.lt.s32.totalorder %s3804_s7, 6 }
  0x6a   : > { %s4126_s26 = smul.u32 3, %s3800_s9  ;;  %s4132_s22 = sand.u32 1, %s3804_s7  }
  0x6b   : > { %s4129_s2 = scalar_select %p104_p0, %s3772_s23, %s106_s29  }
  0x6c   : > { %s640_s24 = sand.u32 1, %s3772_s23   ;;  %s647_s19 = sadd.s32 %s3796_s12, %s4126_s26 }
  0x6d   : > { %4951 = sst [smem:[#allocation64_spill]] %s4129_s2  ;;  %s2445_s27 = sshll.u32 %s640_s24, 3 }
  0x6e   : > { %s2446_s1 = sshll.u32 %s647_s19, 7  ;;  %s642_s20 = scalar_lea.vmem [#allocation5], %s2445_s27 }
  0x6f   : > { %s651_s8 = sshll.u32 %s642_s20, 4  ;;  %s4952_s17 = sld [smem:[#allocation68_spill]]  ;;  %s652_s8 = int_to_ptr.vmem [resolvable:$true] %s651_s8 }
  0x70   : > { %p4144_p13 = pnand %p4887_p6, %p4094_p4  ;;  %s4885_s29 = scalar_lea.sflag [#allocation6], %s4132_s22 }
  0x71   : > { %s3237_s24 = scalar_lea.vmem %s652_s8, 128  ;;  %s3810_s19 = smov [#allocation5]  }
  0x72   : > { %p3226_p2 = pneg %p4144_p13  ;;  %p3238_p9 = scmp.ne.s32.totalorder %s652_s8, %s3237_s24 }
  0x73   : > { %s3242_s20 = sshll.u32 %s3810_s19, 4  ;;  %s3243_s20 = int_to_ptr.vmem [resolvable:$false] %s3242_s20 }
  0x74   : > { %p3240_p10 = pnand %p3238_p9, %p3226_p2  ;;  %s3244_s28 = scalar_lea.vmem %s3243_s20, 256 }
  0x75   : > { %s649_s16 = scalar_lea.hbm %s4952_s17, %s2446_s1  ;;  %p3245_p1 = scmp.lt.s32.totalorder %s652_s8, %s3243_s20 }
  0x76   : > { %p3241_p0 = pneg %p3240_p10  ;;  %p3246_p12 = scmp.lt.s32.totalorder %s3244_s28, %s3237_s24 }
  0x78   : > { %p3247_p7 = por %p3246_p12, %p3245_p1 }
  0x7a   : > { %p3248_p11 = pnand %p3247_p7, %p3241_p0 }
  0x7c   : > { %3251 = shalt.err (!%p3248_p11)
}
  0x7d   : > { %2867 = dma.hbm_to_vmem [thread:$0]  (!%p4144_p13), %s649_s16, 128, %s652_s8, %s4885_s29  }
  0x7e   : > { %s2432_s17 = sadd.s32 4294967295, %s3796_s12  ;;  %s2433_s1 = sadd.s32 4294967295, %s4942_s6 }
  0x7f   : > { %p68_p1 = scmp.gt.s32.totalorder %s2432_s17, 0  ;;  %p71_p12 = scmp.gt.s32.totalorder %s2433_s1, 0 }
  0x80   : > { %s172_s9 = sadd.s32 1, %s3748_s18  ;;  %p179_p4 = scmp.ne.s32.totalorder %s3748_s18, %s3744_s30 }
  0x81   : > { %s5081_s17 = smov (!%p68_p1, %s2432_s17), 0  ;;  %s5083_s1 = smov (!%p71_p12, %s2433_s1), 0 }
  0x82   : > { %p4954_p7 = scmp.eq.s32.totalorder %s3804_s7, 0  ;;  %p185_p2 = scmp.ne.s32.totalorder %s3744_s30, %s3740_s0 }
  0x83   : > { %s74_s27 = ssub.s32 %s5081_s17, %s5083_s1  ;;  %p4956_p10 = scmp.eq.s32.totalorder %s4031_s5, 0 }
  0x84   : > { %p181_p11 = por %p179_p4, %p4954_p7  ;;  %s75_s8 = sor.u32 %s74_s27, %s4110_s14 }
  0x85   : > { %p170_p13 = scmp.eq.s32.totalorder %s74_s27, 0  ;;  %p4168_p9 = scmp.eq.s32.totalorder %s75_s8, 0 }
  0x86   : > { %p4174_p0 = por %p185_p2, %p4956_p10  ;;  %s683_s24 = sand.u32 1, %s3748_s18  }
  0x87   : > { %s4179_s13 = scalar_select %p170_p13, %s3748_s18, %s172_s9  }
  0x88   : > { %s4957_s4 = scalar_select %p4174_p0, 1, 0 }
  0x89   : > { %s2451_s19 = sshll.u32 %s5081_s17, 7  ;;  %s2449_s20 = sshll.u32 %s683_s24, 3 }
  0x8a   : > { %s4958_s3 = sld [smem:[#allocation70_spill]]  ;;  %p4188_p1 = pnand %p4887_p6, %p181_p11 }
  0x8b   : > { %s685_s27 = scalar_lea.vmem [#allocation8], %s2449_s20  ;;  %s4889_s2 = scalar_lea.sflag [#allocation9], %s4132_s22 }
  0x8c   : > { %s695_s8 = sshll.u32 %s685_s27, 4  ;;  %p3254_p12 = pneg %p4188_p1  ;;  %s696_s8 = int_to_ptr.vmem [resolvable:$true] %s695_s8 }
  0x8d   : > { %s3265_s9 = scalar_lea.vmem %s696_s8, 128  ;;  %s3811_s24 = smov [#allocation8]  }
  0x8e   : > { %p3266_p4 = scmp.ne.s32.totalorder %s696_s8, %s3265_s9  ;;  %s3270_s23 = sshll.u32 %s3811_s24, 4  ;;  %s3271_s23 = int_to_ptr.vmem [resolvable:$false] %s3270_s23 }
  0x8f   : > { %s3272_s29 = scalar_lea.vmem %s3271_s23, 256  ;;  %p3273_p13 = scmp.lt.s32.totalorder %s696_s8, %s3271_s23 }
  0x90   : > { %s693_s0 = scalar_lea.hbm %s4958_s3, %s2451_s19  ;;  %p3268_p7 = pnand %p3266_p4, %p3254_p12 }
  0x91   : > { %p3274_p11 = scmp.lt.s32.totalorder %s3272_s29, %s3265_s9 }
  0x92   : > { %p3269_p2 = pneg %p3268_p7 }
  0x93   : > { %p3275_p10 = por %p3274_p11, %p3273_p13 }
  0x95   : > { %p3276_p6 = pnand %p3275_p10, %p3269_p2 }
  0x97   : > { %3279 = shalt.err (!%p3276_p6)
}
  0x98   : > { %2873 = dma.hbm_to_vmem [thread:$0]  (!%p4188_p1), %s693_s0, 128, %s696_s8, %s4889_s2  }
  0x99   : > { %s3812_s19 = smov [#allocation16]   ;;  %s3813_s28 = smov [#allocation17]  }
  0x9a   : > { %s585_s20 = sshll.u32 %s3812_s19, 4  ;;  %s598_s27 = sshll.u32 %s3813_s28, 4  ;;  %s586_s20 = int_to_ptr.vmem [resolvable:$true] %s585_s20  ;;  %s599_s27 = int_to_ptr.vmem [resolvable:$true] %s598_s27 }
  0x9b   : > { %s3291_s3 = scalar_lea.vmem %s586_s20, 3072  ;;  %p4960_p4 = pneg %p4044_p5 }
  0x9c   : > { %p3292_p12 = scmp.ne.s32.totalorder %s586_s20, %s3291_s3  ;;  %p3299_p13 = scmp.lt.s32.totalorder %s586_s20, %s586_s20 }
  0x9d   : > { %p3300_p2 = scmp.lt.s32.totalorder %s3291_s3, %s3291_s3 }
  0x9e   : > { %p3294_p7 = pnand %p3292_p12, %p4960_p4 }
  0x9f   : > { %p3301_p6 = por %p3300_p2, %p3299_p13 }
  0xa0   : > { %p3295_p0 = pneg %p3294_p7 }
  0xa2   : > { %p3302_p11 = pnand %p3301_p6, %p3295_p0 }
  0xa4   : > { %3305 = shalt.err (!%p3302_p11)
}
  0xa5   : > { %s4961_s23 = smov 4   ;;  %s4962_s0 = smov 64  }
  0xa6   : > { %s4963_s10 = sld [smem:[#allocation77_spill]]  ;;  %s3317_s9 = scalar_lea.vmem %s599_s27, 1024 }
  0xa7   : > { %p3318_p1 = scmp.ne.s32.totalorder %s599_s27, %s3317_s9  ;;  %p4964_p10 = pmov %p4960_p4 }
  0xa8   : > { %p3325_p7 = scmp.lt.s32.totalorder %s599_s27, %s599_s27  ;;  %p3326_p0 = scmp.lt.s32.totalorder %s3317_s9, %s3317_s9 }
  0xa9   : > { %p3320_p12 = pnand %p3318_p1, %p4964_p10 }
  0xaa   : > { %p3327_p13 = por %p3326_p0, %p3325_p7 }
  0xab   : > { %p3321_p4 = pneg %p3320_p12 }
  0xac   : > { %2857 = dma.hbm_to_vmem [thread:$0]  (!%p4044_p5), %s4963_s10, 3072, %s586_s20, [#allocation15], %s4962_s0, %s4962_s0, %s4961_s23  }
  0xad   : > { %p3328_p2 = pnand %p3327_p13, %p3321_p4 }
  0xaf   : > { %3331 = shalt.err (!%p3328_p2)
}
  0xb0   : > { %s4965_s11 = sld [smem:[#allocation78_spill]]  ;;  %s78_s25 = sadd.s32 1, %s3784_s15 }
  0xb1   : > { %s4966_s29 = sld [smem:[#allocation51_spill]]  ;;  %s615_s28 = sand.u32 1, %s3784_s15  }
  0xb2   : > { %s4967_s19 = sld [smem:[#allocation50_spill]]  ;;  %s627_s1 = sadd.s32 %s4126_s26, %s5081_s17 }
  0xb3   : > { %s4225_s20 = scalar_select %p4168_p9, %s3784_s15, %s78_s25  }
  0xb4   : > { %p4969_p1 = scmp.eq.s32.totalorder %s3804_s7, 0  ;;  %p4970_p12 = scmp.eq.s32.totalorder %s4031_s5, 0 }
  0xb5   : > { %4968 = sst [smem:[#allocation65_spill]] %s4225_s20  ;;  %s2442_s9 = sshll.u32 %s615_s28, 3 }
  0xb6   : > { %2860 = dma.hbm_to_vmem [thread:$0]  (!%p4044_p5), %s4965_s11, 1024, %s599_s27, [#allocation18], %s4962_s0, %s4962_s0, %s4961_s23  }
  0xb7   : > { %p85_p6 = scmp.ne.s32.totalorder %s3784_s15, %s4966_s29  ;;  %s2444_s3 = sshll.u32 %s627_s1, 7 }
  0xb8   : > { %p91_p11 = scmp.ne.s32.totalorder %s4966_s29, %s4967_s19  ;;  %s4972_s27 = sld [smem:[#allocation67_spill]] }
  0xb9   : > { %p87_p10 = por %p4969_p1, %p85_p6  ;;  %s619_s16 = scalar_lea.vmem [#allocation2], %s2442_s9 }
  0xba   : > { %p4238_p4 = por %p4970_p12, %p91_p11  ;;  %s631_s0 = sshll.u32 %s619_s16, 4  ;;  %s632_s0 = int_to_ptr.vmem [resolvable:$true] %s631_s0 }
  0xbb   : > { %p4973_p5 = scmp.lt.s32.totalorder %s3804_s7, 6  ;;  %s616_s17 = scalar_lea.sflag [#allocation3], %s615_s28 }
  0xbc   : > { %s3345_s19 = scalar_lea.vmem %s632_s0, 128  ;;  %s3814_s25 = smov [#allocation2]  }
  0xbd   : > { %p4247_p9 = pnand %p4973_p5, %p87_p10  ;;  %p3346_p0 = scmp.ne.s32.totalorder %s632_s0, %s3345_s19 }
  0xbe   : > { %s629_s23 = scalar_lea.hbm %s4972_s27, %s2444_s3  ;;  %s3350_s1 = sshll.u32 %s3814_s25, 4  ;;  %s3351_s1 = int_to_ptr.vmem [resolvable:$false] %s3350_s1 }
  0xbf   : > { %p3334_p7 = pneg %p4247_p9  ;;  %s3352_s2 = scalar_lea.vmem %s3351_s1, 256 }
  0xc0   : > { %p3353_p6 = scmp.lt.s32.totalorder %s632_s0, %s3351_s1  ;;  %p3354_p11 = scmp.lt.s32.totalorder %s3352_s2, %s3345_s19 }
  0xc1   : > { %p3348_p13 = pnand %p3346_p0, %p3334_p7 }
  0xc2   : > { %p3355_p1 = por %p3354_p11, %p3353_p6 }
  0xc3   : > { %p3349_p2 = pneg %p3348_p13 }
  0xc5   : > { %p3356_p12 = pnand %p3355_p1, %p3349_p2 }
  0xc7   : > { %3359 = shalt.err (!%p3356_p12)
}
  0xc8   : > { %s4975_s9 = sld [smem:[#allocation58_spill]]  ;;  %s132_s27 = sadd.s32 1, %s4942_s6 }
  0xc9   : > { %s4976_s28 = sld [smem:[#allocation46_spill]]  ;;  %p133_p5 = scmp.lt.s32.totalorder %s132_s27, 2 }
  0xca   : > { %s4977_s3 = sld [smem:[#allocation45_spill]]  ;;  %p4979_p13 = scmp.eq.s32.totalorder %s3804_s7, 0 }
  0xcb   : > { %s4978_s24 = sld [smem:[#allocation44_spill]]  ;;  %s5087_s27 = smov (!%p133_p5, %s132_s27), 2 }
  0xcc   : > { %2864 = dma.hbm_to_vmem [thread:$0]  (!%p4247_p9), %s629_s23, 128, %s632_s0, %s616_s17  }
  0xcd   : > { %p4981_p9 = scmp.eq.s32.totalorder %s4031_s5, 0  ;;  %s4984_s6 = sld [smem:[#allocation69_spill]] }
  0xce   : > { %p130_p10 = scmp.lt.s32.totalorder %s4975_s9, 2  ;;  %p4985_p12 = scmp.lt.s32.totalorder %s3804_s7, 6 }
  0xcf   : > { %s140_s16 = sadd.s32 1, %s4976_s28  ;;  %s660_s29 = sand.u32 1, %s4976_s28  }
  0xd0   : > { %s5085_s9 = smov (!%p130_p10, %s4975_s9), 2  ;;  %p147_p7 = scmp.ne.s32.totalorder %s4976_s28, %s4977_s3 }
  0xd1   : > { %p153_p0 = scmp.ne.s32.totalorder %s4977_s3, %s4978_s24  ;;  %s4279_s0 = ssub.s32 %s5085_s9, %s5087_s27 }
  0xd2   : > { %p4268_p2 = por %p147_p7, %p4979_p13  ;;  %s2447_s17 = sshll.u32 %s660_s29, 3 }
  0xd3   : > { %p4274_p6 = por %p153_p0, %p4981_p9  ;;  %s137_s25 = sor.u32 %s4279_s0, %s4110_s14 }
  0xd4   : > { %p138_p1 = scmp.eq.s32.totalorder %s137_s25, 0  ;;  %s670_s1 = sadd.s32 %s4126_s26, %s5085_s9 }
  0xd5   : > { %s4982_s23 = scalar_select %p4274_p6, 1, 0 }
  0xd6   : > { %s662_s2 = scalar_lea.vmem [#allocation7], %s2447_s17  ;;  %s5089_s28 = smov (!%p138_p1, %s4976_s28), %s140_s16 }
  0xd7   : > { %s674_s3 = sshll.u32 %s662_s2, 4  ;;  %4983 = sst [smem:[#allocation66_spill]] %s5089_s28  ;;  %s675_s3 = int_to_ptr.vmem [resolvable:$true] %s674_s3 }
  0xd8   : > { %s2448_s24 = sshll.u32 %s670_s1, 7  ;;  %p4296_p10 = pnand %p4985_p12, %p4268_p2 }
  0xd9   : > { %s672_s20 = scalar_lea.hbm %s4984_s6, %s2448_s24  ;;  %s3373_s14 = scalar_lea.vmem %s675_s3, 128 }
  0xda   : > { %p3362_p5 = pneg %p4296_p10  ;;  %p3374_p7 = scmp.ne.s32.totalorder %s675_s3, %s3373_s14 }
  0xdb   : > { %s3815_s26 = smov [#allocation7]  }
  0xdc   : > { %p3376_p0 = pnand %p3374_p7, %p3362_p5  ;;  %s3378_s16 = sshll.u32 %s3815_s26, 4  ;;  %s3379_s16 = int_to_ptr.vmem [resolvable:$false] %s3378_s16 }
  0xdd   : > { %s3380_s29 = scalar_lea.vmem %s3379_s16, 256  ;;  %p3381_p9 = scmp.lt.s32.totalorder %s675_s3, %s3379_s16 }
  0xde   : > { %p3377_p13 = pneg %p3376_p0  ;;  %p3382_p1 = scmp.lt.s32.totalorder %s3380_s29, %s3373_s14 }
  0xe0   : > { %p3383_p11 = por %p3382_p1, %p3381_p9 }
  0xe2   : > { %p3384_p6 = pnand %p3383_p11, %p3377_p13 }
  0xe4   : > { %3387 = shalt.err (!%p3384_p6)
}
  0xe5   : > { %s4987_s6 = scalar_lea.sflag [#allocation6], %s4132_s22  ;;  %s4988_s10 = sld [smem:[#allocation43_spill]] }
  0xe6   : > { %s4989_s11 = sld [smem:[#allocation60_spill]]  ;;  %s2453_s24 = sshll.u32 %s3796_s12, 7 }
  0xe7   : > { %s4990_s19 = sld [smem:[#allocation42_spill]]  ;;  %p4993_p12 = scmp.eq.s32.totalorder %s3804_s7, 0 }
  0xe8   : > { %s4991_s17 = sld [smem:[#allocation41_spill]]  ;;  %p4994_p7 = scmp.eq.s32.totalorder %s4031_s5, 0 }
  0xe9   : > { %2870 = dma.hbm_to_vmem [thread:$0]  (!%p4296_p10), %s672_s20, 128, %s675_s3, %s4987_s6  }
  0xea   : > { %s4996_s29 = sld [smem:[#allocation71_spill]]  ;;  %p4997_p10 = scmp.lt.s32.totalorder %s3804_s7, 6 }
  0xeb   : > { %s198_s25 = sadd.s32 1, %s4988_s10  ;;  %s704_s2 = sand.u32 1, %s4988_s10  }
  0xec   : > { %p4992_p2 = scmp.eq.s32.totalorder %s4989_s11, 0  ;;  %s2452_s14 = sshll.u32 %s704_s2, 3 }
  0xed   : > { %p205_p6 = scmp.ne.s32.totalorder %s4988_s10, %s4990_s19  ;;  %s706_s6 = scalar_lea.vmem [#allocation10], %s2452_s14 }
  0xee   : > { %s4310_s1 = scalar_select %p4992_p2, %s4988_s10, %s198_s25  }
  0xef   : > { %p211_p11 = scmp.ne.s32.totalorder %s4990_s19, %s4991_s17  ;;  %p207_p5 = por %p205_p6, %p4993_p12 }
  0xf0   : > { %s711_s20 = scalar_lea.hbm %s4996_s29, %s2453_s24  ;;  %s713_s10 = sshll.u32 %s706_s6, 4  ;;  %s714_s10 = int_to_ptr.vmem [resolvable:$true] %s713_s10 }
  0xf1   : > { %p4322_p0 = por %p211_p11, %p4994_p7  ;;  %p4331_p13 = pnand %p4997_p10, %p207_p5 }
  0xf2   : > { %s3401_s11 = scalar_lea.vmem %s714_s10, 128  ;;  %s3816_s19 = smov [#allocation10]  }
  0xf3   : > { %p3390_p9 = pneg %p4331_p13  ;;  %p3402_p1 = scmp.ne.s32.totalorder %s714_s10, %s3401_s11 }
  0xf4   : > { %s3406_s17 = sshll.u32 %s3816_s19, 4  ;;  %s3407_s17 = int_to_ptr.vmem [resolvable:$false] %s3406_s17 }
  0xf5   : > { %p3404_p2 = pnand %p3402_p1, %p3390_p9  ;;  %s3408_s25 = scalar_lea.vmem %s3407_s17, 256 }
  0xf6   : > { %p3409_p11 = scmp.lt.s32.totalorder %s714_s10, %s3407_s17  ;;  %p3410_p12 = scmp.lt.s32.totalorder %s3408_s25, %s3401_s11 }
  0xf7   : > { %p3405_p6 = pneg %p3404_p2 }
  0xf8   : > { %p3411_p5 = por %p3410_p12, %p3409_p11 }
  0xfa   : > { %p3412_p7 = pnand %p3411_p5, %p3405_p6 }
  0xfc   : > { %3415 = shalt.err (!%p3412_p7)
}
  0xfd   : > { %s4999_s2 = scalar_lea.sflag [#allocation9], %s4132_s22  ;;  %s5000_s24 = sld [smem:[#allocation40_spill]] }
  0xfe   : > { %s5001_s14 = sld [smem:[#allocation39_spill]]  ;;  %p5003_p10 = scmp.eq.s32.totalorder %s4279_s0, 0 }
  0xff   : > { %s5002_s26 = sld [smem:[#allocation38_spill]]  ;;  %p5004_p2 = scmp.eq.s32.totalorder %s3804_s7, 0 }
 0x100   : > { %2876 = dma.hbm_to_vmem [thread:$0]  (!%p4331_p13), %s711_s20, 128, %s714_s10, %s4999_s2  }
 0x101   : > { %p5005_p11 = scmp.eq.s32.totalorder %s4031_s5, 0  ;;  %s2455_s19 = sshll.u32 %s5085_s9, 7 }
 0x102   : > { %s5007_s12 = sld [smem:[#allocation72_spill]]  ;;  %p5008_p13 = scmp.lt.s32.totalorder %s3804_s7, 6 }
 0x103   : > { %s230_s16 = sadd.s32 1, %s5000_s24  ;;  %s722_s3 = sand.u32 1, %s5000_s24  }
 0x104   : > { %s4345_s29 = scalar_select %p5003_p10, %s5000_s24, %s230_s16  }
 0x105   : > { %p237_p9 = scmp.ne.s32.totalorder %s5000_s24, %s5001_s14  ;;  %p243_p1 = scmp.ne.s32.totalorder %s5001_s14, %s5002_s26 }
 0x106   : > { %s2454_s11 = sshll.u32 %s722_s3, 3  ;;  %s721_s24 = scalar_lea.sflag [#allocation12], %s4132_s22 }
 0x107   : > { %p239_p6 = por %p237_p9, %p5004_p2  ;;  %p4356_p12 = por %p243_p1, %p5005_p11 }
 0x108   : > { %s732_s20 = scalar_lea.hbm %s5007_s12, %s2455_s19  ;;  %s724_s10 = scalar_lea.vmem [#allocation11], %s2454_s11 }
 0x109   : > { %s5006_s6 = scalar_select %p4356_p12, 1, 0 }
 0x10a   : > { %s734_s0 = sshll.u32 %s724_s10, 4  ;;  %p4366_p5 = pnand %p5008_p13, %p239_p6  ;;  %s735_s0 = int_to_ptr.vmem [resolvable:$true] %s734_s0 }
 0x10b   : > { %s3429_s14 = scalar_lea.vmem %s735_s0, 128  ;;  %s3817_s9 = smov [#allocation11]  }
 0x10c   : > { %p3418_p7 = pneg %p4366_p5  ;;  %p3430_p10 = scmp.ne.s32.totalorder %s735_s0, %s3429_s14 }
 0x10d   : > { %s3434_s26 = sshll.u32 %s3817_s9, 4  ;;  %s3435_s26 = int_to_ptr.vmem [resolvable:$false] %s3434_s26 }
 0x10e   : > { %p3432_p9 = pnand %p3430_p10, %p3418_p7  ;;  %s3436_s12 = scalar_lea.vmem %s3435_s26, 256 }
 0x10f   : > { %p3437_p2 = scmp.lt.s32.totalorder %s735_s0, %s3435_s26  ;;  %p3438_p11 = scmp.lt.s32.totalorder %s3436_s12, %s3429_s14 }
 0x110   : > { %p3433_p1 = pneg %p3432_p9 }
 0x111   : > { %p3439_p12 = por %p3438_p11, %p3437_p2 }
 0x113   : > { %p3440_p6 = pnand %p3439_p12, %p3433_p1 }
 0x115   : > { %3443 = shalt.err (!%p3440_p6)
}
 0x116   : > { %2879 = dma.hbm_to_vmem [thread:$0]  (!%p4366_p5), %s732_s20, 128, %s735_s0, %s721_s24  }
 0x117   : > { %743 = sbr.rel (%p4036_p3) target bundleno = 2189 (0x88d), region = 72  ;;  %s5011_s22 = sld [smem:[#allocation51_spill]] (!%p4036_p3) }
 0x11d   : > { %s745_s3 = sand.u32 1, %s5011_s22  }
 0x11e   : > { %s4378_s11 = sshll.u32 %s745_s3, 3  ;;  %s746_s19 = scalar_lea.sflag [#allocation3], %s745_s3 }
 0x11f   : > { %s749_s17 = scalar_lea.vmem [#allocation2], %s4378_s11 }
 0x120   : > { %3667 = dma.done.wait (%p4238_p4), %s746_s19, 128  }
 0x121   : > { %3669 = vsyncadd (%p4238_p4), %s746_s19, 4294967168  ;;  %s5012_s25 = sld [smem:[#allocation48_spill]]  ;;  %s4386_s10 = sand.u32 1, %s4031_s5  }
 0x122   : > { %s755_s24 = scalar_lea.sflag [#allocation6], %s4386_s10 }
 0x127   : > { %s4894_s0 = sand.u32 1, %s5012_s25  }
 0x128   : > { %s4391_s2 = sshll.u32 %s4894_s0, 3 }
 0x129   : > { %s758_s14 = scalar_lea.vmem [#allocation5], %s4391_s2 }
 0x12a   : > { %3671 = dma.done.wait (%p4103_p8), %s755_s24, 128  }
 0x12b   : > { %3673 = vsyncadd (%p4103_p8), %s755_s24, 4294967168  ;;  %s5014_s8 = sld [smem:[#allocation45_spill]]  ;;  %p5015_p3 = scmp.ne.s32.totalorder %s4982_s23, 0 }
 0x131   : > { %s765_s9 = sand.u32 1, %s5014_s8  }
 0x132   : > { %s4400_s26 = sshll.u32 %s765_s9, 3 }
 0x133   : > { %s767_s12 = scalar_lea.vmem [#allocation7], %s4400_s26 }
 0x134   : > { %3675 = dma.done.wait (%p5015_p3), %s755_s24, 128  }
 0x135   : > { %3677 = vsyncadd (%p5015_p3), %s755_s24, 4294967168  ;;  %s774_s16 = sand.u32 1, %s3744_s30   ;;  %s773_s3 = scalar_lea.sflag [#allocation9], %s4386_s10 }
 0x136   : > { %s4408_s22 = sshll.u32 %s774_s16, 3  ;;  %p5016_p8 = scmp.ne.s32.totalorder %s4957_s4, 0 }
 0x138   : > { %3679 = dma.done.wait (%p5016_p8), %s773_s3, 128  }
 0x139   : > { %3681 = vsyncadd (%p5016_p8), %s773_s3, 4294967168  ;;  %s5017_s20 = sld [smem:[#allocation42_spill]] }
 0x13f   : > { %s783_s8 = sand.u32 1, %s5017_s20  }
 0x140   : > { %s4417_s9 = sshll.u32 %s783_s8, 3 }
 0x141   : > { %s785_s23 = scalar_lea.vmem [#allocation10], %s4417_s9 }
 0x142   : > { %3683 = dma.done.wait (%p4322_p0), %s773_s3, 128  }
 0x143   : > { %3685 = vsyncadd (%p4322_p0), %s773_s3, 4294967168  ;;  %s5018_s24 = sld [smem:[#allocation39_spill]]  ;;  %s791_s4 = scalar_lea.sflag [#allocation12], %s4386_s10 }
 0x144   : > { %p5019_p4 = scmp.ne.s32.totalorder %s5006_s6, 0 }
 0x149   : > { %s792_s16 = sand.u32 1, %s5018_s24  }
 0x14a   : > { %s4425_s0 = sshll.u32 %s792_s16, 3 }
 0x14b   : > { %s794_s19 = scalar_lea.vmem [#allocation11], %s4425_s0 }
 0x14c   : > { %3687 = dma.done.wait (%p5019_p4), %s791_s4, 128  }
 0x14d   : > { %3689 = vsyncadd (%p5019_p4), %s791_s4, 4294967168  ;;  %p5020_p12 = scmp.eq.s32.totalorder %s4031_s5, 0 }
 0x14f   : > { %3691 = dma.done.wait (%p5020_p12), [#allocation12], 256   ;;  %p5021_p13 = pmov %p5020_p12 }
 0x150   : > { %p5022_p0 = pmov %p5020_p12 }
 0x151   : > { %3693 = vsyncadd (%p5021_p13), [#allocation12], 4294967040 }
 0x152   : > { %3695 = dma.done.wait (%p5022_p0), [#allocation15], 6144   ;;  %p5023_p5 = pmov %p5022_p0 }
 0x153   : > { %p5024_p7 = pmov %p5022_p0 }
 0x154   : > { %3697 = vsyncadd (%p5023_p5), [#allocation15], 4294961152 }
 0x155   : > { %3699 = dma.done.wait (%p5024_p7), [#allocation18], 1024   ;;  %p5025_p10 = pmov %p5022_p0 }
 0x156   : > { %v3098_v0 = vld [vmem:[#allocation13 + $0x8] sm:$0xff]   ;;  %v3099_v1 = vld [vmem:[#allocation13] sm:$0xff]   ;;  %v920_v3 = vld [vmem:[%s758_s14] sm:$0xff]  ;;  %vm948_vm0 = vcmask 261120   ;;  %v932_v7 = vlaneseq  ;;  %s5026_s6 = sld [smem:[#allocation74_spill]]  ;;  %s5027_s11 = scalar_lea.vmem [#allocation8], %s4408_s22 }
 0x157   : > { %3701 = vsyncadd (%p5025_p10), [#allocation18], 4294966272  ;;  %2654 = vmatprep.subr.bf16.mxu0 %v3098_v0  ;;  %v919_v2 = vld [vmem:[%s749_s17] sm:$0xff]  ;;  %v924_v15 = vld [vmem:[%s794_s19] sm:$0xff]  ;;  %s5028_s17 = sld [smem:[#allocation53_spill]]  ;;  %vm3819_vm13 = vmmov 0  }
 0x158   : > { %2655 = vmatpush3.bf16.msra.mxu0 %v3098_v0  ;;  %v926_v4 = vpack.c.bf16 %v920_v3, %v919_v2  ;;  %v921_v5 = vld [vmem:[%s767_s12] sm:$0xff]  ;;  %v4451_v8 = vshrl.u32 %v932_v7, 7  ;;  %v922_v19 = vld [vmem:[%s5027_s11] sm:$0xff]  ;;  %s5029_s22 = sld [smem:[#allocation76_spill]]  ;;  %vm1473_vm14 = vcmask 1040384   ;;  %s877_s3 = scalar_lea.vmem [#allocation19], %s4391_s2 }
 0x159   : > { %2656 = vmatprep.subr.bf16.mxu0 %v3099_v1  ;;  %v927_v6 = vpack.c.bf16 %v921_v5, %v921_v5  ;;  %v923_v25 = vld [vmem:[%s785_s23] sm:$0xff]  ;;  %v3103_v43 = vld [vmem:[#allocation14 + $0x68] sm:$0xff]   ;;  %v3105_v45 = vld [vmem:[#allocation14 + $0x60] sm:$0xff]   ;;  %s884_s19 = scalar_lea.vmem [#allocation20], %s4391_s2  ;;  %s5030_s9 = sld [smem:[#allocation79_spill]] }
 0x15a   : > { %2658 = vmatprep.mubr.msk.bf16.mxu0 %vm948_vm0, %v926_v4  ;;  %v934_v9 = vsub.s32 0, %v4451_v8  ;;  %v3100_v40 = vld [vmem:[#allocation14 + $0x78] sm:$0xff]   ;;  %v3101_v41 = vld [vmem:[#allocation14 + $0x70] sm:$0xff]   ;;  %v3106_v46 = vld [vmem:[#allocation14 + $0x28] sm:$0xff]   ;;  %vm1084_vm1 = vcmp.lt.s32.totalorder %v4451_v8, 1  ;;  %vm1100_vm4 = vcmp.lt.s32.totalorder %v4451_v8, 7 }
 0x15b   : > { %2662 = vmatprep.subr.bf16.mxu1 %v3100_v40  ;;  %v3102_v42 = vld [vmem:[#allocation14 + $0x38] sm:$0xff]   ;;  %v3104_v44 = vld [vmem:[#allocation14 + $0x30] sm:$0xff]   ;;  %v3108_v48 = vld [vmem:[#allocation14 + $0x20] sm:$0xff]   ;;  %s5031_s23 = sld [smem:[#allocation54_spill]]  ;;  %s891_s24 = scalar_lea.vmem [#allocation22], %s4391_s2 }
 0x15c   : > { %2657 = vmatpush3.bf16.msra.mxu0 %v3099_v1  ;;  %v4457_v10 = vld [vmem:[%s5026_s6] sm:$0xff]  ;;  %2663 = vmatpush3.bf16.msra.mxu1 %v3100_v40  ;;  %v3107_v47 = vld [vmem:[#allocation14 + $0x58] sm:$0xff]   ;;  %v3111_v51 = vld [vmem:[#allocation14 + $0x48] sm:$0xff]   ;;  %s5032_s16 = sld [smem:[#allocation63_spill]]  ;;  %s2019_s5 = sshll.u32 %s884_s19, 4  ;;  %s2020_s5 = int_to_ptr.vmem [resolvable:$true] %s2019_s5 }
 0x15d   : > { %v935_v11 = vrot.slane %v4457_v10, %v934_v9  ;;  %2664 = vmatprep.subr.bf16.mxu1 %v3101_v41  ;;  %2682 = vmatprep.subr.bf16.mxu0 %v3102_v42  ;;  %v3109_v49 = vld [vmem:[#allocation14 + $0x50] sm:$0xff]   ;;  %v3110_v50 = vld [vmem:[#allocation14 + $0x18] sm:$0xff]   ;;  %v3113_v53 = vld [vmem:[#allocation14 + $0x40] sm:$0xff]   ;;  %s2476_s0 = sshll.u32 %s5028_s17, 3  ;;  %s1974_s12 = scalar_lea.sflag [#allocation21], %s4386_s10 }
 0x15e   : > { %v3112_v52 = vld [vmem:[#allocation14 + $0x10] sm:$0xff]   ;;  %v3114_v54 = vld [vmem:[#allocation14 + $0x8] sm:$0xff]   ;;  %v3115_v55 = vld [vmem:[#allocation14] sm:$0xff]   ;;  %s2477_s14 = sadd.s32 4294967288, %s2476_s0  ;;  %s3820_s20 = smov [#allocation20]  }
 0x15f   : > { %2659 = vmatmul.mubr.msk.bf16.vlgmr.msra.gmra.mxu0 %vm948_vm0, %v927_v6  ;;  %v4491_v56 = vld [vmem:[#allocation14 + $0xb8] sm:$0xff]   ;;  %vm1480_vm0 = vcmask 1046528  }
 0x160   : > { %2665 = vmatpush3.bf16.msra.mxu1 %v3101_v41  ;;  %2683 = vmatpush3.bf16.msra.mxu0 %v3102_v42 }
 0x161   : > { %2666 = vmatprep.subr.bf16.mxu1 %v3103_v43  ;;  %2684 = vmatprep.subr.bf16.mxu0 %v3104_v44  ;;  %s2805_s4 = smul.u32 3, %s5031_s23 }
 0x162   : > { %p5035_p1 = scmp.ne.s32.totalorder %s5032_s16, 0 }
 0x163   : > { %s2000_s27 = sadd.s32 %s5028_s17, %s2805_s4 }
 0x164   : > { %2667 = vmatpush3.bf16.msra.mxu1 %v3103_v43  ;;  %2685 = vmatpush3.bf16.msra.mxu0 %v3104_v44  ;;  %s4610_s6 = sshll.u32 %s2000_s27, 7 }
 0x165   : > { %2668 = vmatprep.subr.bf16.mxu1 %v3105_v45  ;;  %2686 = vmatprep.subr.bf16.mxu0 %v3106_v46 }
 0x168   : > { %2669 = vmatpush3.bf16.msra.mxu1 %v3105_v45  ;;  %2687 = vmatpush3.bf16.msra.mxu0 %v3106_v46 }
 0x169   : > { %2670 = vmatprep.subr.bf16.mxu1 %v3107_v47  ;;  %2688 = vmatprep.subr.bf16.mxu0 %v3108_v48 }
 0x16c   : > { %2671 = vmatpush3.bf16.msra.mxu1 %v3107_v47  ;;  %2689 = vmatpush3.bf16.msra.mxu0 %v3108_v48 }
 0x16d   : > { %2672 = vmatprep.subr.bf16.mxu1 %v3109_v49  ;;  %2690 = vmatprep.subr.bf16.mxu0 %v3110_v50 }
 0x170   : > { %2673 = vmatpush3.bf16.msra.mxu1 %v3109_v49  ;;  %2691 = vmatpush3.bf16.msra.mxu0 %v3110_v50  ;;  %v3117_v50 = vld [vmem:[#allocation14 + $0xb0] sm:$0xff]  }
 0x171   : > { %2674 = vmatprep.subr.bf16.mxu1 %v3111_v51  ;;  %2692 = vmatprep.subr.bf16.mxu0 %v3112_v52 }
 0x174   : > { %2675 = vmatpush3.bf16.msra.mxu1 %v3111_v51  ;;  %2693 = vmatpush3.bf16.msra.mxu0 %v3112_v52 }
 0x175   : > { %2676 = vmatprep.subr.bf16.mxu1 %v3113_v53  ;;  %2694 = vmatprep.subr.bf16.mxu0 %v3114_v54 }
 0x178   : > { %2677 = vmatpush3.bf16.msra.mxu1 %v3113_v53  ;;  %2695 = vmatpush3.bf16.msra.mxu0 %v3114_v54  ;;  %v3118_v54 = vld [vmem:[#allocation14 + $0xa8] sm:$0xff]  }
 0x179   : > { %2696 = vmatprep.subr.bf16.mxu0 %v3115_v55  ;;  %2702 = vmatprep.subr.bf16.mxu1 %v4491_v56 }
 0x17c   : > { %2697 = vmatpush3.bf16.msra.mxu0 %v3115_v55  ;;  %v3119_v55 = vld [vmem:[#allocation14 + $0xa0] sm:$0xff]  }
 0x21f   : > { %v2660_v12 = vpop.f32.mrf.mxu0 }
 0x220   : > { %v998_v13 = vadd.f32 %v2660_v12, %v935_v11 }
 0x221   : > { %v989_v14 = vpop.f32.mrf.mxu0 }
 0x222   : > { %v1005_v16 = vmax.f32 %v998_v13, 0.0  ;;  %v990_v17 = vadd.f32 %v989_v14, %v935_v11  ;;  %v1069_v13 = vsub.s32 1, %v4451_v8  ;;  %v1076_v14 = vsub.s32 2, %v4451_v8 }
 0x223   : > { %v2661_v18 = vpop.f32.mrf.mxu0 }
 0x224   : > { %v1003_v20 = vmax.f32 %v990_v17, 0.0  ;;  %v1008_v21 = vadd.f32 %v1005_v16, %v924_v15  ;;  %v1070_v15 = vrot.slane %v4457_v10, %v1069_v13  ;;  %v1011_v18 = vadd.s32 8, %v4451_v8  ;;  %v3137_v13 = vld [vmem:[#allocation16 + $0x40] sm:$0xff]  }
 0x225   : > { %v992_v22 = vpop.f32.mrf.mxu0 }
 0x226   : > { %v993_v23 = vadd.f32 %v992_v22, %v935_v11  ;;  %1029 = vadd.xlane.f32.xlu1 %v1008_v21  ;;  %v1006_v24 = vadd.f32 %v1003_v20, %v922_v19  ;;  %v1077_v19 = vrot.slane %v4457_v10, %v1076_v14  ;;  %v1015_v20 = vstv %s2477_s14  ;;  %v3138_v14 = vld [vmem:[#allocation16 + $0x8] sm:$0xff]   ;;  %s5033_s14 = sld [smem:[#allocation81_spill]] }
 0x228   : > { %v1004_v26 = vmax.f32 %v993_v23, 0.0  ;;  %1025 = vadd.xlane.f32.xlu0 %v1006_v24  ;;  %v1012_v23 = vadd.s32 16, %v4451_v8 }
 0x22a   : > { %v4466_v27 = vadd.f32 %v1004_v26, %v923_v25  ;;  %v1016_v26 = vadd.s32 %v1015_v20, %v4451_v8 }
 0x22c   : > { %1027 = vadd.xlane.f32.xlu0 %v4466_v27  ;;  %vm2578_vm3 = vcmp.ne.s32.totalorder %v1016_v26, 0  ;;  %vm2579_vm6 = vcmp.ne.s32.totalorder %v1016_v26, 23  ;;  %s5034_s8 = smov %s5033_s14  ;;  %s2017_s26 = scalar_lea.hbm %s5033_s14, %s4610_s6 }
 0x2af   : > { %v1030_v28 = vpop.xlane.xlu1 %1029 }
 0x2b0   : > { %v4469_v30 = vmul.f32 0.03125, %v1030_v28  ;;  %v4510_v28 = vadd.s32 %v1015_v20, %v1011_v18 }
 0x2b1   : > { %v1026_v29 = vpop.xlane.xlu0 %1025 }
 0x2b2   : > { %v4471_v31 = vmul.f32 0.03125, %v1026_v29  ;;  %v4481_v36 = vsub.f32 %v1008_v21, %v4469_v30  ;;  %v1048_v59 = vmul.f32 96.0, %v4469_v30  ;;  %vm2580_vm2 = vcmp.ne.s32.totalorder %v4510_v28, 0 }
 0x2b3   : > { %vm2582_vm5 = vcmp.ne.s32.totalorder %v4510_v28, 23  ;;  %vm2496_vm8 = vmpackc.low %vm2580_vm2, %vm2578_vm3 }
 0x2b4   : > { %v4474_v32 = vsub.f32 %v1006_v24, %v4471_v31  ;;  %v1039_v38 = vmul.f32 %v4481_v36, %v4481_v36  ;;  %v1046_v57 = vmul.f32 96.0, %v4471_v31  ;;  %v1051_v0 = vmul.f32 %v1048_v59, %v4469_v30  ;;  %vm2514_vm9 = vmpackc.low %vm2582_vm5, %vm2579_vm6  ;;  %v3122_v59 = vld [vmem:[#allocation14 + $0x88] sm:$0xff]  }
 0x2b5   : > { %v1028_v33 = vpop.xlane.xlu0 %1027  ;;  %vm2541_vm15 = vmpackc.low %vm2580_vm2, %vm2580_vm2 }
 0x2b6   : > { %v4476_v34 = vmul.f32 0.03125, %v1028_v33  ;;  %v1037_v35 = vmul.f32 %v4474_v32, %v4474_v32  ;;  %v1049_v58 = vmul.f32 %v1046_v57, %v4471_v31  ;;  %v1018_v33 = vadd.s32 %v1015_v20, %v1012_v23  ;;  %v3120_v57 = vld [vmem:[#allocation14 + $0x98] sm:$0xff]  }
 0x2b8   : > { %1040 = vadd.xlane.f32.xlu1 %v1037_v35  ;;  %v4485_v37 = vsub.f32 %v4466_v27, %v4476_v34  ;;  %v1047_v60 = vmul.f32 96.0, %v4476_v34  ;;  %vm2581_vm7 = vcmp.ne.s32.totalorder %v1018_v33, 0  ;;  %vm2583_vm11 = vcmp.ne.s32.totalorder %v1018_v33, 23 }
 0x2b9   : > { %vm2501_vm10 = vmpackc.low %vm2581_vm7, %vm2581_vm7 }
 0x2ba   : > { %v1038_v39 = vmul.f32 %v4485_v37, %v4485_v37  ;;  %v1050_v1 = vmul.f32 %v1047_v60, %v4476_v34  ;;  %vm2519_vm12 = vmpackc.low %vm2583_vm11, %vm2583_vm11 }
 0x2bc   : > { %1044 = vadd.xlane.f32.xlu1 %v1039_v38  ;;  %1042 = vadd.xlane.f32.xlu0 %v1038_v39 }
 0x341   : > { %v1041_v61 = vpop.xlane.xlu1 %1040 }
 0x342   : > { %v1052_v62 = vsub.f32 %v1041_v61, %v1049_v58  ;;  %v3121_v58 = vld [vmem:[#allocation14 + $0x90] sm:$0xff]   ;;  %v3124_v61 = vld [vmem:[#allocation16 + $0x78] sm:$0xff]  }
 0x344   : > { %v1055_v63 = vmul.f32 0.03125, %v1052_v62  ;;  %v3126_v62 = vld [vmem:[#allocation16 + $0x38] sm:$0xff]  }
 0x345   : > { %v1045_v2 = vpop.xlane.xlu1 %1044  ;;  %v1043_v3 = vpop.xlane.xlu0 %1042 }
 0x346   : > { %v1058_v4 = vadd.f32 1e-06, %v1055_v63  ;;  %v1054_v5 = vsub.f32 %v1045_v2, %v1051_v0  ;;  %v1053_v6 = vsub.f32 %v1043_v3, %v1050_v1  ;;  %v3818_v63 = vmov 0.0   ;;  %v3125_v0 = vld [vmem:[#allocation16 + $0x70] sm:$0xff]   ;;  %v3127_v2 = vld [vmem:[#allocation16 + $0x68] sm:$0xff]  }
 0x347   : > { %2722 = vmatprep.subr.bf16.mxu0 %v3818_v63  ;;  %v3128_v1 = vld [vmem:[#allocation16 + $0x30] sm:$0xff]   ;;  %v3130_v3 = vld [vmem:[#allocation16 + $0x28] sm:$0xff]  }
 0x348   : > { %3156 = vrsqrt.f32 %v1058_v4  ;;  %v1057_v7 = vmul.f32 0.03125, %v1054_v5  ;;  %v1056_v9 = vmul.f32 0.03125, %v1053_v6  ;;  %v3129_v4 = vld [vmem:[#allocation16 + $0x60] sm:$0xff]   ;;  %v3131_v6 = vld [vmem:[#allocation16 + $0x58] sm:$0xff]  }
 0x349   : > { %v3132_v5 = vld [vmem:[#allocation16 + $0x20] sm:$0xff]  }
 0x34a   : > { %v1060_v11 = vadd.f32 1e-06, %v1057_v7  ;;  %v1059_v12 = vadd.f32 1e-06, %v1056_v9  ;;  %v3133_v7 = vld [vmem:[#allocation16 + $0x50] sm:$0xff]   ;;  %v3134_v9 = vld [vmem:[#allocation16 + $0x18] sm:$0xff]  }
 0x34c   : > { %3158 = vrsqrt.f32 %v1060_v11  ;;  %v3135_v11 = vld [vmem:[#allocation16 + $0x48] sm:$0xff]  }
 0x34d   : > { %3160 = vrsqrt.f32 %v1059_v12  ;;  %v3136_v12 = vld [vmem:[#allocation16 + $0x10] sm:$0xff]  }
 0x355   : > { %v3157_v16 = vpop.eup %3156 }
 0x356   : > { %v1064_v17 = vmul.f32 %v3157_v16, %v4474_v32 }
 0x358   : > { %v1071_v21 = vmul.f32 %v1070_v15, %v1064_v17 }
 0x359   : > { %v3159_v22 = vpop.eup %3158 }
 0x35a   : > { %v3161_v24 = vpop.eup %3160  ;;  %v1066_v25 = vmul.f32 %v3159_v22, %v4481_v36  ;;  %v1078_v30 = vadd.f32 %v1077_v19, %v1071_v21 }
 0x35b   : > { %v1065_v29 = vmul.f32 %v3161_v24, %v4485_v37 }
 0x35c   : > { %v1073_v31 = vmul.f32 %v1070_v15, %v1066_v25  ;;  %v1081_v36 = vrot.slane %v1078_v30, 7  ;;  %v1097_v38 = vrot.slane %v1078_v30, 1 }
 0x35d   : > { %v1072_v32 = vmul.f32 %v1070_v15, %v1065_v29  ;;  %v3139_v15 = vld [vmem:[#allocation16] sm:$0xff]  }
 0x35e   : > { %v1080_v34 = vadd.f32 %v1077_v19, %v1073_v31 }
 0x35f   : > { %v1079_v35 = vadd.f32 %v1077_v19, %v1072_v32 }
 0x360   : > { %v1132_v39 = vpack.c.bf16 %v1080_v34, %v1080_v34  ;;  %v1083_v37 = vrot.slane %v1080_v34, 7  ;;  %v1099_v40 = vrot.slane %v1080_v34, 1 }
 0x361   : > { %v1082_v41 = vrot.slane %v1079_v35, 7  ;;  %v1098_v42 = vrot.slane %v1079_v35, 1  ;;  %v1131_v43 = vpack.c.bf16 %v1079_v35, %v1078_v30  ;;  %v2522_v30 = vld [vmem:[%s5029_s22] ss:$0 sm:$0xff]  ;;  %s3444_s22 = scalar_lea.vmem %s2020_s5, 128 }
 0x362   : > { %v1087_v44 = vsel %vm1084_vm1, %v1083_v37, %v1081_v36  ;;  %v1103_v45 = vsel %vm1100_vm4, %v1099_v40, %v1097_v38  ;;  %p3445_p9 = scmp.ne.s32.totalorder %s2020_s5, %s3444_s22 }
 0x363   : > { %2678 = vmatprep.mubr.bf16.mxu1 %v1131_v43  ;;  %v1086_v46 = vsel %vm1084_vm1, %v1081_v36, %v1082_v41  ;;  %v1101_v47 = vsel %vm1100_vm4, %v1098_v42, %v1099_v40  ;;  %v1102_v48 = vsel %vm1100_vm4, %v1097_v38, %v1098_v42  ;;  %v1085_v49 = vsel %vm1084_vm1, %v1082_v41, %v1083_v37  ;;  %v3140_v37 = vld [vmem:[#allocation16 + $0xb8] sm:$0xff]   ;;  %vm2554_vm1 = vmpackc.low %vm2582_vm5, %vm2582_vm5 }
 0x364   : > { %2679 = vmatmul.mubr.bf16.vlgmr.msra.gmra.mxu1 %v1132_v39  ;;  %v2497_v51 = vpack.c.bf16 %v1086_v46, %v1087_v44  ;;  %v2515_v52 = vpack.c.bf16 %v1101_v47, %v1102_v48  ;;  %v2502_v53 = vpack.c.bf16 %v1085_v49, %v1085_v49  ;;  %v2520_v60 = vpack.c.bf16 %v1103_v45, %v1103_v45  ;;  %v3141_v45 = vld [vmem:[#allocation16 + $0xb0] sm:$0xff]   ;;  %v3142_v46 = vld [vmem:[#allocation16 + $0xa8] sm:$0xff]   ;;  %v3143_v47 = vld [vmem:[#allocation16 + $0xa0] sm:$0xff]   ;;  %p3446_p2 = pnand %p3445_p9, %p5035_p1 }
 0x365   : > { %2703 = vmatpush3.bf16.msra.mxu1 %v4491_v56  ;;  %v3123_v56 = vld [vmem:[#allocation14 + $0x80] sm:$0xff]  }
 0x366   : > { %2698 = vmatprep.mubr.msk.bf16.mxu0 %vm2496_vm8, %v2497_v51  ;;  %2718 = vmatprep.mubr.msk.bf16.mxu1 %vm2514_vm9, %v2515_v52  ;;  %v3145_v52 = vld [vmem:[#allocation16 + $0x90] sm:$0xff]   ;;  %p3447_p11 = pneg %p3446_p2 }
 0x367   : > { %2699 = vmatmul.mubr.msk.bf16.vlgmr.msra.gmra.mxu0 %vm2501_vm10, %v2502_v53  ;;  %2704 = vmatprep.subr.bf16.mxu1 %v3117_v50 }
 0x368   : > { %2723 = vmatpush3.bf16.msra.mxu0 %v3124_v61  ;;  %2738 = vmatprep.mubr.msk.bf16.mxu0 %vm3819_vm13, %v3818_v63 }
 0x369   : > { %2705 = vmatpush3.bf16.msra.mxu1 %v3117_v50  ;;  %2724 = vmatprep.subr.bf16.mxu0 %v3818_v63  ;;  %v3144_v50 = vld [vmem:[#allocation16 + $0x98] sm:$0xff]  }
 0x36a   : > { %2706 = vmatprep.subr.bf16.mxu1 %v3118_v54 }
 0x36c   : > { %2725 = vmatpush3.bf16.msra.mxu0 %v3125_v0 }
 0x36d   : > { %2707 = vmatpush3.bf16.msra.mxu1 %v3118_v54  ;;  %2726 = vmatprep.subr.bf16.mxu0 %v3818_v63  ;;  %v3146_v54 = vld [vmem:[#allocation16 + $0x88] sm:$0xff]  }
 0x36e   : > { %2708 = vmatprep.subr.bf16.mxu1 %v3119_v55 }
 0x370   : > { %2727 = vmatpush3.bf16.msra.mxu0 %v3127_v2 }
 0x371   : > { %2709 = vmatpush3.bf16.msra.mxu1 %v3119_v55  ;;  %2728 = vmatprep.subr.bf16.mxu0 %v3818_v63 }
 0x372   : > { %2710 = vmatprep.subr.bf16.mxu1 %v3120_v57 }
 0x374   : > { %2729 = vmatpush3.bf16.msra.mxu0 %v3129_v4 }
 0x375   : > { %2711 = vmatpush3.bf16.msra.mxu1 %v3120_v57  ;;  %2730 = vmatprep.subr.bf16.mxu0 %v3818_v63 }
 0x376   : > { %2712 = vmatprep.subr.bf16.mxu1 %v3121_v58 }
 0x378   : > { %2731 = vmatpush3.bf16.msra.mxu0 %v3131_v6 }
 0x379   : > { %2713 = vmatpush3.bf16.msra.mxu1 %v3121_v58  ;;  %2732 = vmatprep.subr.bf16.mxu0 %v3818_v63  ;;  %v3147_v58 = vld [vmem:[#allocation16 + $0x80] sm:$0xff]  }
 0x37a   : > { %2714 = vmatprep.subr.bf16.mxu1 %v3122_v59 }
 0x37c   : > { %2733 = vmatpush3.bf16.msra.mxu0 %v3133_v7 }
 0x37d   : > { %2715 = vmatpush3.bf16.msra.mxu1 %v3122_v59  ;;  %2734 = vmatprep.subr.bf16.mxu0 %v3818_v63 }
 0x37e   : > { %2716 = vmatprep.subr.bf16.mxu1 %v3123_v56 }
 0x380   : > { %2735 = vmatpush3.bf16.msra.mxu0 %v3135_v11 }
 0x381   : > { %2717 = vmatpush3.bf16.msra.mxu1 %v3123_v56  ;;  %2736 = vmatprep.subr.bf16.mxu0 %v3818_v63 }
 0x382   : > { %2742 = vmatprep.subr.bf16.mxu1 %v3818_v63 }
 0x384   : > { %2719 = vmatmul.mubr.msk.bf16.vlgmr.msra.gmra.mxu1 %vm2519_vm12, %v2520_v60  ;;  %2737 = vmatpush3.bf16.msra.mxu0 %v3137_v13 }
 0x385   : > { %2743 = vmatpush3.bf16.msra.mxu1 %v3126_v62  ;;  %2762 = vmatprep.subr.bf16.mxu0 %v3818_v63 }
 0x386   : > { %2744 = vmatprep.subr.bf16.mxu1 %v3818_v63  ;;  %2758 = vmatprep.mubr.msk.bf16.mxu1 %vm3819_vm13, %v3818_v63 }
 0x389   : > { %2745 = vmatpush3.bf16.msra.mxu1 %v3128_v1 }
 0x38a   : > { %2746 = vmatprep.subr.bf16.mxu1 %v3818_v63 }
 0x38d   : > { %2747 = vmatpush3.bf16.msra.mxu1 %v3130_v3 }
 0x38e   : > { %2748 = vmatprep.subr.bf16.mxu1 %v3818_v63 }
 0x391   : > { %2749 = vmatpush3.bf16.msra.mxu1 %v3132_v5  ;;  %v1805_v5 = vsub.s32 3, %v4451_v8 }
 0x392   : > { %2750 = vmatprep.subr.bf16.mxu1 %v3818_v63 }
 0x393   : > { %v1806_v28 = vrot.slane %v4457_v10, %v1805_v5 }
 0x395   : > { %2751 = vmatpush3.bf16.msra.mxu1 %v3134_v9 }
 0x396   : > { %2752 = vmatprep.subr.bf16.mxu1 %v3818_v63 }
 0x399   : > { %2753 = vmatpush3.bf16.msra.mxu1 %v3136_v12 }
 0x39a   : > { %2754 = vmatprep.subr.bf16.mxu1 %v3818_v63 }
 0x39d   : > { %2755 = vmatpush3.bf16.msra.mxu1 %v3138_v14 }
 0x39e   : > { %2756 = vmatprep.subr.bf16.mxu1 %v3818_v63 }
 0x3a1   : > { %2757 = vmatpush3.bf16.msra.mxu1 %v3139_v15 }
 0x3a2   : > { %2782 = vmatprep.subr.bf16.mxu1 %v3818_v63 }
 0x424   : > { %v2680_v16 = vpop.f32.mrf.mxu1 }
 0x426   : > { %v1231_v17 = vpop.f32.mrf.mxu1 }
 0x427   : > { %v2700_v18 = vpop.f32.mrf.mxu0 }
 0x428   : > { %v2681_v19 = vpop.f32.mrf.mxu1  ;;  %v1336_v48 = vadd.f32 %v2700_v18, %v2680_v16  ;;  %v3148_v16 = vld [vmem:[#allocation17 + $0x38] sm:$0xff]  }
 0x429   : > { %v1327_v20 = vpop.f32.mrf.mxu0 }
 0x42a   : > { %v1234_v22 = vpop.f32.mrf.mxu1  ;;  %v1328_v24 = vadd.f32 %v1327_v20, %v1231_v17 }
 0x42b   : > { %v2701_v21 = vpop.f32.mrf.mxu0 }
 0x42c   : > { %v3149_v21 = vld [vmem:[#allocation17 + $0x30] sm:$0xff]  }
 0x42d   : > { %v1330_v25 = vpop.f32.mrf.mxu0 }
 0x42e   : > { %v1331_v32 = vadd.f32 %v1330_v25, %v1234_v22  ;;  %v3150_v22 = vld [vmem:[#allocation17 + $0x28] sm:$0xff]  }
 0x42f   : > { %v3154_v25 = vld [vmem:[#allocation17 + $0x8] sm:$0xff]  }
 0x444   : > { %v2720_v23 = vpop.f32.mrf.mxu1 }
 0x445   : > { %v1457_v49 = vadd.f32 %v2720_v23, %v1336_v48  ;;  %v3152_v23 = vld [vmem:[#allocation17 + $0x18] sm:$0xff]  }
 0x446   : > { %v1441_v26 = vpop.f32.mrf.mxu1 }
 0x447   : > { %v1455_v29 = vadd.f32 %v1441_v26, %v1328_v24  ;;  %v1467_v51 = vadd.f32 %v2522_v30, %v1457_v49  ;;  %v3153_v24 = vld [vmem:[#allocation17 + $0x10] sm:$0xff]   ;;  %v3155_v26 = vld [vmem:[#allocation17] sm:$0xff]  }
 0x448   : > { %v2721_v31 = vpop.f32.mrf.mxu1 }
 0x449   : > { %v1465_v33 = vadd.f32 %v2522_v30, %v1455_v29  ;;  %v1470_v53 = vmax.f32 %v1467_v51, 0.0 }
 0x44a   : > { %v1444_v34 = vpop.f32.mrf.mxu1 }
 0x44b   : > { %v1456_v35 = vadd.f32 %v1444_v34, %v1331_v32  ;;  %v1468_v36 = vmax.f32 %v1465_v33, 0.0  ;;  %v1482_v57 = vrot.slane %v1470_v53, 1 }
 0x44d   : > { %v1466_v38 = vadd.f32 %v2522_v30, %v1456_v35  ;;  %v1474_v40 = vrot.slane %v1468_v36, 7  ;;  %v1824_v35 = vsub.s32 4, %v4451_v8  ;;  %v1829_v36 = vsub.s32 5, %v4451_v8 }
 0x44f   : > { %v1469_v39 = vmax.f32 %v1466_v38, 0.0  ;;  %v1825_v38 = vrot.slane %v4457_v10, %v1824_v35 }
 0x451   : > { %v1475_v41 = vrot.slane %v1469_v39, 7  ;;  %v1503_v42 = vpack.c.bf16 %v1469_v39, %v1469_v39  ;;  %v1481_v55 = vrot.slane %v1469_v39, 1 }
 0x453   : > { %v1476_v43 = vsel %vm1473_vm14, %v1474_v40, %v1475_v41  ;;  %2739 = vmatmul.mubr.bf16.vlgmr.msra.gmra.mxu0 %v1503_v42  ;;  %v1483_v59 = vsel %vm1480_vm0, %v1481_v55, %v1482_v57 }
 0x454   : > { %2763 = vmatpush3.bf16.msra.mxu0 %v3140_v37  ;;  %v2542_v44 = vpack.c.bf16 %v1476_v43, %v1476_v43  ;;  %2778 = vmatprep.mubr.msk.bf16.mxu0 %vm3819_vm13, %v3818_v63  ;;  %v2555_v56 = vpack.c.bf16 %v1483_v59, %v1483_v59 }
 0x455   : > { %2764 = vmatprep.subr.bf16.mxu0 %v3818_v63 }
 0x456   : > { %2759 = vmatmul.mubr.msk.bf16.vlgmr.msra.gmra.mxu1 %vm2541_vm15, %v2542_v44 }
 0x457   : > { %2798 = vmatprep.mubr.msk.bf16.mxu1 %vm3819_vm13, %v3818_v63  ;;  %2783 = vmatpush3.bf16.msra.mxu1 %v3148_v16 }
 0x458   : > { %2765 = vmatpush3.bf16.msra.mxu0 %v3141_v45  ;;  %2784 = vmatprep.subr.bf16.mxu1 %v3818_v63 }
 0x459   : > { %2766 = vmatprep.subr.bf16.mxu0 %v3818_v63 }
 0x45b   : > { %2785 = vmatpush3.bf16.msra.mxu1 %v3149_v21 }
 0x45c   : > { %2767 = vmatpush3.bf16.msra.mxu0 %v3142_v46  ;;  %2786 = vmatprep.subr.bf16.mxu1 %v3818_v63 }
 0x45d   : > { %2768 = vmatprep.subr.bf16.mxu0 %v3818_v63 }
 0x45f   : > { %2787 = vmatpush3.bf16.msra.mxu1 %v3150_v22 }
 0x460   : > { %2769 = vmatpush3.bf16.msra.mxu0 %v3143_v47  ;;  %2788 = vmatprep.subr.bf16.mxu1 %v3818_v63 }
 0x461   : > { %2770 = vmatprep.subr.bf16.mxu0 %v3818_v63 }
 0x464   : > { %2771 = vmatpush3.bf16.msra.mxu0 %v3144_v50 }
 0x465   : > { %2772 = vmatprep.subr.bf16.mxu0 %v3818_v63 }
 0x468   : > { %2773 = vmatpush3.bf16.msra.mxu0 %v3145_v52 }
 0x469   : > { %2774 = vmatprep.subr.bf16.mxu0 %v3818_v63 }
 0x46c   : > { %2775 = vmatpush3.bf16.msra.mxu0 %v3146_v54 }
 0x46d   : > { %2776 = vmatprep.subr.bf16.mxu0 %v3818_v63 }
 0x470   : > { %2777 = vmatpush3.bf16.msra.mxu0 %v3147_v58 }
 0x473   : > { %2779 = vmatmul.mubr.msk.bf16.vlgmr.msra.gmra.mxu0 %vm2554_vm1, %v2555_v56 }
 0x513   : > { %v1602_v60 = vpop.f32.mrf.mxu0 }
 0x515   : > { %v2740_v61 = vpop.f32.mrf.mxu0 }
 0x516   : > { %v1690_v62 = vpop.f32.mrf.mxu1 }
 0x517   : > { %v1605_v0 = vpop.f32.mrf.mxu0  ;;  %v1691_v6 = vadd.f32 %v1690_v62, %v1602_v60 }
 0x518   : > { %v2760_v1 = vpop.f32.mrf.mxu1 }
 0x519   : > { %v2741_v2 = vpop.f32.mrf.mxu0 }
 0x51a   : > { %v1693_v3 = vpop.f32.mrf.mxu1 }
 0x51c   : > { %v2761_v4 = vpop.f32.mrf.mxu1 }
 0x533   : > { %v1795_v7 = vpop.f32.mrf.mxu0 }
 0x534   : > { %v1801_v9 = vadd.f32 %v1795_v7, %v1691_v6 }
 0x535   : > { %v2780_v11 = vpop.f32.mrf.mxu0 }
 0x536   : > { %v1802_v12 = vadd.f32 %v1801_v9, %v4466_v27  ;;  %v3151_v27 = vld [vmem:[#allocation17 + $0x20] sm:$0xff]  }
 0x537   : > { %v1798_v13 = vpop.f32.mrf.mxu0  ;;  %2789 = vmatpush3.bf16.msra.mxu1 %v3151_v27 }
 0x538   : > { %v1807_v14 = vadd.f32 %v1806_v28, %v1802_v12  ;;  %2790 = vmatprep.subr.bf16.mxu1 %v3818_v63 }
 0x539   : > { %v2781_v15 = vpop.f32.mrf.mxu0 }
 0x53a   : > { %1808 = vadd.xlane.f32.xlu0 %v1807_v14 }
 0x53b   : > { %2791 = vmatpush3.bf16.msra.mxu1 %v3152_v23 }
 0x53c   : > { %2792 = vmatprep.subr.bf16.mxu1 %v3818_v63 }
 0x53f   : > { %2793 = vmatpush3.bf16.msra.mxu1 %v3153_v24 }
 0x540   : > { %2794 = vmatprep.subr.bf16.mxu1 %v3818_v63 }
 0x543   : > { %2795 = vmatpush3.bf16.msra.mxu1 %v3154_v25 }
 0x544   : > { %2796 = vmatprep.subr.bf16.mxu1 %v3818_v63  ;;  %v1830_v63 = vrot.slane %v4457_v10, %v1829_v36  ;;  %v2557_v10 = vld [vmem:[%s5030_s9] ss:$0 sm:$0xff]  ;;  %s3448_s9 = sshll.u32 %s3820_s20, 4  ;;  %s3449_s9 = int_to_ptr.vmem [resolvable:$false] %s3448_s9 }
 0x545   : > { %s3450_s23 = scalar_lea.vmem %s3449_s9, 256  ;;  %p3451_p6 = scmp.lt.s32.totalorder %s2020_s5, %s3449_s9 }
 0x546   : > { %p3452_p3 = scmp.lt.s32.totalorder %s3450_s23, %s3444_s22 }
 0x547   : > { %2797 = vmatpush3.bf16.msra.mxu1 %v3155_v26 }
 0x548   : > { %p3453_p8 = por %p3452_p3, %p3451_p6 }
 0x54a   : > { %p3454_p4 = pnand %p3453_p8, %p3447_p11 }
 0x5c3   : > { %v1809_v17 = vpop.xlane.xlu0 %1808 }
 0x5c4   : > { %v1810_v18 = vmul.f32 0.03125, %v1809_v17 }
 0x5c6   : > { %v1811_v19 = vsub.f32 %v1807_v14, %v1810_v18  ;;  %v1815_v29 = vmul.f32 96.0, %v1810_v18 }
 0x5c8   : > { %v1812_v20 = vmul.f32 %v1811_v19, %v1811_v19  ;;  %v1816_v30 = vmul.f32 %v1815_v29, %v1810_v18 }
 0x5ca   : > { %1813 = vadd.xlane.f32.xlu1 %v1812_v20 }
 0x653   : > { %v1814_v31 = vpop.xlane.xlu1 %1813 }
 0x654   : > { %v1817_v32 = vsub.f32 %v1814_v31, %v1816_v30 }
 0x656   : > { %v1818_v33 = vmul.f32 0.03125, %v1817_v32 }
 0x658   : > { %v1819_v34 = vadd.f32 1e-06, %v1818_v33 }
 0x65a   : > { %3162 = vrsqrt.f32 %v1819_v34 }
 0x667   : > { %v3163_v39 = vpop.eup %3162 }
 0x668   : > { %v1821_v37 = vmul.f32 %v3163_v39, %v1811_v19 }
 0x66a   : > { %v1826_v40 = vmul.f32 %v1825_v38, %v1821_v37 }
 0x66c   : > { %v1831_v41 = vadd.f32 %v1830_v63, %v1826_v40 }
 0x66e   : > { %v1840_v42 = vpack.c.bf16 %v1831_v41, %v1831_v41  ;;  %v1833_v43 = vmul.f32 %v1831_v41, %v1831_v41  ;;  %1832 = vst [vmem:[%s877_s3] sm:$0xff] %v1831_v41 }
 0x670   : > { %2799 = vmatmul.mubr.bf16.vlgmr.msra.gmra.mxu1 %v1840_v42  ;;  %1834 = vadd.xlane.f32.xlu1 %v1833_v43 }
 0x6f9   : > { %v1835_v44 = vpop.xlane.xlu1 %1834 }
 0x6fa   : > { %v1836_v8 = vmax.f32 %v1835_v44, 1e-24 }
 0x6fc   : > { %3164 = vrsqrt.f32 %v1836_v8 }
 0x709   : > { %v3165_v45 = vpop.eup %3164 }
 0x70a   : > { %v1838_v46 = vmul.f32 %v3165_v45, %v1831_v41 }
 0x70c   : > { %1839 = vst [vmem:[%s884_s19] sm:$0xff] %v1838_v46 }
 0x730   : > { %v1946_v47 = vpop.f32.mrf.mxu1 }
 0x731   : > { %v1947_v48 = vadd.f32 %v2557_v10, %v1946_v47 }
 0x732   : > { %v2800_v49 = vpop.f32.mrf.mxu1 }
 0x733   : > { %1952 = vst [vmem:[%s891_s24] sm:$0xff] %v1947_v48  ;;  %1953 = vmax.xlane.f32.xlu0 %v1947_v48 }
 0x734   : > { %v1949_v50 = vpop.f32.mrf.mxu1 }
 0x736   : > { %v2801_v51 = vpop.f32.mrf.mxu1 }
 0x7bc   : > { %v1954_v52 = vpop.xlane.xlu0 %1953 }
 0x7bd   : > { %v4602_v53 = vsub.f32 %v1947_v48, %v1954_v52 }
 0x7bf   : > { %v1956_v54 = vmul.f32 1.442695, %v4602_v53 }
 0x7c1   : > { %3166 = vpow2.f32 %v1956_v54 }
 0x7ce   : > { %v4605_v55 = vpop.eup %3166 }
 0x7cf   : > { %1958 = vadd.xlane.f32.xlu0 %v4605_v55 }
 0x7d0   : > { %3457 = shalt.err (!%p3454_p4)
}
 0x7d1   : > { %s3458_s17 = scalar_lea.hbm %s2017_s26, 128  ;;  %s3462_s27 = scalar_lea.hbm %s5034_s8, 768 }
 0x7d2   : > { %p3459_p12 = scmp.ne.s32.totalorder %s2017_s26, %s3458_s17  ;;  %p3463_p5 = scmp.lt.s32.totalorder %s2017_s26, %s5034_s8 }
 0x7d3   : > { %p3464_p7 = scmp.lt.s32.totalorder %s3462_s27, %s3458_s17 }
 0x7d4   : > { %p3460_p13 = pnand %p3459_p12, %p5035_p1 }
 0x7d5   : > { %p3465_p10 = por %p3464_p7, %p3463_p5 }
 0x7d6   : > { %p3461_p0 = pneg %p3460_p13 }
 0x7d8   : > { %p3466_p9 = pnand %p3465_p10, %p3461_p0 }
 0x7da   : > { %3469 = shalt.err (!%p3466_p9)
}
 0x7db   : > { %2839 = dma.vmem_to_hbm [thread:$0]  (%p5035_p1), %s2020_s5, 128, %s2017_s26, %s1974_s12  }
 0x7dc   : > { %s4633_s14 = sshll.u32 %s891_s24, 4  ;;  %s5036_s9 = sld [smem:[#allocation80_spill]]  ;;  %s2035_s14 = int_to_ptr.vmem [resolvable:$true] %s4633_s14 }
 0x7dd   : > { %s2004_s17 = sshll.u32 %s877_s3, 4  ;;  %s5038_s11 = sld [smem:[#allocation82_spill]]  ;;  %s2005_s17 = int_to_ptr.vmem [resolvable:$true] %s2004_s17 }
 0x7de   : > { %s5039_s8 = sand.u32 1, %s5012_s25   ;;  %s3470_s28 = scalar_lea.vmem %s2005_s17, 128 }
 0x7df   : > { %s1969_s15 = scalar_lea.sflag [#allocation4], %s5039_s8  ;;  %p3471_p2 = scmp.ne.s32.totalorder %s2005_s17, %s3470_s28 }
 0x7e0   : > { %s3821_s24 = smov [#allocation19]  }
 0x7e1   : > { %p3472_p11 = pnand %p3471_p2, %p5035_p1  ;;  %s3474_s5 = sshll.u32 %s3821_s24, 4  ;;  %s3475_s5 = int_to_ptr.vmem [resolvable:$false] %s3474_s5 }
 0x7e2   : > { %s5037_s4 = smov %s5036_s9  ;;  %s4639_s23 = scalar_lea.hbm %s5036_s9, %s4610_s6 }
 0x7e3   : > { %s4647_s0 = scalar_lea.hbm %s5038_s11, %s4610_s6  ;;  %p3473_p6 = pneg %p3472_p11 }
 0x7e4   : > { %s3476_s26 = scalar_lea.vmem %s3475_s5, 256  ;;  %p3477_p3 = scmp.lt.s32.totalorder %s2005_s17, %s3475_s5 }
 0x7e5   : > { %p3478_p8 = scmp.lt.s32.totalorder %s3476_s26, %s3470_s28 }
 0x7e7   : > { %p3479_p4 = por %p3478_p8, %p3477_p3 }
 0x7e9   : > { %p3480_p12 = pnand %p3479_p4, %p3473_p6 }
 0x7eb   : > { %3483 = shalt.err (!%p3480_p12)
}
 0x7ec   : > { %s3484_s25 = scalar_lea.hbm %s4639_s23, 128  ;;  %s3488_s22 = scalar_lea.hbm %s5037_s4, 768 }
 0x7ed   : > { %p3485_p13 = scmp.ne.s32.totalorder %s4639_s23, %s3484_s25  ;;  %p3489_p7 = scmp.lt.s32.totalorder %s4639_s23, %s5037_s4 }
 0x7ee   : > { %p3490_p10 = scmp.lt.s32.totalorder %s3488_s22, %s3484_s25 }
 0x7ef   : > { %p3486_p0 = pnand %p3485_p13, %p5035_p1 }
 0x7f0   : > { %p3491_p9 = por %p3490_p10, %p3489_p7 }
 0x7f1   : > { %p3487_p5 = pneg %p3486_p0 }
 0x7f3   : > { %p3492_p2 = pnand %p3491_p9, %p3487_p5 }
 0x7f5   : > { %3495 = shalt.err (!%p3492_p2)
}
 0x7f6   : > { %2838 = dma.vmem_to_hbm [thread:$0]  (%p5035_p1), %s2005_s17, 128, %s4639_s23, %s1969_s15  }
 0x7f7   : > { %s3496_s28 = scalar_lea.vmem %s2035_s14, 128  ;;  %s3822_s19 = smov [#allocation22]  }
 0x7f8   : > { %p3497_p11 = scmp.ne.s32.totalorder %s2035_s14, %s3496_s28  ;;  %s3500_s27 = sshll.u32 %s3822_s19, 4  ;;  %s3501_s27 = int_to_ptr.vmem [resolvable:$false] %s3500_s27 }
 0x7f9   : > { %s3502_s24 = scalar_lea.vmem %s3501_s27, 256  ;;  %p3503_p8 = scmp.lt.s32.totalorder %s2035_s14, %s3501_s27 }
 0x7fa   : > { %p3498_p6 = pnand %p3497_p11, %p5035_p1  ;;  %p3504_p4 = scmp.lt.s32.totalorder %s3502_s24, %s3496_s28 }
 0x7fc   : > { %p3499_p3 = pneg %p3498_p6  ;;  %p3505_p12 = por %p3504_p4, %p3503_p8 }
 0x7fe   : > { %p3506_p13 = pnand %p3505_p12, %p3499_p3 }
 0x800   : > { %3509 = shalt.err (!%p3506_p13)
}
 0x801   : > { %s3510_s15 = scalar_lea.hbm %s4647_s0, 128  ;;  %s3514_s5 = scalar_lea.hbm %s5038_s11, 768 }
 0x802   : > { %p3511_p0 = scmp.ne.s32.totalorder %s4647_s0, %s3510_s15  ;;  %p3515_p10 = scmp.lt.s32.totalorder %s4647_s0, %s5038_s11 }
 0x803   : > { %p3516_p9 = scmp.lt.s32.totalorder %s3514_s5, %s3510_s15 }
 0x804   : > { %p3512_p5 = pnand %p3511_p0, %p5035_p1 }
 0x805   : > { %p3517_p2 = por %p3516_p9, %p3515_p10 }
 0x806   : > { %p3513_p7 = pneg %p3512_p5 }
 0x808   : > { %p3518_p11 = pnand %p3517_p2, %p3513_p7 }
 0x80a   : > { %3521 = shalt.err (!%p3518_p11)
}
 0x80b   : > { %2840 = dma.vmem_to_hbm [thread:$0]  (%p5035_p1), %s2035_s14, 128, %s4647_s0, %s1974_s12  }
 0x80c   : > { %s898_s3 = scalar_lea.vmem [#allocation23], %s4391_s2  ;;  %s905_s22 = scalar_lea.vmem [#allocation25], %s4391_s2 }
 0x80d   : > { %s2049_s8 = sshll.u32 %s898_s3, 4  ;;  %s2064_s20 = sshll.u32 %s905_s22, 4  ;;  %s4696_s8 = int_to_ptr.vmem [resolvable:$true] %s2049_s8  ;;  %s4704_s20 = int_to_ptr.vmem [resolvable:$true] %s2064_s20 }
 0x80e   : > { %s5040_s12 = sld [smem:[#allocation83_spill]]  ;;  %s1984_s24 = scalar_lea.sflag [#allocation24], %s4386_s10 }
 0x80f   : > { %s5042_s27 = sld [smem:[#allocation84_spill]]  ;;  %s3522_s15 = scalar_lea.vmem %s4696_s8, 128 }
 0x810   : > { %p3523_p6 = scmp.ne.s32.totalorder %s4696_s8, %s3522_s15  ;;  %s3823_s23 = smov [#allocation23]  }
 0x811   : > { %s3526_s17 = sshll.u32 %s3823_s23, 4  ;;  %s3527_s17 = int_to_ptr.vmem [resolvable:$false] %s3526_s17 }
 0x812   : > { %p3524_p3 = pnand %p3523_p6, %p5035_p1  ;;  %s3528_s26 = scalar_lea.vmem %s3527_s17, 256 }
 0x813   : > { %p3529_p4 = scmp.lt.s32.totalorder %s4696_s8, %s3527_s17  ;;  %p3530_p12 = scmp.lt.s32.totalorder %s3528_s26, %s3522_s15 }
 0x814   : > { %s5041_s5 = smov %s5040_s12  ;;  %s4694_s14 = scalar_lea.hbm %s5040_s12, %s4610_s6 }
 0x815   : > { %s5043_s4 = smov %s5042_s27  ;;  %s4702_s2 = scalar_lea.hbm %s5042_s27, %s4610_s6 }
 0x816   : > { %p3525_p8 = pneg %p3524_p3  ;;  %p3531_p13 = por %p3530_p12, %p3529_p4 }
 0x818   : > { %p3532_p0 = pnand %p3531_p13, %p3525_p8 }
 0x858   : > { %v1959_v57 = vpop.xlane.xlu0 %1958 }
 0x859   : > { %3168 = vlog2.f32 %v1959_v57 }
 0x85a   : > { %3170 = vrcp.f32 %v1959_v57 }
 0x866   : > { %v3169_v58 = vpop.eup %3168 }
 0x867   : > { %v3171_v59 = vpop.eup %3170  ;;  %v1961_v56 = vmul.f32 0.6931472, %v3169_v58 }
 0x868   : > { %v1966_v60 = vmul.f32 %v3171_v59, %v4605_v55 }
 0x869   : > { %v1962_v61 = vsub.f32 %v4602_v53, %v1961_v56 }
 0x86a   : > { %1967 = vst [vmem:[%s905_s22] sm:$0xff] %v1966_v60 }
 0x86b   : > { %1963 = vst [vmem:[%s898_s3] sm:$0xff] %v1962_v61 }
 0x86c   : > { %3535 = shalt.err (!%p3532_p0)
}
 0x86d   : > { %s3536_s6 = scalar_lea.hbm %s4694_s14, 128  ;;  %s3540_s22 = scalar_lea.hbm %s5041_s5, 768 }
 0x86e   : > { %p3537_p5 = scmp.ne.s32.totalorder %s4694_s14, %s3536_s6  ;;  %p3541_p9 = scmp.lt.s32.totalorder %s4694_s14, %s5041_s5 }
 0x86f   : > { %p3542_p2 = scmp.lt.s32.totalorder %s3540_s22, %s3536_s6 }
 0x870   : > { %p3538_p7 = pnand %p3537_p5, %p5035_p1 }
 0x871   : > { %p3543_p11 = por %p3542_p2, %p3541_p9 }
 0x872   : > { %p3539_p10 = pneg %p3538_p7 }
 0x874   : > { %p3544_p6 = pnand %p3543_p11, %p3539_p10 }
 0x876   : > { %3547 = shalt.err (!%p3544_p6)
}
 0x877   : > { %2841 = dma.vmem_to_hbm [thread:$0]  (%p5035_p1), %s4696_s8, 128, %s4694_s14, %s1984_s24  }
 0x878   : > { %s3548_s12 = scalar_lea.vmem %s4704_s20, 128  ;;  %s3824_s0 = smov [#allocation25]  }
 0x879   : > { %p3549_p3 = scmp.ne.s32.totalorder %s4704_s20, %s3548_s12  ;;  %s3552_s19 = sshll.u32 %s3824_s0, 4  ;;  %s3553_s19 = int_to_ptr.vmem [resolvable:$false] %s3552_s19 }
 0x87a   : > { %s3554_s27 = scalar_lea.vmem %s3553_s19, 256  ;;  %p3555_p12 = scmp.lt.s32.totalorder %s4704_s20, %s3553_s19 }
 0x87b   : > { %p3550_p8 = pnand %p3549_p3, %p5035_p1  ;;  %p3556_p13 = scmp.lt.s32.totalorder %s3554_s27, %s3548_s12 }
 0x87d   : > { %p3551_p4 = pneg %p3550_p8  ;;  %p3557_p0 = por %p3556_p13, %p3555_p12 }
 0x87f   : > { %p3558_p5 = pnand %p3557_p0, %p3551_p4 }
 0x881   : > { %3561 = shalt.err (!%p3558_p5)
}
 0x882   : > { %s3562_s15 = scalar_lea.hbm %s4702_s2, 128  ;;  %s3566_s23 = scalar_lea.hbm %s5043_s4, 768 }
 0x883   : > { %p3563_p7 = scmp.ne.s32.totalorder %s4702_s2, %s3562_s15  ;;  %p3567_p2 = scmp.lt.s32.totalorder %s4702_s2, %s5043_s4 }
 0x884   : > { %p3568_p11 = scmp.lt.s32.totalorder %s3566_s23, %s3562_s15 }
 0x885   : > { %p3564_p10 = pnand %p3563_p7, %p5035_p1 }
 0x886   : > { %p3569_p6 = por %p3568_p11, %p3567_p2 }
 0x887   : > { %p3565_p9 = pneg %p3564_p10 }
 0x889   : > { %p3570_p3 = pnand %p3569_p6, %p3565_p9 }
 0x88b   : > { %3573 = shalt.err (!%p3570_p3)
}
 0x88c   : > { %2842 = dma.vmem_to_hbm [thread:$0]  (%p5035_p1), %s4704_s20, 128, %s4702_s2, %s1984_s24  }
 0x88d PF: > { %s5044_s6 = sld [smem:[#allocation47_spill]]  ;;  %p2905_p8 = scmp.ge.s32.totalorder %s3804_s7, 2 }
 0x88e   : > { %p5045_p4 = scmp.ne.s32.totalorder %s4950_s21, 0 }
 0x890   : > { %p2881_p12 = pnand %p2905_p8, %p5045_p4 }
 0x892   : > { %p2882_p13 = pneg %p2881_p12 }
 0x893   : > { %s2076_s25 = sand.u32 1, %s5044_s6  }
 0x894   : > { %s2077_s3 = scalar_lea.sflag [#allocation4], %s2076_s25 }
 0x895   : > { %3703 = dma.done.wait (%p2882_p13), %s2077_s3, 128  }
 0x896   : > { %3705 = vsyncadd (%p2882_p13), %s2077_s3, 4294967168  ;;  %s5046_s22 = sadd.s32 4294967294, %s3804_s7  }
 0x897   : > { %s2085_s16 = sand.u32 1, %s5046_s22  }
 0x898   : > { %s2086_s9 = scalar_lea.sflag [#allocation21], %s2085_s16 }
 0x899   : > { %3707 = dma.done.wait (%p2882_p13), %s2086_s9, 256  }
 0x89a   : > { %3709 = vsyncadd (%p2882_p13), %s2086_s9, 4294967040  ;;  %s2104_s10 = scalar_lea.sflag [#allocation24], %s2085_s16 }
 0x89b   : > { %3711 = dma.done.wait (%p2882_p13), %s2104_s10, 256  }
 0x89c   : > { %3713 = vsyncadd (%p2882_p13), %s2104_s10, 4294967040  ;;  %s51_s7 = sadd.s32 1, %s3804_s7   ;;  %s5048_s24 = sld [smem:[#allocation39_spill]] }
 0x89d   : > { %p4758_p1 = scmp.ge.s32.totalorder %s51_s7, 8   ;;  %s5049_s25 = sld [smem:[#allocation40_spill]] }
 0x89e   : > { %s5050_s27 = sld [smem:[#allocation42_spill]]  ;;  %s5061_s26 = smov %s4345_s29 }
 0x89f   : > { %s5051_s28 = sld [smem:[#allocation43_spill]]  ;;  %s5065_s29 = smov %s4310_s1 }
 0x8a0   : > { %s5052_s19 = sld [smem:[#allocation45_spill]]  ;;  %s5067_s0 = smov %s3744_s30 }
 0x8a1   : > { %s5053_s21 = sld [smem:[#allocation46_spill]]  ;;  %s5068_s30 = smov %s3748_s18 }
 0x8a2   : > { %s5054_s2 = sld [smem:[#allocation66_spill]]  ;;  %s5070_s18 = smov %s4179_s13 }
 0x8a3   : > { %s5055_s12 = sld [smem:[#allocation48_spill]] }
 0x8a4   : > { %s5056_s22 = sld [smem:[#allocation49_spill]] }
 0x8a5   : > { %s5057_s23 = sld [smem:[#allocation64_spill]] }
 0x8a6   : > { %s5058_s17 = sld [smem:[#allocation51_spill]] }
 0x8a7   : > { %s5059_s16 = sld [smem:[#allocation52_spill]]  ;;  %s5071_s1 = smov %s5053_s21 }
 0x8a8   : > { %s5060_s15 = sld [smem:[#allocation65_spill]]  ;;  %s5072_s20 = smov %s5054_s2 }
 0x8a9   : > { %s5062_s8 = sld [smem:[#allocation55_spill]]  ;;  %s5073_s21 = smov %s5055_s12 }
 0x8aa   : > { %s5063_s14 = sld [smem:[#allocation56_spill]] }
 0x8ab   : > { %s5064_s6 = sld [smem:[#allocation59_spill]] }
 0x8ac   : > { %s5066_s9 = sld [smem:[#allocation61_spill]] }
 0x8ad   :  { %50 = sbr.rel (!%p4758_p1) target bundleno = 46 (0x2e), region = 258 }
 0x8af   : > { %s5074_s13 = smov %s5062_s8 }
 0x8b1   : > { %s5075_s12 = smov %s5064_s6 }
 0x8b2   :  { %2118 = vsyncpa [#allocation3], 1 }
 0x8b3   :  { %2120 = vsyncpa [#allocation3 + $0x1], 1 }
 0x8b4   :  { %2121 = vsyncpa [#allocation6], 1 }
 0x8b5   :  { %2123 = vsyncpa [#allocation6 + $0x1], 1 }
 0x8b6   :  { %2124 = vsyncpa [#allocation9], 1 }
 0x8b7   :  { %2126 = vsyncpa [#allocation9 + $0x1], 1 }
 0x8b8   :  { %2127 = vsyncpa [#allocation12], 1 }
 0x8b9   :  { %2129 = vsyncpa [#allocation12 + $0x1], 1 }
 0x8ba   :  { %2130 = vsyncpa [#allocation15], 1 }
 0x8bb   :  { %2131 = vsyncpa [#allocation18], 1 }
 0x8bc   :  { %2132 = vsyncpa [#allocation4], 1 }
 0x8bd   :  { %2134 = vsyncpa [#allocation4 + $0x1], 1 }
 0x8be   :  { %2135 = vsyncpa [#allocation21], 1 }
 0x8bf   :  { %2137 = vsyncpa [#allocation21 + $0x1], 1 }
 0x8c0   :  { %2138 = vsyncpa [#allocation24], 1 }
 0x8c1   :  { %2140 = vsyncpa [#allocation24 + $0x1], 1 }

</bundles_post_ra>
